<compile_context>
chip_gen: v6e
topology: v6e:2x2x1
jax: 0.10.0
libtpu: 0.0.40
codegen_flags: <defaults>
</compile_context>

<pallas_src>
import functools

import numpy as np

import jax
import jax.numpy as jnp
from jax.experimental import pallas as pl
from jax.experimental.pallas import tpu as pltpu

VGG19_CFG = [64, 64, 'M', 128, 128, 'M', 256, 256, 256, 256, 'M',
             512, 512, 512, 512, 'M', 512, 512, 512, 512, 'M']


def _pool_after_flags():
    flags = []
    for i, v in enumerate(VGG19_CFG):
        if v == 'M':
            continue
        flags.append(i + 1 < len(VGG19_CFG) and VGG19_CFG[i + 1] == 'M')
    return tuple(flags)


_POOL_AFTER = _pool_after_flags()
assert not _POOL_AFTER[0]          # VGG19: first conv is not followed by a pool


def _row_stride(W):
    """Padded-flat row stride: W + 2 halo columns, rounded up to a sublane multiple
    so all +-row (dy) rolls and pool-epilogue offsets are sublane-aligned."""
    return ((W + 2 + 7) // 8) * 8


def _flat_len(H, W):
    return (H + 2) * _row_stride(W)


@functools.lru_cache(maxsize=None)
def _roll_sign():
    """Pin down pltpu.roll's rotation convention with a tiny probe kernel.

    Returns +1 if pltpu.roll(x, s) == jnp.roll(x, s)  (result[j] = x[(j - s) % L]),
    else -1.  Warmed once, eagerly (outside any jit trace)."""
    def probe(x_ref, o_ref):
        o_ref[...] = pltpu.roll(x_ref[...], 1, axis=0)

    x = jnp.tile(jax.lax.iota(jnp.float32, 8).reshape(8, 1), (1, 128))
    y = pl.pallas_call(
        probe, out_shape=jax.ShapeDtypeStruct((8, 128), jnp.float32))(x)
    return 1 if float(y[1, 0]) == 0.0 else -1


@functools.lru_cache(maxsize=None)
def _interior_mask(H, W):
    """(L, 1) f32 mask: 1.0 on interior pixels of the padded-flat layout, 0.0 on the
    halo rows/columns and the row-stride padding columns."""
    Wp = _row_stride(W)
    m = np.zeros((H + 2, Wp), np.float32)
    m[1:H + 1, 1:W + 1] = 1.0
    return jnp.asarray(m.reshape((H + 2) * Wp, 1))


def _weight_spec(block_shape, index_map, depth=3):
    """BlockSpec for a pure weight stream; request deeper pipeline buffering when the
    installed JAX supports pipeline_mode (falls back to default double buffering)."""
    try:
        return pl.BlockSpec(block_shape, index_map, pipeline_mode=pl.Buffered(depth))
    except (TypeError, AttributeError):
        return pl.BlockSpec(block_shape, index_map)


# -------------------------------- host-side prep -------------------------------------

def _to_im2col_flat(x_nchw, cin_pad):
    """im2col of the (tiny) network input, in padded-flat layout:
    (N, (H+2)*row_stride(W), 9*cin_pad) bf16, patch order (dy, dx, cin)."""
    N, C, H, W = x_nchw.shape
    Hp, Wp = H + 2, _row_stride(W)
    x = jnp.transpose(x_nchw, (0, 2, 3, 1))
    # rows: 1 halo + 1 patch ring each side; cols: halo + patch ring + stride padding.
    xp = jnp.pad(x, ((0, 0), (2, 2), (2, Wp - W), (0, cin_pad - C)))
    cols = [xp[:, dy:dy + Hp, dx:dx + Wp, :] for dy in range(3) for dx in range(3)]
    xi = jnp.concatenate(cols, axis=-1).reshape(N, Hp * Wp, 9 * cin_pad)
    return xi.astype(jnp.bfloat16)


# -------------------- conv3x3 + BN + ReLU (+ fused 2x2 max pool) ---------------------

def _conv_taps(x, w_ref, *, Wp, sign):
    """Nine 3x3 taps: roll the bf16 input (2 row rolls + 6 unit rolls), accumulate the
    nine MXU matmuls into a single f32 value (no per-tap scratch read-modify-write)."""
    L = x.shape[0]
    acc = None
    for dy in range(3):
        sy = (sign * (1 - dy) * Wp) % L
        xr = pltpu.roll(x, sy, axis=0) if sy else x
        for dx in range(3):
            sx = (sign * (1 - dx)) % L
            xs = pltpu.roll(xr, sx, axis=0) if sx else xr
            p = jnp.dot(xs, w_ref[dy, dx], preferred_element_type=jnp.float32)
            acc = p if acc is None else acc + p
    return acc


def _conv1_kernel(x_ref, w_ref, s_ref, t_ref, m_ref, o_ref):
    # conv1_1: im2col'd input -> a single K = 9*Cin matmul (no rolls).
    acc = jnp.dot(x_ref[0], w_ref[...], preferred_element_type=jnp.float32)
    y = jnp.maximum(acc * s_ref[...] + t_ref[...], 0.0)          # folded BN + ReLU
    o_ref[0] = (y * m_ref[...]).astype(o_ref.dtype)              # zero halo / pad


def _conv_bn_relu_kernel(x_ref, w_ref, s_ref, t_ref, m_ref, o_ref, *, Wp, sign):
    acc = _conv_taps(x_ref[0], w_ref, Wp=Wp, sign=sign)
    y = jnp.maximum(acc * s_ref[...] + t_ref[...], 0.0)          # folded BN + ReLU
    o_ref[0] = (y * m_ref[...]).astype(o_ref.dtype)              # zero halo / pad


def _conv_bn_relu_pool_kernel(x_ref, w_ref, s_ref, t_ref, o_ref, stage_ref,
                              *, H, W, Wp, Wpo, sign):
    L = stage_ref.shape[0]
    acc = _conv_taps(x_ref[0], w_ref, Wp=Wp, sign=sign)
    y = jnp.maximum(acc * s_ref[...] + t_ref[...], 0.0)          # folded BN + ReLU
    # Fused 2x2 / stride-2 max pool: pair-max along w then along h; the pooled value
    # for window top-left j ends up at index j (all 4 reads are interior for interior j).
    y = jnp.maximum(y, pltpu.roll(y, (-sign) % L, axis=0))
    y = jnp.maximum(y, pltpu.roll(y, (-sign * Wp) % L, axis=0))
    stage_ref[...] = y                                           # stage for strided reads
    H2, W2 = H // 2, W // 2
    tc = o_ref.shape[2]
    # Zero only the halo / pad rows of the output; interior rows are written below.
    zero_ranges = [(0, Wpo + 1)]
    for ho in range(H2 - 1):
        zero_ranges.append(((ho + 1) * Wpo + 1 + W2, (ho + 2) * Wpo + 1))
    zero_ranges.append((H2 * Wpo + 1 + W2, o_ref.shape[1]))
    for start, end in zero_ranges:
        o_ref[0, pl.ds(start, end - start), :] = jnp.zeros((end - start, tc),
                                                           o_ref.dtype)
    # Write the pooled rows in the next layer's padded-flat layout.
    for ho in range(H2):
        row = stage_ref[pl.ds((2 * ho + 1) * Wp + 1, W2, 2), :]
        o_ref[0, pl.ds((ho + 1) * Wpo + 1, W2), :] = row.astype(o_ref.dtype)


@functools.lru_cache(maxsize=None)
def _make_conv1_call(N, H, W, K, Cout):
    L = _flat_len(H, W)
    return pl.pallas_call(
        _conv1_kernel,
        out_shape=jax.ShapeDtypeStruct((N, L, Cout), jnp.bfloat16),
        grid=(N,),
        in_specs=[pl.BlockSpec((1, L, K), lambda n: (n, 0, 0)),
                  pl.BlockSpec((K, Cout), lambda n: (0, 0)),
                  pl.BlockSpec((1, Cout), lambda n: (0, 0)),
                  pl.BlockSpec((1, Cout), lambda n: (0, 0)),
                  pl.BlockSpec((L, 1), lambda n: (0, 0))],
        out_specs=pl.BlockSpec((1, L, Cout), lambda n: (n, 0, 0)),
        compiler_params=pltpu.CompilerParams(dimension_semantics=("parallel",)),
    )


@functools.lru_cache(maxsize=None)
def _make_conv_call(N, H, W, Cin, Cout, pool):
    sign = _roll_sign()
    Wp = _row_stride(W)
    L = _flat_len(H, W)
    # 256-wide Cout tile fills the 256-wide MXU on v6e/v7x; the deep layers are
    # weight-DMA-bound on v5e so fewer/larger tiles do not hurt there either.
    tc = min(Cout, 256)
    n_co = Cout // tc
    if pool:
        assert H % 2 == 0 and W % 2 == 0
        H2, W2 = H // 2, W // 2
        Wpo = _row_stride(W2)
        Lout = _flat_len(H2, W2)
        kern = functools.partial(_conv_bn_relu_pool_kernel,
                                 H=H, W=W, Wp=Wp, Wpo=Wpo, sign=sign)
        scratch = [pltpu.VMEM((L, tc), jnp.float32)]
        extra_specs = []
    else:
        Lout = L
        kern = functools.partial(_conv_bn_relu_kernel, Wp=Wp, sign=sign)
        scratch = []
        extra_specs = [pl.BlockSpec((L, 1), lambda c, n: (0, 0))]

    w_map = lambda c, n: (0, 0, 0, c)
    if n_co >= 2:
        w_spec = _weight_spec((3, 3, Cin, tc), w_map, depth=3)
    else:
        w_spec = pl.BlockSpec((3, 3, Cin, tc), w_map)

    # Grid: Cout tile outer, batch inner -> the weight block index is unchanged across
    # consecutive grid steps, so the weight tile is DMA'd once per forward (not per
    # batch element).  Both axes are parallel (>= 2 units for v7x's two TensorCores).
    return pl.pallas_call(
        kern,
        out_shape=jax.ShapeDtypeStruct((N, Lout, Cout), jnp.bfloat16),
        grid=(n_co, N),
        in_specs=[pl.BlockSpec((1, L, Cin), lambda c, n: (n, 0, 0)),
                  w_spec,
                  pl.BlockSpec((1, tc), lambda c, n: (0, c)),
                  pl.BlockSpec((1, tc), lambda c, n: (0, c))] + extra_specs,
        out_specs=pl.BlockSpec((1, Lout, tc), lambda c, n: (n, 0, c)),
        scratch_shapes=scratch,
        compiler_params=pltpu.CompilerParams(
            dimension_semantics=("parallel", "parallel")),
    )


def conv3x3_bn_relu(x, w, scale, shift, H, W, pool):
    N = x.shape[0]
    Cin, Cout = w.shape[2], w.shape[3]
    call = _make_conv_call(N, H, W, Cin, Cout, bool(pool))
    if pool:
        return call(x, w, scale, shift)
    return call(x, w, scale, shift, _interior_mask(H, W))


# ----------------------------------- linear ------------------------------------------

def _linear_kernel(x_ref, w_ref, ws_ref, b_ref, o_ref, acc_ref, *, apply_relu):
    k = pl.program_id(1)

    @pl.when(k == 0)
    def _():
        acc_ref[...] = jnp.zeros_like(acc_ref)

    # int8 weights are dequantized to bf16 on the VPU right after the DMA; the
    # per-output-channel scale is applied once in the f32 epilogue below.
    acc_ref[...] += jnp.dot(x_ref[...], w_ref[...].astype(jnp.bfloat16),
                            preferred_element_type=jnp.float32)

    @pl.when(k == pl.num_programs(1) - 1)
    def _():
        y = acc_ref[...] * ws_ref[...] + b_ref[...]
        if apply_relu:
            y = jnp.maximum(y, 0.0)
        o_ref[...] = y.astype(o_ref.dtype)


@functools.lru_cache(maxsize=None)
def _make_linear_call(N, K, OUT, apply_relu, out_dtype_name):
    tn = 512 if OUT % 512 == 0 else OUT
    tk = 2048 if K % 2048 == 0 else K
    kern = functools.partial(_linear_kernel, apply_relu=apply_relu)
    return pl.pallas_call(
        kern,
        out_shape=jax.ShapeDtypeStruct((N, OUT), jnp.dtype(out_dtype_name)),
        grid=(OUT // tn, K // tk),
        in_specs=[pl.BlockSpec((N, tk), lambda j, k: (0, k)),
                  _weight_spec((tk, tn), lambda j, k: (k, j), depth=3),
                  pl.BlockSpec((1, tn), lambda j, k: (0, j)),
                  pl.BlockSpec((1, tn), lambda j, k: (0, j))],
        out_specs=pl.BlockSpec((N, tn), lambda j, k: (0, j)),
        scratch_shapes=[pltpu.VMEM((N, tn), jnp.float32)],
        compiler_params=pltpu.CompilerParams(
            dimension_semantics=("parallel", "arbitrary")),
    )


def linear(x, wq, wscale, b, apply_relu, out_dtype):
    # wq: (in, out) int8; wscale, b: (1, out) f32.
    N, K = x.shape
    OUT = wq.shape[1]
    call = _make_linear_call(N, K, OUT, bool(apply_relu), jnp.dtype(out_dtype).name)
    return call(x, wq, wscale, b)


# -------------------------------- parameter init -------------------------------------

def _quantize_linear(w, b, pad_out=None):
    """Per-output-channel symmetric int8 quantization; optionally pad the output dim
    (e.g. the 10-class head is padded to 128 lanes; logits sliced outside the kernel)."""
    dout = w.shape[1]
    if pad_out is not None and pad_out > dout:
        w = jnp.pad(w, ((0, 0), (0, pad_out - dout)))
        b = jnp.pad(b, ((0, 0), (0, pad_out - dout)))
    amax = jnp.max(jnp.abs(w), axis=0, keepdims=True)
    scale = jnp.where(amax > 0, amax / 127.0, 1.0).astype(jnp.float32)
    wq = jnp.clip(jnp.round(w / scale), -127, 127).astype(jnp.int8)
    return wq, scale, b.astype(jnp.float32)


def init_params(key, in_channels, num_classes):
    eps = 1e-5
    conv_params = []
    cin = in_channels
    for v in VGG19_CFG:
        if v == 'M':
            continue
        key, k_w, k_b = jax.random.split(key, 3)
        w = jax.random.normal(k_w, (3, 3, cin, v), jnp.float32) * (2.0 / (9 * cin)) ** 0.5
        if cin < 8:                    # pad tiny Cin (RGB) to 8 lanes with zero taps
            w = jnp.pad(w, ((0, 0), (0, 0), (0, 8 - cin), (0, 0)))
        conv_bias = jax.random.normal(k_b, (v,), jnp.float32) * 0.01
        # PyTorch BatchNorm2d eval defaults: weight=1, bias=0, mean=0, var=1.
        gamma = jnp.ones((v,), jnp.float32)
        beta = jnp.zeros((v,), jnp.float32)
        running_mean = jnp.zeros((v,), jnp.float32)
        running_var = jnp.ones((v,), jnp.float32)
        scale = gamma / jnp.sqrt(running_var + eps)
        shift = beta + (conv_bias - running_mean) * scale
        conv_params.append((w.astype(jnp.bfloat16),
                            scale.reshape(1, v),
                            shift.reshape(1, v)))
        cin = v

    fc_params = []
    dims = [(512, 4096), (4096, 4096), (4096, num_classes)]
    for i, (din, dout) in enumerate(dims):
        key, k_w, k_b = jax.random.split(key, 3)
        w = jax.random.normal(k_w, (din, dout), jnp.float32) * (1.0 / din) ** 0.5
        b = (jax.random.normal(k_b, (dout,), jnp.float32) * 0.01).reshape(1, dout)
        pad_out = 128 if i == len(dims) - 1 else None     # lane-dense classifier head
        fc_params.append(_quantize_linear(w, b, pad_out))
    return tuple(conv_params), tuple(fc_params)


# ----------------------------------- forward -----------------------------------------

@functools.partial(jax.jit, static_argnames=("num_classes",))
def _forward_jit(x_nchw, conv_params, fc_params, *, num_classes):
    N, C, H, W = x_nchw.shape
    w0, s0, t0 = conv_params[0]
    cin_pad = w0.shape[2]
    # conv1_1 via host-side im2col -> one K = 9*Cin matmul.
    xi = _to_im2col_flat(x_nchw, cin_pad)
    x = _make_conv1_call(N, H, W, 9 * cin_pad, w0.shape[3])(
        xi, w0.reshape(9 * cin_pad, w0.shape[3]), s0, t0, _interior_mask(H, W))
    for (w, scale, shift), pool in zip(conv_params[1:], _POOL_AFTER[1:]):
        x = conv3x3_bn_relu(x, w, scale, shift, H, W, pool)
        if pool:
            H //= 2
            W //= 2
    # After the 5 pools spatial is 1x1; the single interior pixel sits at padded-flat
    # index row_stride(W) + 1.  (Flatten order matches PyTorch since spatial is 1x1.)
    feat = x[:, _row_stride(W) + 1, :]                    # (N, 512) bf16
    (w1, ws1, b1), (w2, ws2, b2), (w3, ws3, b3) = fc_params
    h = linear(feat, w1, ws1, b1, apply_relu=True, out_dtype=jnp.bfloat16)
    # Dropout(p=0.5) is identity in eval mode.
    h = linear(h, w2, ws2, b2, apply_relu=True, out_dtype=jnp.bfloat16)
    logits = linear(h, w3, ws3, b3, apply_relu=False, out_dtype=jnp.float32)
    return logits[:, :num_classes]


def vgg_forward(x_nchw, conv_params, fc_params, num_classes):
    _roll_sign()            # warm the roll-convention probe outside any jit trace
    return _forward_jit(x_nchw, conv_params, fc_params, num_classes=num_classes)


# ------------------------------- numerical self-check --------------------------------

def _conv_self_check(x_nchw, conv_params, tol=0.3):
    """Check conv1_1 (im2col kernel) + conv1_2 (fused conv+BN+ReLU+pool kernel) against
    an XLA reference with the same bf16 quantization points."""
    (w0, s0, t0), (w1, s1, t1) = conv_params[0], conv_params[1]
    cin_pad = w0.shape[2]
    N, C, H, W = x_nchw.shape

    xi = _to_im2col_flat(x_nchw, cin_pad)
    a = _make_conv1_call(N, H, W, 9 * cin_pad, w0.shape[3])(
        xi, w0.reshape(9 * cin_pad, w0.shape[3]), s0, t0, _interior_mask(H, W))
    a = conv3x3_bn_relu(a, w1, s1, t1, H, W, pool=True)
    H2, W2 = H // 2, W // 2
    got = a.reshape(N, H2 + 2, _row_stride(W2), -1)[:, 1:H2 + 1, 1:W2 + 1, :]
    got = got.astype(jnp.float32)

    xr = jnp.transpose(x_nchw, (0, 2, 3, 1))
    xr = jnp.pad(xr, ((0, 0), (0, 0), (0, 0), (0, cin_pad - C)))
    xr = xr.astype(jnp.bfloat16).astype(jnp.float32)

    def ref_layer(v, w, s, t):
        y = jax.lax.conv_general_dilated(
            v, w.astype(jnp.float32), (1, 1), 'SAME',
            dimension_numbers=('NHWC', 'HWIO', 'NHWC'))
        return jnp.maximum(y * s.reshape(1, 1, 1, -1) + t.reshape(1, 1, 1, -1), 0.0)

    r = ref_layer(xr, w0, s0, t0).astype(jnp.bfloat16).astype(jnp.float32)
    r = ref_layer(r, w1, s1, t1)
    r = r.reshape(N, H2, 2, W2, 2, -1).max(axis=(2, 4))
    err = float(jnp.max(jnp.abs(got - r)))
    if not err < tol:
        raise AssertionError(f"conv/pool self-check failed: max |err| = {err}")


def _fc_self_check(fc_params, key, tol=0.05):
    """Check the int8-dequant FC kernel against an f32 XLA reference."""
    wq, ws, b = fc_params[0]
    x = (jax.random.normal(key, (2, wq.shape[0]), jnp.float32) * 0.1).astype(jnp.bfloat16)
    got = linear(x, wq, ws, b, apply_relu=False, out_dtype=jnp.float32)
    ref = jnp.dot(x.astype(jnp.float32), wq.astype(jnp.float32) * ws,
                  precision=jax.lax.Precision.HIGHEST) + b
    err = float(jnp.max(jnp.abs(got - ref)))
    if not err < tol:
        raise AssertionError(f"linear self-check failed: max |err| = {err}")


if __name__ == "__main__":
    in_channels = 3
    num_classes = 10

    key = jax.random.PRNGKey(0)
    key, k_params, k_x, k_fc = jax.random.split(key, 4)
    conv_params, fc_params = init_params(k_params, in_channels, num_classes)

    # VGG19 has 5 max-pools and the classifier expects 512 flattened features,
    # so spatial must be 32x32.
    x = jax.random.normal(k_x, (2, in_channels, 32, 32), jnp.float32)

    # Lightweight numerical self-checks of the fused conv and int8-FC kernels.
    _conv_self_check(x, conv_params)
    _fc_self_check(fc_params, k_fc)

    out = vgg_forward(x, conv_params, fc_params, num_classes)
    out = jax.block_until_ready(out)
    assert out.shape == (2, num_classes), out.shape
    assert bool(jnp.all(jnp.isfinite(out)))
    print("KERNEL_OK")
</pallas_src>

<mosaic_0001>
module attributes {stable_mosaic.version = 11 : i64} {
  func.func @_conv1_kernel(%arg0: i32, %arg1: memref<1x1360x72xbf16, #tpu.memory_space<vmem>>, %arg2: memref<72x64xbf16, #tpu.memory_space<vmem>>, %arg3: memref<1x64xf32, #tpu.memory_space<vmem>>, %arg4: memref<1x64xf32, #tpu.memory_space<vmem>>, %arg5: memref<1360x1xf32, #tpu.memory_space<vmem>>, %arg6: memref<1x1360x64xbf16, #tpu.memory_space<vmem>>) attributes {dimension_semantics = [#tpu.dimension_semantics<parallel>], iteration_bounds = array<i64: 2>, scalar_prefetch = 0 : i64, scratch_operands = 0 : i64, tpu.core_type = #tpu.core_type<tc>, window_params = [{transform_indices = @transform_0, window_bounds = array<i64: 1, 1360, 72>}, {pipeline_mode = #tpu.pipeline_mode<synchronous>, transform_indices = @transform_1, window_bounds = array<i64: 72, 64>}, {pipeline_mode = #tpu.pipeline_mode<synchronous>, transform_indices = @transform_2, window_bounds = array<i64: 1, 64>}, {pipeline_mode = #tpu.pipeline_mode<synchronous>, transform_indices = @transform_3, window_bounds = array<i64: 1, 64>}, {pipeline_mode = #tpu.pipeline_mode<synchronous>, transform_indices = @transform_4, window_bounds = array<i64: 1360, 1>}, {transform_indices = @transform_5, window_bounds = array<i64: 1, 1360, 64>}]} {
    %c0 = arith.constant 0 : index
    %c0_0 = arith.constant 0 : index
    %c0_1 = arith.constant 0 : index
    %0 = vector.load %arg1[%c0, %c0_0, %c0_1] : memref<1x1360x72xbf16, #tpu.memory_space<vmem>>, vector<1x1360x72xbf16>
    %1 = vector.shape_cast %0 : vector<1x1360x72xbf16> to vector<1360x72xbf16>
    %c0_2 = arith.constant 0 : index
    %c0_3 = arith.constant 0 : index
    %2 = vector.load %arg2[%c0_2, %c0_3] : memref<72x64xbf16, #tpu.memory_space<vmem>>, vector<72x64xbf16>
    %cst = arith.constant dense<0.000000e+00> : vector<1360x64xf32>
    %3 = tpu.matmul %1, %2, %cst {dimension_numbers = #tpu.dot_dimension_numbers<[1], [0], [0], [1], [0, 0, 1, 1], [], []>} : vector<1360x72xbf16>, vector<72x64xbf16>, vector<1360x64xf32> -> vector<1360x64xf32>
    %c0_4 = arith.constant 0 : index
    %c0_5 = arith.constant 0 : index
    %4 = vector.load %arg3[%c0_4, %c0_5] : memref<1x64xf32, #tpu.memory_space<vmem>>, vector<1x64xf32>
    %5 = vector.broadcast %4 : vector<1x64xf32> to vector<1360x64xf32>
    %6 = arith.mulf %3, %5 : vector<1360x64xf32>
    %c0_6 = arith.constant 0 : index
    %c0_7 = arith.constant 0 : index
    %7 = vector.load %arg4[%c0_6, %c0_7] : memref<1x64xf32, #tpu.memory_space<vmem>>, vector<1x64xf32>
    %8 = vector.broadcast %7 : vector<1x64xf32> to vector<1360x64xf32>
    %9 = arith.addf %6, %8 : vector<1360x64xf32>
    %cst_8 = arith.constant 0.000000e+00 : f32
    %10 = vector.broadcast %cst_8 : f32 to vector<1360x64xf32>
    %11 = arith.maximumf %9, %10 : vector<1360x64xf32>
    %c0_9 = arith.constant 0 : index
    %c0_10 = arith.constant 0 : index
    %12 = vector.load %arg5[%c0_9, %c0_10] : memref<1360x1xf32, #tpu.memory_space<vmem>>, vector<1360x1xf32>
    %13 = vector.broadcast %12 : vector<1360x1xf32> to vector<1360x64xf32>
    %14 = arith.mulf %11, %13 : vector<1360x64xf32>
    %15 = arith.truncf %14 : vector<1360x64xf32> to vector<1360x64xbf16>
    %c0_11 = arith.constant 0 : index
    %c0_12 = arith.constant 0 : index
    %c0_13 = arith.constant 0 : index
    %16 = vector.load %arg6[%c0_11, %c0_12, %c0_13] : memref<1x1360x64xbf16, #tpu.memory_space<vmem>>, vector<1x1360x64xbf16>
    %17 = vector.shape_cast %16 : vector<1x1360x64xbf16> to vector<1360x64xbf16>
    %18 = vector.shape_cast %15 : vector<1360x64xbf16> to vector<1x1360x64xbf16>
    tpu.vector_store %arg6[%c0_11, %c0_12, %c0_13], %18 {strides = array<i32>} : memref<1x1360x64xbf16, #tpu.memory_space<vmem>>, vector<1x1360x64xbf16>,
    return
  }
  func.func @transform_0(%arg0: i32) -> (i32, i32, i32) {
    %c0_i32 = arith.constant 0 : i32
    %c0_i32_0 = arith.constant 0 : i32
    %c0_i32_1 = arith.constant 0 : i32
    return %arg0, %c0_i32, %c0_i32_0 : i32, i32, i32
  }
  func.func @transform_1(%arg0: i32) -> (i32, i32) {
    %c0_i32 = arith.constant 0 : i32
    %c0_i32_0 = arith.constant 0 : i32
    %c0_i32_1 = arith.constant 0 : i32
    return %c0_i32, %c0_i32_0 : i32, i32
  }
  func.func @transform_2(%arg0: i32) -> (i32, i32) {
    %c0_i32 = arith.constant 0 : i32
    %c0_i32_0 = arith.constant 0 : i32
    %c0_i32_1 = arith.constant 0 : i32
    return %c0_i32, %c0_i32_0 : i32, i32
  }
  func.func @transform_3(%arg0: i32) -> (i32, i32) {
    %c0_i32 = arith.constant 0 : i32
    %c0_i32_0 = arith.constant 0 : i32
    %c0_i32_1 = arith.constant 0 : i32
    return %c0_i32, %c0_i32_0 : i32, i32
  }
  func.func @transform_4(%arg0: i32) -> (i32, i32) {
    %c0_i32 = arith.constant 0 : i32
    %c0_i32_0 = arith.constant 0 : i32
    %c0_i32_1 = arith.constant 0 : i32
    return %c0_i32, %c0_i32_0 : i32, i32
  }
  func.func @transform_5(%arg0: i32) -> (i32, i32, i32) {
    %c0_i32 = arith.constant 0 : i32
    %c0_i32_0 = arith.constant 0 : i32
    %c0_i32_1 = arith.constant 0 : i32
    return %arg0, %c0_i32, %c0_i32_0 : i32, i32, i32
  }
}

</mosaic_0001>

<bundles_post_ra>
// kernel: tpu_custom_call.1
= control target key start
LH: loop header
LB: loop body
LE: loop exit
PB: predicated region body
PF: predicated region fallthrough
CT: control target
= control target key end

     0   :  { %s5577_s18 = smov 0   ;;  %s7581_s0 = inlined_call_operand.vmem [shape: bf16[2,1360,72], index: 0, kind: input, shape index: {}]   ;;  %s7582_s1 = inlined_call_operand.vmem [shape: bf16[72,64], index: 1, kind: input, shape index: {}]   ;;  %s7583_s2 = inlined_call_operand.vmem [shape: f32[1,64], index: 2, kind: input, shape index: {}]   ;;  %s7584_s3 = inlined_call_operand.vmem [shape: f32[1,64], index: 3, kind: input, shape index: {}]   ;;  %s7585_s4 = inlined_call_operand.vmem [shape: f32[1360,1], index: 4, kind: input, shape index: {}]   ;;  %s7586_s5 = inlined_call_operand.vmem [shape: bf16[2,1360,64], index: 5, kind: output, shape index: {}]  }
   0x1 LB: > { %s4450_s19 = sadd.s32 4294967295, %s5542_s18   ;;  %p4454_p0 = scmp.ge.s32.totalorder %s5542_s18, 1  ;;  %s5542_s18 = sphi %s5577_s18, %s15_s18  }
   0x2   : > { %p187_p1 = scmp.lt.s32.totalorder %s5542_s18, 3 }
   0x4   : > { %p188_p2 = pnand %p4454_p0, %p187_p1 }
   0x6   : > { %191 = sbr.rel (%p188_p2) target bundleno = 579 (0x243), region = 40 }
   0xb   : > { %v2356_v0 = vld [vmem:[%s7585_s4 + $0x10] sm:$0xff]  ;;  %v2354_v1 = vld [vmem:[%s7585_s4] sm:$0xff]  ;;  %v5544_v2 = vmov 0   ;;  %vm1113_vm0 = vcmask 1043456   ;;  %p215_p3 = scmp.lt.s32.totalorder %s4450_s19, 1  ;;  %v7587_v4 = vmov 0.0  }
   0xc   : > { %5439 = vset.pattern.permute.xlu1 %v5544_v2  ;;  %5438 = vset.pattern.permute.xlu0 %v5544_v2  ;;  %v5440_v3 = vld [vmem:[%s7582_s1 + $0x20] ss:$0 sps:$4 sm:$0xff]   ;;  %v2357_v6 = vld [vmem:[%s7585_s4 + $0x18] sm:$0xff]  ;;  %v2355_v7 = vld [vmem:[%s7585_s4 + $0x8] sm:$0xff]  ;;  %vm5546_vm1 = vmmov 0   ;;  %vm857_vm2 = vcmask 588800  }
   0xd   : > { %2536 = vperm.xlu1 %5439, %v2356_v0   ;;  %2526 = vperm.xlu0 %5438, %v2354_v1   ;;  %v1115_v5 = vsel %vm1113_vm0, %v5440_v3, 0  ;;  %v5441_v8 = vld [vmem:[%s7582_s1 + $0x18] sm:$0xff]   ;;  %s7681_s19 = smov (!%p215_p3, %s4450_s19), 1  ;;  %v2359_v9 = vld [vmem:[%s7585_s4 + $0x28] sm:$0xff]  ;;  %v2358_v10 = vld [vmem:[%s7585_s4 + $0x20] sm:$0xff]  ;;  %vm4224_vm3 = vcmask 519168  }
   0xe   : > { %5066 = vmatprep.subr.bf16.mxu0 %v7587_v4  ;;  %5416 = vmatprep.subr.bf16.mxu1 %v7587_v4  ;;  %s5426_s9 = smul.u32 680, %s7681_s19  ;;  %v5442_v11 = vld [vmem:[%s7582_s1 + $0x10] sm:$0xff]   ;;  %v2361_v12 = vld [vmem:[%s7585_s4 + $0x38] sm:$0xff]  ;;  %v5443_v14 = vld [vmem:[%s7582_s1 + $0x8] sm:$0xff]  }
   0xf   : > { %5067 = vmatpush3.bf16.msra.mxu0 %v1115_v5  ;;  %5421 = vmatpush3.bf16.msra.mxu1 %v1115_v5  ;;  %v2360_v13 = vld [vmem:[%s7585_s4 + $0x30] sm:$0xff]  ;;  %v2363_v15 = vld [vmem:[%s7585_s4 + $0x48] sm:$0xff]  ;;  %v2362_v16 = vld [vmem:[%s7585_s4 + $0x40] sm:$0xff] }
  0x10   : > { %5068 = vmatprep.subr.bf16.mxu0 %v7587_v4  ;;  %5417 = vmatprep.subr.bf16.mxu1 %v7587_v4  ;;  %s5628_s16 = scalar_lea.vmem %s7581_s0, %s5426_s9  ;;  %v5444_v17 = vld [vmem:[%s7582_s1] sm:$0xff]   ;;  %v2365_v18 = vld [vmem:[%s7585_s4 + $0x58] sm:$0xff]  ;;  %v2364_v19 = vld [vmem:[%s7585_s4 + $0x50] sm:$0xff]  ;;  %s6285_s6 = scalar_lea.vmem %s7586_s5, %s5426_s9 }
  0x11   : > { %2541 = vperm.xlu1 %5439, %v2357_v6   ;;  %2531 = vperm.xlu0 %5438, %v2355_v7   ;;  %v5445_v20 = vld [vmem:[%s5628_s16] sm:$0xff]   ;;  %v5446_v21 = vld [vmem:[%s5628_s16 + $0x158] sm:$0xff]   ;;  %v2367_v22 = vld [vmem:[%s7585_s4 + $0x68] sm:$0xff] }
  0x12   : > { %5076 = vmatprep.mubr.msk.bf16.mxu0 %vm5546_vm1, %v7587_v4  ;;  %5248 = vmatprep.mubr.msk.bf16.mxu1 %vm5546_vm1, %v7587_v4  ;;  %v2366_v23 = vld [vmem:[%s7585_s4 + $0x60] sm:$0xff]  ;;  %v2369_v24 = vld [vmem:[%s7585_s4 + $0x78] sm:$0xff]  ;;  %v2368_v25 = vld [vmem:[%s7585_s4 + $0x70] sm:$0xff] }
  0x13   : > { %5069 = vmatpush3.bf16.msra.mxu0 %v5441_v8  ;;  %5422 = vmatpush3.bf16.msra.mxu1 %v5441_v8  ;;  %v5447_v26 = vld [vmem:[%s5628_s16 + $0x8] sm:$0xff]   ;;  %v5448_v27 = vld [vmem:[%s5628_s16 + $0x160] sm:$0xff]   ;;  %v2373_v30 = vld [vmem:[%s7585_s4 + $0x98] sm:$0xff] }
  0x14   : > { %5070 = vmatprep.subr.bf16.mxu0 %v7587_v4  ;;  %5418 = vmatprep.subr.bf16.mxu1 %v7587_v4  ;;  %v2371_v28 = vld [vmem:[%s7585_s4 + $0x88] sm:$0xff]  ;;  %v2370_v29 = vld [vmem:[%s7585_s4 + $0x80] sm:$0xff]  ;;  %v2372_v31 = vld [vmem:[%s7585_s4 + $0x90] sm:$0xff] }
  0x15   : > { %2551 = vperm.xlu1 %5439, %v2359_v9   ;;  %2546 = vperm.xlu0 %5438, %v2358_v10   ;;  %v5449_v32 = vld [vmem:[%s5628_s16 + $0x10] sm:$0xff]   ;;  %v5450_v33 = vld [vmem:[%s5628_s16 + $0x168] sm:$0xff]   ;;  %v2374_v35 = vld [vmem:[%s7585_s4 + $0xa0] sm:$0xff] }
  0x16   : > { %v2375_v34 = vld [vmem:[%s7585_s4 + $0xa8] sm:$0xff]  ;;  %v2377_v36 = vld [vmem:[%s7585_s4 + $0xb8] sm:$0xff]  ;;  %v2376_v37 = vld [vmem:[%s7585_s4 + $0xb0] sm:$0xff] }
  0x17   : > { %5071 = vmatpush3.bf16.msra.mxu0 %v5442_v11  ;;  %5423 = vmatpush3.bf16.msra.mxu1 %v5442_v11  ;;  %v5451_v38 = vld [vmem:[%s5628_s16 + $0x18] sm:$0xff]   ;;  %v5452_v39 = vld [vmem:[%s5628_s16 + $0x170] sm:$0xff]   ;;  %v2379_v40 = vld [vmem:[%s7585_s4 + $0xc8] sm:$0xff] }
  0x18   : > { %5072 = vmatprep.subr.bf16.mxu0 %v7587_v4  ;;  %5419 = vmatprep.subr.bf16.mxu1 %v7587_v4  ;;  %v2378_v41 = vld [vmem:[%s7585_s4 + $0xc0] sm:$0xff]  ;;  %v2381_v42 = vld [vmem:[%s7585_s4 + $0xd8] sm:$0xff]  ;;  %v2380_v43 = vld [vmem:[%s7585_s4 + $0xd0] sm:$0xff] }
  0x19   : > { %2561 = vperm.xlu1 %5439, %v2361_v12   ;;  %2556 = vperm.xlu0 %5438, %v2360_v13   ;;  %v5453_v44 = vld [vmem:[%s5628_s16 + $0x20] sm:$0xff]   ;;  %v5454_v45 = vld [vmem:[%s5628_s16 + $0x178] sm:$0xff]   ;;  %v2383_v46 = vld [vmem:[%s7585_s4 + $0xe8] sm:$0xff] }
  0x1a   : > { %v2382_v47 = vld [vmem:[%s7585_s4 + $0xe0] sm:$0xff]  ;;  %v2385_v48 = vld [vmem:[%s7585_s4 + $0xf8] sm:$0xff]  ;;  %v2384_v49 = vld [vmem:[%s7585_s4 + $0xf0] sm:$0xff] }
  0x1b   : > { %5073 = vmatpush3.bf16.msra.mxu0 %v5443_v14  ;;  %5424 = vmatpush3.bf16.msra.mxu1 %v5443_v14  ;;  %v5455_v50 = vld [vmem:[%s5628_s16 + $0x28] sm:$0xff]   ;;  %v5456_v51 = vld [vmem:[%s5628_s16 + $0x180] sm:$0xff]   ;;  %v2389_v54 = vld [vmem:[%s7585_s4 + $0x118] sm:$0xff] }
  0x1c   : > { %5074 = vmatprep.subr.bf16.mxu0 %v7587_v4  ;;  %5420 = vmatprep.subr.bf16.mxu1 %v7587_v4  ;;  %v2387_v52 = vld [vmem:[%s7585_s4 + $0x108] sm:$0xff]  ;;  %v2386_v53 = vld [vmem:[%s7585_s4 + $0x100] sm:$0xff]  ;;  %v2388_v55 = vld [vmem:[%s7585_s4 + $0x110] sm:$0xff] }
  0x1d   : > { %2571 = vperm.xlu1 %5439, %v2363_v15   ;;  %2566 = vperm.xlu0 %5438, %v2362_v16   ;;  %v5457_v56 = vld [vmem:[%s5628_s16 + $0x30] sm:$0xff]   ;;  %v5458_v57 = vld [vmem:[%s5628_s16 + $0x188] sm:$0xff]   ;;  %v2390_v59 = vld [vmem:[%s7585_s4 + $0x120] sm:$0xff] }
  0x1e   : > { %v2391_v58 = vld [vmem:[%s7585_s4 + $0x128] sm:$0xff]  ;;  %v2393_v60 = vld [vmem:[%s7585_s4 + $0x138] sm:$0xff]  ;;  %v2392_v61 = vld [vmem:[%s7585_s4 + $0x130] sm:$0xff] }
  0x1f   : > { %5075 = vmatpush3.bf16.msra.mxu0 %v5444_v17  ;;  %5425 = vmatpush3.bf16.msra.mxu1 %v5444_v17  ;;  %v5459_v62 = vld [vmem:[%s5628_s16 + $0x38] sm:$0xff]   ;;  %v5460_v63 = vld [vmem:[%s5628_s16 + $0x190] sm:$0xff]   ;;  %v2395_v0 = vld [vmem:[%s7585_s4 + $0x148] sm:$0xff] }
  0x20   : > { %v2394_v1 = vld [vmem:[%s7585_s4 + $0x140] sm:$0xff]  ;;  %v2397_v2 = vld [vmem:[%s7585_s4 + $0x158] sm:$0xff]  ;;  %v2396_v3 = vld [vmem:[%s7585_s4 + $0x150] sm:$0xff] }
  0x21   : > { %2581 = vperm.xlu1 %5439, %v2365_v18   ;;  %2576 = vperm.xlu0 %5438, %v2364_v19   ;;  %v5461_v5 = vld [vmem:[%s5628_s16 + $0x40] sm:$0xff]   ;;  %v5462_v6 = vld [vmem:[%s5628_s16 + $0x198] sm:$0xff]   ;;  %v2399_v7 = vld [vmem:[%s7585_s4 + $0x168] sm:$0xff] }
  0x22   : > { %5077 = vmatmul.mubr.msk.bf16.vlgmr.msra.gmra.mxu0 %vm857_vm2, %v5445_v20  ;;  %5249 = vmatmul.mubr.msk.bf16.vlgmr.msra.gmra.mxu1 %vm857_vm2, %v5446_v21  ;;  %v2398_v8 = vld [vmem:[%s7585_s4 + $0x160] sm:$0xff]  ;;  %v2401_v9 = vld [vmem:[%s7585_s4 + $0x178] sm:$0xff]  ;;  %v2400_v10 = vld [vmem:[%s7585_s4 + $0x170] sm:$0xff] }
  0x23   : > { %5080 = vmatprep.mubr.msk.bf16.mxu0 %vm5546_vm1, %v7587_v4  ;;  %5252 = vmatprep.mubr.msk.bf16.mxu1 %vm5546_vm1, %v7587_v4  ;;  %v5463_v11 = vld [vmem:[%s5628_s16 + $0x48] sm:$0xff]   ;;  %v5464_v12 = vld [vmem:[%s5628_s16 + $0x1a0] sm:$0xff]   ;;  %v2405_v15 = vld [vmem:[%s7585_s4 + $0x198] sm:$0xff] }
  0x24   : > { %v2403_v13 = vld [vmem:[%s7585_s4 + $0x188] sm:$0xff]  ;;  %v2402_v14 = vld [vmem:[%s7585_s4 + $0x180] sm:$0xff]  ;;  %v2404_v16 = vld [vmem:[%s7585_s4 + $0x190] sm:$0xff] }
  0x25   : > { %2591 = vperm.xlu1 %5439, %v2367_v22   ;;  %2586 = vperm.xlu0 %5438, %v2366_v23   ;;  %v5465_v17 = vld [vmem:[%s5628_s16 + $0x50] sm:$0xff]   ;;  %v5466_v18 = vld [vmem:[%s5628_s16 + $0x1a8] sm:$0xff]   ;;  %v2406_v20 = vld [vmem:[%s7585_s4 + $0x1a0] sm:$0xff] }
  0x26   : > { %v2407_v19 = vld [vmem:[%s7585_s4 + $0x1a8] sm:$0xff]  ;;  %v2409_v21 = vld [vmem:[%s7585_s4 + $0x1b8] sm:$0xff]  ;;  %v2408_v22 = vld [vmem:[%s7585_s4 + $0x1b0] sm:$0xff] }
  0x27   : > { %v5467_v23 = vld [vmem:[%s5628_s16 + $0x58] sm:$0xff]  }
  0x29   : > { %2601 = vperm.xlu1 %5439, %v2369_v24   ;;  %2596 = vperm.xlu0 %5438, %v2368_v25   ;;  %v5468_v24 = vld [vmem:[%s5628_s16 + $0x1b0] sm:$0xff]   ;;  %v2411_v25 = vld [vmem:[%s7585_s4 + $0x1c8] sm:$0xff] }
  0x2a   : > { %5081 = vmatmul.mubr.msk.bf16.gmra.mxu0 %vm857_vm2, %v5447_v26  ;;  %5253 = vmatmul.mubr.msk.bf16.gmra.mxu1 %vm857_vm2, %v5448_v27  ;;  %v2410_v26 = vld [vmem:[%s7585_s4 + $0x1c0] sm:$0xff]  ;;  %v2413_v27 = vld [vmem:[%s7585_s4 + $0x1d8] sm:$0xff] }
  0x2b   : > { %5084 = vmatprep.mubr.msk.bf16.mxu0 %vm5546_vm1, %v7587_v4  ;;  %5256 = vmatprep.mubr.msk.bf16.mxu1 %vm5546_vm1, %v7587_v4 }
  0x2d   : > { %2611 = vperm.xlu1 %5439, %v2371_v28   ;;  %2606 = vperm.xlu0 %5438, %v2370_v29   ;;  %v2412_v28 = vld [vmem:[%s7585_s4 + $0x1d0] sm:$0xff]  ;;  %v5469_v29 = vld [vmem:[%s5628_s16 + $0x60] sm:$0xff]  }
  0x31   : > { %2621 = vperm.xlu1 %5439, %v2373_v30   ;;  %2616 = vperm.xlu0 %5438, %v2372_v31   ;;  %v5470_v30 = vld [vmem:[%s5628_s16 + $0x1b8] sm:$0xff]   ;;  %v2415_v31 = vld [vmem:[%s7585_s4 + $0x1e8] sm:$0xff] }
  0x32   : > { %5085 = vmatmul.mubr.msk.bf16.gmra.mxu0 %vm857_vm2, %v5449_v32  ;;  %5257 = vmatmul.mubr.msk.bf16.gmra.mxu1 %vm857_vm2, %v5450_v33  ;;  %v2414_v32 = vld [vmem:[%s7585_s4 + $0x1e0] sm:$0xff]  ;;  %v2417_v33 = vld [vmem:[%s7585_s4 + $0x1f8] sm:$0xff] }
  0x33   : > { %5088 = vmatprep.mubr.msk.bf16.mxu0 %vm5546_vm1, %v7587_v4  ;;  %5260 = vmatprep.mubr.msk.bf16.mxu1 %vm5546_vm1, %v7587_v4 }
  0x35   : > { %2631 = vperm.xlu1 %5439, %v2375_v34   ;;  %2626 = vperm.xlu0 %5438, %v2374_v35   ;;  %v2416_v34 = vld [vmem:[%s7585_s4 + $0x1f0] sm:$0xff]  ;;  %v5471_v35 = vld [vmem:[%s5628_s16 + $0x68] sm:$0xff]  }
  0x39   : > { %2641 = vperm.xlu1 %5439, %v2377_v36   ;;  %2636 = vperm.xlu0 %5438, %v2376_v37   ;;  %v5472_v36 = vld [vmem:[%s5628_s16 + $0x1c0] sm:$0xff]  }
  0x3a   : > { %5089 = vmatmul.mubr.msk.bf16.gmra.mxu0 %vm857_vm2, %v5451_v38  ;;  %5261 = vmatmul.mubr.msk.bf16.gmra.mxu1 %vm857_vm2, %v5452_v39  ;;  %v2419_v39 = vld [vmem:[%s7585_s4 + $0x208] sm:$0xff] }
  0x3b   : > { %5092 = vmatprep.mubr.msk.bf16.mxu0 %vm5546_vm1, %v7587_v4  ;;  %5264 = vmatprep.mubr.msk.bf16.mxu1 %vm5546_vm1, %v7587_v4 }
  0x3d   : > { %2651 = vperm.xlu1 %5439, %v2379_v40   ;;  %2646 = vperm.xlu0 %5438, %v2378_v41   ;;  %v2418_v40 = vld [vmem:[%s7585_s4 + $0x200] sm:$0xff] }
  0x41   : > { %2661 = vperm.xlu1 %5439, %v2381_v42   ;;  %2656 = vperm.xlu0 %5438, %v2380_v43   ;;  %v2421_v43 = vld [vmem:[%s7585_s4 + $0x218] sm:$0xff] }
  0x42   : > { %5093 = vmatmul.mubr.msk.bf16.gmra.mxu0 %vm857_vm2, %v5453_v44  ;;  %5265 = vmatmul.mubr.msk.bf16.gmra.mxu1 %vm857_vm2, %v5454_v45  ;;  %v2420_v44 = vld [vmem:[%s7585_s4 + $0x210] sm:$0xff] }
  0x43   : > { %5096 = vmatprep.mubr.msk.bf16.mxu0 %vm5546_vm1, %v7587_v4  ;;  %5268 = vmatprep.mubr.msk.bf16.mxu1 %vm5546_vm1, %v7587_v4  ;;  %v5473_v45 = vld [vmem:[%s5628_s16 + $0x70] sm:$0xff]  }
  0x45   : > { %2671 = vperm.xlu1 %5439, %v2383_v46   ;;  %2666 = vperm.xlu0 %5438, %v2382_v47   ;;  %v5474_v46 = vld [vmem:[%s5628_s16 + $0x1c8] sm:$0xff]  }
  0x49   : > { %2681 = vperm.xlu1 %5439, %v2385_v48   ;;  %2676 = vperm.xlu0 %5438, %v2384_v49   ;;  %v2423_v49 = vld [vmem:[%s7585_s4 + $0x228] sm:$0xff] }
  0x4a   : > { %5097 = vmatmul.mubr.msk.bf16.gmra.mxu0 %vm857_vm2, %v5455_v50  ;;  %5269 = vmatmul.mubr.msk.bf16.gmra.mxu1 %vm857_vm2, %v5456_v51  ;;  %v2422_v50 = vld [vmem:[%s7585_s4 + $0x220] sm:$0xff] }
  0x4b   : > { %5100 = vmatprep.mubr.msk.bf16.mxu0 %vm5546_vm1, %v7587_v4  ;;  %5272 = vmatprep.mubr.msk.bf16.mxu1 %vm5546_vm1, %v7587_v4 }
  0x4d   : > { %2691 = vperm.xlu1 %5439, %v2387_v52   ;;  %2686 = vperm.xlu0 %5438, %v2386_v53   ;;  %v2425_v53 = vld [vmem:[%s7585_s4 + $0x238] sm:$0xff] }
  0x51   : > { %2701 = vperm.xlu1 %5439, %v2389_v54   ;;  %2696 = vperm.xlu0 %5438, %v2388_v55   ;;  %v2424_v54 = vld [vmem:[%s7585_s4 + $0x230] sm:$0xff]  ;;  %v5475_v55 = vld [vmem:[%s5628_s16 + $0x78] sm:$0xff]  }
  0x52   : > { %5101 = vmatmul.mubr.msk.bf16.gmra.mxu0 %vm857_vm2, %v5457_v56  ;;  %5273 = vmatmul.mubr.msk.bf16.gmra.mxu1 %vm857_vm2, %v5458_v57  ;;  %v5476_v56 = vld [vmem:[%s5628_s16 + $0x1d0] sm:$0xff]  }
  0x53   : > { %5104 = vmatprep.mubr.msk.bf16.mxu0 %vm5546_vm1, %v7587_v4  ;;  %5276 = vmatprep.mubr.msk.bf16.mxu1 %vm5546_vm1, %v7587_v4 }
  0x55   : > { %2711 = vperm.xlu1 %5439, %v2391_v58   ;;  %2706 = vperm.xlu0 %5438, %v2390_v59   ;;  %v2427_v59 = vld [vmem:[%s7585_s4 + $0x248] sm:$0xff] }
  0x59   : > { %2721 = vperm.xlu1 %5439, %v2393_v60   ;;  %2716 = vperm.xlu0 %5438, %v2392_v61   ;;  %v2426_v60 = vld [vmem:[%s7585_s4 + $0x240] sm:$0xff] }
  0x5a   : > { %5105 = vmatmul.mubr.msk.bf16.gmra.mxu0 %vm857_vm2, %v5459_v62  ;;  %5277 = vmatmul.mubr.msk.bf16.gmra.mxu1 %vm857_vm2, %v5460_v63  ;;  %v2429_v63 = vld [vmem:[%s7585_s4 + $0x258] sm:$0xff] }
  0x5b   : > { %5108 = vmatprep.mubr.msk.bf16.mxu0 %vm5546_vm1, %v7587_v4  ;;  %5280 = vmatprep.mubr.msk.bf16.mxu1 %vm5546_vm1, %v7587_v4 }
  0x5d   : > { %2731 = vperm.xlu1 %5439, %v2395_v0   ;;  %2726 = vperm.xlu0 %5438, %v2394_v1   ;;  %v2428_v0 = vld [vmem:[%s7585_s4 + $0x250] sm:$0xff]  ;;  %v5477_v1 = vld [vmem:[%s5628_s16 + $0x80] sm:$0xff]  }
  0x61   : > { %2741 = vperm.xlu1 %5439, %v2397_v2   ;;  %2736 = vperm.xlu0 %5438, %v2396_v3   ;;  %v5478_v2 = vld [vmem:[%s5628_s16 + $0x1d8] sm:$0xff]  }
  0x62   : > { %5109 = vmatmul.mubr.msk.bf16.gmra.mxu0 %vm857_vm2, %v5461_v5  ;;  %5281 = vmatmul.mubr.msk.bf16.gmra.mxu1 %vm857_vm2, %v5462_v6  ;;  %v2431_v6 = vld [vmem:[%s7585_s4 + $0x268] sm:$0xff] }
  0x63   : > { %5112 = vmatprep.mubr.msk.bf16.mxu0 %vm5546_vm1, %v7587_v4  ;;  %5284 = vmatprep.mubr.msk.bf16.mxu1 %vm5546_vm1, %v7587_v4 }
  0x65   : > { %2751 = vperm.xlu1 %5439, %v2399_v7   ;;  %2746 = vperm.xlu0 %5438, %v2398_v8   ;;  %v2430_v7 = vld [vmem:[%s7585_s4 + $0x260] sm:$0xff] }
  0x69   : > { %2761 = vperm.xlu1 %5439, %v2401_v9   ;;  %2756 = vperm.xlu0 %5438, %v2400_v10   ;;  %v2433_v10 = vld [vmem:[%s7585_s4 + $0x278] sm:$0xff] }
  0x6a   : > { %5113 = vmatmul.mubr.msk.bf16.gmra.mxu0 %vm857_vm2, %v5463_v11  ;;  %5285 = vmatmul.mubr.msk.bf16.gmra.mxu1 %vm857_vm2, %v5464_v12  ;;  %v2432_v11 = vld [vmem:[%s7585_s4 + $0x270] sm:$0xff]  ;;  %v5479_v12 = vld [vmem:[%s5628_s16 + $0x88] sm:$0xff]  }
  0x6b   : > { %5116 = vmatprep.mubr.msk.bf16.mxu0 %vm5546_vm1, %v7587_v4  ;;  %5288 = vmatprep.mubr.msk.bf16.mxu1 %vm5546_vm1, %v7587_v4 }
  0x6d   : > { %2771 = vperm.xlu1 %5439, %v2403_v13   ;;  %2766 = vperm.xlu0 %5438, %v2402_v14   ;;  %v5480_v13 = vld [vmem:[%s5628_s16 + $0x1e0] sm:$0xff]  }
  0x71   : > { %2781 = vperm.xlu1 %5439, %v2405_v15   ;;  %2776 = vperm.xlu0 %5438, %v2404_v16   ;;  %v2435_v16 = vld [vmem:[%s7585_s4 + $0x288] sm:$0xff] }
  0x72   : > { %5117 = vmatmul.mubr.msk.bf16.gmra.mxu0 %vm857_vm2, %v5465_v17  ;;  %5289 = vmatmul.mubr.msk.bf16.gmra.mxu1 %vm857_vm2, %v5466_v18  ;;  %v2434_v17 = vld [vmem:[%s7585_s4 + $0x280] sm:$0xff] }
  0x73   : > { %5120 = vmatprep.mubr.msk.bf16.mxu0 %vm5546_vm1, %v7587_v4  ;;  %5292 = vmatprep.mubr.msk.bf16.mxu1 %vm5546_vm1, %v7587_v4 }
  0x75   : > { %2791 = vperm.xlu1 %5439, %v2407_v19   ;;  %2786 = vperm.xlu0 %5438, %v2406_v20   ;;  %v2437_v20 = vld [vmem:[%s7585_s4 + $0x298] sm:$0xff] }
  0x79   : > { %2801 = vperm.xlu1 %5439, %v2409_v21   ;;  %2796 = vperm.xlu0 %5438, %v2408_v22   ;;  %v2436_v21 = vld [vmem:[%s7585_s4 + $0x290] sm:$0xff] }
  0x7a   : > { %5121 = vmatmul.mubr.msk.bf16.gmra.mxu0 %vm857_vm2, %v5467_v23  ;;  %5293 = vmatmul.mubr.msk.bf16.gmra.mxu1 %vm857_vm2, %v5468_v24  ;;  %v5481_v22 = vld [vmem:[%s5628_s16 + $0x90] sm:$0xff]   ;;  %v5482_v23 = vld [vmem:[%s5628_s16 + $0x1e8] sm:$0xff]  }
  0x7b   : > { %5124 = vmatprep.mubr.msk.bf16.mxu0 %vm5546_vm1, %v7587_v4  ;;  %5296 = vmatprep.mubr.msk.bf16.mxu1 %vm5546_vm1, %v7587_v4 }
  0x7d   : > { %2811 = vperm.xlu1 %5439, %v2411_v25   ;;  %2806 = vperm.xlu0 %5438, %v2410_v26   ;;  %v2439_v26 = vld [vmem:[%s7585_s4 + $0x2a8] sm:$0xff] }
  0x81   : > { %2821 = vperm.xlu1 %5439, %v2413_v27   ;;  %2816 = vperm.xlu0 %5438, %v2412_v28   ;;  %v2438_v27 = vld [vmem:[%s7585_s4 + $0x2a0] sm:$0xff] }
  0x82   : > { %5125 = vmatmul.mubr.msk.bf16.gmra.mxu0 %vm857_vm2, %v5469_v29  ;;  %5297 = vmatmul.mubr.msk.bf16.gmra.mxu1 %vm857_vm2, %v5470_v30  ;;  %v2441_v30 = vld [vmem:[%s7585_s4 + $0x2b8] sm:$0xff] }
  0x83   : > { %5128 = vmatprep.mubr.msk.bf16.mxu0 %vm5546_vm1, %v7587_v4  ;;  %5300 = vmatprep.mubr.msk.bf16.mxu1 %vm5546_vm1, %v7587_v4 }
  0x85   : > { %2831 = vperm.xlu1 %5439, %v2415_v31   ;;  %2826 = vperm.xlu0 %5438, %v2414_v32   ;;  %v2440_v31 = vld [vmem:[%s7585_s4 + $0x2b0] sm:$0xff]  ;;  %v5483_v32 = vld [vmem:[%s5628_s16 + $0x98] sm:$0xff]  }
  0x88   : > { %v5922_v37 = vpop.permute.xlu1 %2536  ;;  %v5924_v38 = vpop.permute.xlu0 %2526 }
  0x89   : > { %2841 = vperm.xlu1 %5439, %v2417_v33   ;;  %2836 = vperm.xlu0 %5438, %v2416_v34   ;;  %v5484_v33 = vld [vmem:[%s5628_s16 + $0x1f0] sm:$0xff]  }
  0x8a   : > { %5129 = vmatmul.mubr.msk.bf16.gmra.mxu0 %vm857_vm2, %v5471_v35  ;;  %5301 = vmatmul.mubr.msk.bf16.gmra.mxu1 %vm857_vm2, %v5472_v36  ;;  %v2443_v36 = vld [vmem:[%s7585_s4 + $0x2c8] sm:$0xff] }
  0x8b   : > { %5132 = vmatprep.mubr.msk.bf16.mxu0 %vm5546_vm1, %v7587_v4  ;;  %5304 = vmatprep.mubr.msk.bf16.mxu1 %vm5546_vm1, %v7587_v4 }
  0x8c   : > { %v5938_v41 = vpop.permute.xlu1 %2541  ;;  %v5940_v42 = vpop.permute.xlu0 %2531 }
  0x8d   : > { %2851 = vperm.xlu1 %5439, %v2419_v39   ;;  %2846 = vperm.xlu0 %5438, %v2418_v40   ;;  %v2442_v39 = vld [vmem:[%s7585_s4 + $0x2c0] sm:$0xff] }
  0x90   : > { %v5950_v47 = vpop.permute.xlu1 %2551  ;;  %v5952_v48 = vpop.permute.xlu0 %2546 }
  0x91   : > { %2861 = vperm.xlu1 %5439, %v2421_v43   ;;  %2856 = vperm.xlu0 %5438, %v2420_v44   ;;  %v2445_v44 = vld [vmem:[%s7585_s4 + $0x2d8] sm:$0xff] }
  0x92   : > { %5133 = vmatmul.mubr.msk.bf16.gmra.mxu0 %vm857_vm2, %v5473_v45  ;;  %5305 = vmatmul.mubr.msk.bf16.gmra.mxu1 %vm857_vm2, %v5474_v46  ;;  %v2444_v45 = vld [vmem:[%s7585_s4 + $0x2d0] sm:$0xff]  ;;  %v5485_v46 = vld [vmem:[%s5628_s16 + $0xa0] sm:$0xff]  }
  0x93   : > { %5136 = vmatprep.mubr.msk.bf16.mxu0 %vm5546_vm1, %v7587_v4  ;;  %5308 = vmatprep.mubr.msk.bf16.mxu1 %vm5546_vm1, %v7587_v4 }
  0x94   : > { %v5966_v51 = vpop.permute.xlu1 %2561  ;;  %v5968_v52 = vpop.permute.xlu0 %2556 }
  0x95   : > { %2871 = vperm.xlu1 %5439, %v2423_v49   ;;  %2866 = vperm.xlu0 %5438, %v2422_v50   ;;  %v5486_v49 = vld [vmem:[%s5628_s16 + $0x1f8] sm:$0xff]  }
  0x98   : > { %v5978_v57 = vpop.permute.xlu1 %2571  ;;  %v5980_v58 = vpop.permute.xlu0 %2566 }
  0x99   : > { %2881 = vperm.xlu1 %5439, %v2425_v53   ;;  %2876 = vperm.xlu0 %5438, %v2424_v54   ;;  %v2447_v54 = vld [vmem:[%s7585_s4 + $0x2e8] sm:$0xff] }
  0x9a   : > { %5137 = vmatmul.mubr.msk.bf16.gmra.mxu0 %vm857_vm2, %v5475_v55  ;;  %5309 = vmatmul.mubr.msk.bf16.gmra.mxu1 %vm857_vm2, %v5476_v56  ;;  %v2446_v55 = vld [vmem:[%s7585_s4 + $0x2e0] sm:$0xff] }
  0x9b   : > { %5140 = vmatprep.mubr.msk.bf16.mxu0 %vm5546_vm1, %v7587_v4  ;;  %5312 = vmatprep.mubr.msk.bf16.mxu1 %vm5546_vm1, %v7587_v4 }
  0x9c   : > { %v5994_v61 = vpop.permute.xlu1 %2581  ;;  %v5996_v62 = vpop.permute.xlu0 %2576 }
  0x9d   : > { %2891 = vperm.xlu1 %5439, %v2427_v59   ;;  %2886 = vperm.xlu0 %5438, %v2426_v60   ;;  %v2449_v60 = vld [vmem:[%s7585_s4 + $0x2f8] sm:$0xff] }
  0xa0   : > { %v6006_v3 = vpop.permute.xlu1 %2591  ;;  %v6008_v5 = vpop.permute.xlu0 %2586 }
  0xa1   : > { %2901 = vperm.xlu1 %5439, %v2429_v63   ;;  %2896 = vperm.xlu0 %5438, %v2428_v0   ;;  %v2448_v63 = vld [vmem:[%s7585_s4 + $0x2f0] sm:$0xff]  ;;  %v5487_v0 = vld [vmem:[%s5628_s16 + $0xa8] sm:$0xff]  }
  0xa2   : > { %5141 = vmatmul.mubr.msk.bf16.gmra.mxu0 %vm857_vm2, %v5477_v1  ;;  %5313 = vmatmul.mubr.msk.bf16.gmra.mxu1 %vm857_vm2, %v5478_v2  ;;  %v5488_v1 = vld [vmem:[%s5628_s16 + $0x200] sm:$0xff]  }
  0xa3   : > { %5144 = vmatprep.mubr.msk.bf16.mxu0 %vm5546_vm1, %v7587_v4  ;;  %5316 = vmatprep.mubr.msk.bf16.mxu1 %vm5546_vm1, %v7587_v4 }
  0xa4   : > { %v6022_v8 = vpop.permute.xlu1 %2601  ;;  %v6024_v9 = vpop.permute.xlu0 %2596 }
  0xa5   : > { %2911 = vperm.xlu1 %5439, %v2431_v6   ;;  %2906 = vperm.xlu0 %5438, %v2430_v7   ;;  %v2451_v7 = vld [vmem:[%s7585_s4 + $0x308] sm:$0xff] }
  0xa8   : > { %v6034_v14 = vpop.permute.xlu1 %2611  ;;  %v6036_v15 = vpop.permute.xlu0 %2606 }
  0xa9   : > { %2921 = vperm.xlu1 %5439, %v2433_v10   ;;  %2916 = vperm.xlu0 %5438, %v2432_v11   ;;  %v2450_v10 = vld [vmem:[%s7585_s4 + $0x300] sm:$0xff] }
  0xaa   : > { %5145 = vmatmul.mubr.msk.bf16.gmra.mxu0 %vm857_vm2, %v5479_v12  ;;  %5317 = vmatmul.mubr.msk.bf16.gmra.mxu1 %vm857_vm2, %v5480_v13  ;;  %v2453_v13 = vld [vmem:[%s7585_s4 + $0x318] sm:$0xff] }
  0xab   : > { %5148 = vmatprep.mubr.msk.bf16.mxu0 %vm5546_vm1, %v7587_v4  ;;  %5320 = vmatprep.mubr.msk.bf16.mxu1 %vm5546_vm1, %v7587_v4 }
  0xac   : > { %v6050_v18 = vpop.permute.xlu1 %2621  ;;  %v6052_v19 = vpop.permute.xlu0 %2616 }
  0xad   : > { %2931 = vperm.xlu1 %5439, %v2435_v16   ;;  %2926 = vperm.xlu0 %5438, %v2434_v17   ;;  %v2452_v16 = vld [vmem:[%s7585_s4 + $0x310] sm:$0xff] }
  0xae   : > { %v5489_v17 = vld [vmem:[%s5628_s16 + $0xb0] sm:$0xff]  }
  0xb0   : > { %v6062_v24 = vpop.permute.xlu1 %2631  ;;  %v6064_v25 = vpop.permute.xlu0 %2626 }
  0xb1   : > { %2941 = vperm.xlu1 %5439, %v2437_v20   ;;  %2936 = vperm.xlu0 %5438, %v2436_v21   ;;  %v5490_v20 = vld [vmem:[%s5628_s16 + $0x208] sm:$0xff]  }
  0xb2   : > { %5149 = vmatmul.mubr.msk.bf16.gmra.mxu0 %vm857_vm2, %v5481_v22  ;;  %5321 = vmatmul.mubr.msk.bf16.gmra.mxu1 %vm857_vm2, %v5482_v23  ;;  %v2455_v23 = vld [vmem:[%s7585_s4 + $0x328] sm:$0xff] }
  0xb3   : > { %5152 = vmatprep.mubr.msk.bf16.mxu0 %vm5546_vm1, %v7587_v4  ;;  %5324 = vmatprep.mubr.msk.bf16.mxu1 %vm5546_vm1, %v7587_v4 }
  0xb4   : > { %v6078_v28 = vpop.permute.xlu1 %2641  ;;  %v6080_v29 = vpop.permute.xlu0 %2636 }
  0xb5   : > { %2951 = vperm.xlu1 %5439, %v2439_v26   ;;  %2946 = vperm.xlu0 %5438, %v2438_v27   ;;  %v2454_v26 = vld [vmem:[%s7585_s4 + $0x320] sm:$0xff] }
  0xb8   : > { %v6090_v34 = vpop.permute.xlu1 %2651  ;;  %v6092_v35 = vpop.permute.xlu0 %2646 }
  0xb9   : > { %2961 = vperm.xlu1 %5439, %v2441_v30   ;;  %2956 = vperm.xlu0 %5438, %v2440_v31   ;;  %v2457_v31 = vld [vmem:[%s7585_s4 + $0x338] sm:$0xff] }
  0xba   : > { %5153 = vmatmul.mubr.msk.bf16.gmra.mxu0 %vm857_vm2, %v5483_v32  ;;  %5325 = vmatmul.mubr.msk.bf16.gmra.mxu1 %vm857_vm2, %v5484_v33  ;;  %v2456_v32 = vld [vmem:[%s7585_s4 + $0x330] sm:$0xff]  ;;  %v5491_v33 = vld [vmem:[%s5628_s16 + $0xb8] sm:$0xff]  }
  0xbb   : > { %5156 = vmatprep.mubr.msk.bf16.mxu0 %vm5546_vm1, %v7587_v4  ;;  %5328 = vmatprep.mubr.msk.bf16.mxu1 %vm5546_vm1, %v7587_v4 }
  0xbc   : > { %v6106_v40 = vpop.permute.xlu1 %2661  ;;  %v6108_v43 = vpop.permute.xlu0 %2656 }
  0xbd   : > { %2971 = vperm.xlu1 %5439, %v2443_v36   ;;  %2966 = vperm.xlu0 %5438, %v2442_v39   ;;  %v5492_v36 = vld [vmem:[%s5628_s16 + $0x210] sm:$0xff]  }
  0xc0   : > { %v6118_v50 = vpop.permute.xlu1 %2671  ;;  %v6120_v53 = vpop.permute.xlu0 %2666 }
  0xc1   : > { %2981 = vperm.xlu1 %5439, %v2445_v44   ;;  %2976 = vperm.xlu0 %5438, %v2444_v45   ;;  %v2459_v45 = vld [vmem:[%s7585_s4 + $0x348] sm:$0xff] }
  0xc2   : > { %5157 = vmatmul.mubr.msk.bf16.gmra.mxu0 %vm857_vm2, %v5485_v46  ;;  %5329 = vmatmul.mubr.msk.bf16.gmra.mxu1 %vm857_vm2, %v5486_v49  ;;  %v2458_v46 = vld [vmem:[%s7585_s4 + $0x340] sm:$0xff] }
  0xc3   : > { %5160 = vmatprep.mubr.msk.bf16.mxu0 %vm5546_vm1, %v7587_v4  ;;  %5332 = vmatprep.mubr.msk.bf16.mxu1 %vm5546_vm1, %v7587_v4 }
  0xc4   : > { %v6134_v56 = vpop.permute.xlu1 %2681  ;;  %v6136_v59 = vpop.permute.xlu0 %2676 }
  0xc5   : > { %2991 = vperm.xlu1 %5439, %v2447_v54   ;;  %2986 = vperm.xlu0 %5438, %v2446_v55   ;;  %v2461_v55 = vld [vmem:[%s7585_s4 + $0x358] sm:$0xff] }
  0xc8   : > { %v6146_v2 = vpop.permute.xlu1 %2691  ;;  %v6148_v6 = vpop.permute.xlu0 %2686 }
  0xc9   : > { %3001 = vperm.xlu1 %5439, %v2449_v60   ;;  %2996 = vperm.xlu0 %5438, %v2448_v63   ;;  %v2460_v60 = vld [vmem:[%s7585_s4 + $0x350] sm:$0xff]  ;;  %v5493_v63 = vld [vmem:[%s5628_s16 + $0xc0] sm:$0xff]  }
  0xca   : > { %5161 = vmatmul.mubr.msk.bf16.gmra.mxu0 %vm857_vm2, %v5487_v0  ;;  %5333 = vmatmul.mubr.msk.bf16.gmra.mxu1 %vm857_vm2, %v5488_v1  ;;  %v5494_v0 = vld [vmem:[%s5628_s16 + $0x218] sm:$0xff]  }
  0xcb   : > { %5164 = vmatprep.mubr.msk.bf16.mxu0 %vm5546_vm1, %v7587_v4  ;;  %5336 = vmatprep.mubr.msk.bf16.mxu1 %vm5546_vm1, %v7587_v4 }
  0xcc   : > { %v6162_v11 = vpop.permute.xlu1 %2701  ;;  %v6164_v12 = vpop.permute.xlu0 %2696 }
  0xcd   : > { %3011 = vperm.xlu1 %5439, %v2451_v7   ;;  %3006 = vperm.xlu0 %5438, %v2450_v10   ;;  %v6237_v10 = vld [vmem:[%s7583_s2] ss:$0 sm:$0xff] }
  0xd0   : > { %v6174_v21 = vpop.permute.xlu1 %2711  ;;  %v6176_v22 = vpop.permute.xlu0 %2706 }
  0xd1   : > { %3021 = vperm.xlu1 %5439, %v2453_v13   ;;  %3016 = vperm.xlu0 %5438, %v2452_v16   ;;  %v6242_v16 = vld [vmem:[%s7584_s3] ss:$0 sm:$0xff] }
  0xd2   : > { %5165 = vmatmul.mubr.msk.bf16.gmra.mxu0 %vm857_vm2, %v5489_v17  ;;  %5337 = vmatmul.mubr.msk.bf16.gmra.mxu1 %vm857_vm2, %v5490_v20  ;;  %v2463_v20 = vld [vmem:[%s7585_s4 + $0x368] sm:$0xff] }
  0xd3   : > { %5168 = vmatprep.mubr.msk.bf16.mxu0 %vm5546_vm1, %v7587_v4  ;;  %5340 = vmatprep.mubr.msk.bf16.mxu1 %vm5546_vm1, %v7587_v4 }
  0xd4   : > { %v6190_v27 = vpop.permute.xlu1 %2721  ;;  %v6192_v30 = vpop.permute.xlu0 %2716 }
  0xd5   : > { %3031 = vperm.xlu1 %5439, %v2455_v23   ;;  %3026 = vperm.xlu0 %5438, %v2454_v26   ;;  %v2462_v23 = vld [vmem:[%s7585_s4 + $0x360] sm:$0xff] }
  0xd8   : > { %v6202_v39 = vpop.permute.xlu1 %2731  ;;  %v6204_v44 = vpop.permute.xlu0 %2726 }
  0xd9   : > { %7589 = vst [vmem:[#allocation2_spill] sm:$0xff] %v6202_v39  ;;  %3041 = vperm.xlu1 %5439, %v2457_v31   ;;  %3036 = vperm.xlu0 %5438, %v2456_v32  }
  0xda   : > { %5169 = vmatmul.mubr.msk.bf16.gmra.mxu0 %vm857_vm2, %v5491_v33  ;;  %5341 = vmatmul.mubr.msk.bf16.gmra.mxu1 %vm857_vm2, %v5492_v36 }
  0xdb   : > { %5172 = vmatprep.mubr.msk.bf16.mxu0 %vm5546_vm1, %v7587_v4  ;;  %5344 = vmatprep.mubr.msk.bf16.mxu1 %vm5546_vm1, %v7587_v4 }
  0xdc   : > { %v6218_v49 = vpop.permute.xlu1 %2741  ;;  %v6220_v54 = vpop.permute.xlu0 %2736 }
  0xdd   : > { %7590 = vst [vmem:[#allocation3_spill] sm:$0xff] %v6218_v49  ;;  %7591 = vst [vmem:[#allocation4_spill] sm:$0xff] %v6220_v54  ;;  %3051 = vperm.xlu1 %5439, %v2459_v45   ;;  %3046 = vperm.xlu0 %5438, %v2458_v46   ;;  %v5495_v46 = vld [vmem:[%s5628_s16 + $0xc8] sm:$0xff]  }
  0xe0   : > { %v6230_v1 = vpop.permute.xlu1 %2751  ;;  %v6232_v7 = vpop.permute.xlu0 %2746 }
  0xe1   : > { %7592 = vst [vmem:[#allocation5_spill] sm:$0xff] %v6230_v1  ;;  %7593 = vst [vmem:[#allocation6_spill] sm:$0xff] %v6232_v7  ;;  %3061 = vperm.xlu1 %5439, %v2461_v55   ;;  %3056 = vperm.xlu0 %5438, %v2460_v60   ;;  %v2465_v55 = vld [vmem:[%s7585_s4 + $0x378] sm:$0xff]  ;;  %v2464_v60 = vld [vmem:[%s7585_s4 + $0x370] sm:$0xff] }
  0xe2   : > { %v1151_v13 = vpop.f32.mrf.mxu0  ;;  %5173 = vmatmul.mubr.msk.bf16.gmra.mxu0 %vm857_vm2, %v5493_v63  ;;  %v6245_v17 = vpop.f32.mrf.mxu1  ;;  %5345 = vmatmul.mubr.msk.bf16.gmra.mxu1 %vm857_vm2, %v5494_v0  ;;  %v5496_v63 = vld [vmem:[%s5628_s16 + $0x220] sm:$0xff]  }
  0xe3   : > { %v1837_v26 = vmul.f32 %v6237_v10, %v1151_v13  ;;  %5176 = vmatprep.mubr.msk.bf16.mxu0 %vm5546_vm1, %v7587_v4  ;;  %5348 = vmatprep.mubr.msk.bf16.mxu1 %vm5546_vm1, %v7587_v4 }
  0xe4   : > { %v6259_v31 = vpop.permute.xlu1 %2761  ;;  %v6261_v32 = vpop.permute.xlu0 %2756 }
  0xe5   : > { %7594 = vst [vmem:[#allocation7_spill] sm:$0xff] %v6259_v31  ;;  %7595 = vst [vmem:[#allocation8_spill] sm:$0xff] %v6261_v32  ;;  %v2014_v33 = vadd.f32 %v6242_v16, %v1837_v26  ;;  %v5078_v36 = vpop.f32.mrf.mxu0  ;;  %v5250_v45 = vpop.f32.mrf.mxu1  ;;  %3071 = vperm.xlu1 %5439, %v2463_v20   ;;  %3066 = vperm.xlu0 %5438, %v2462_v23  }
  0xe7   : > { %v2184_v0 = vmax.f32 %v2014_v33, 0.0  ;;  %v1154_v13 = vpop.f32.mrf.mxu0  ;;  %v6272_v4 = vpop.f32.mrf.mxu1 }
  0xe8   : > { %v1838_v26 = vmul.f32 %v6237_v10, %v1154_v13  ;;  %v6275_v36 = vpop.permute.xlu1 %2771  ;;  %v6277_v20 = vpop.permute.xlu0 %2766  ;;  %v7598_v13 = vmov 0.0  }
  0xe9   : > { %7596 = vst [vmem:[#allocation9_spill] sm:$0xff] %v6275_v36  ;;  %7597 = vst [vmem:[#allocation10_spill] sm:$0xff] %v6277_v20  ;;  %v3374_v23 = vmul.f32 %v5924_v38, %v2184_v0  ;;  %v5079_v45 = vpop.f32.mrf.mxu0  ;;  %v5251_v31 = vpop.f32.mrf.mxu1  ;;  %3081 = vperm.xlu1 %5439, %v2465_v55   ;;  %3076 = vperm.xlu0 %5438, %v2464_v60   ;;  %v2467_v38 = vld [vmem:[%s7585_s4 + $0x388] sm:$0xff]  ;;  %v5497_v20 = vld [vmem:[%s5628_s16 + $0xd0] sm:$0xff]  }
  0xea   : > { %v2015_v33 = vadd.f32 %v6242_v16, %v1838_v26  ;;  %5177 = vmatmul.mubr.msk.bf16.gmra.mxu0 %vm857_vm2, %v5495_v46  ;;  %5349 = vmatmul.mubr.msk.bf16.gmra.mxu1 %vm857_vm2, %v5496_v63  ;;  %v2466_v31 = vld [vmem:[%s7585_s4 + $0x380] sm:$0xff] }
  0xeb   : > { %v4806_v55 = vpack.c.bf16 %v3374_v23, %v3374_v23  ;;  %v1159_v60 = vpop.f32.mrf.mxu0  ;;  %v6296_v0 = vpop.f32.mrf.mxu1  ;;  %5180 = vmatprep.mubr.msk.bf16.mxu0 %vm5546_vm1, %v7598_v13  ;;  %5352 = vmatprep.mubr.msk.bf16.mxu1 %vm5546_vm1, %v7598_v13 }
  0xec   : > { %v2185_v46 = vmax.f32 %v2015_v33, 0.0  ;;  %v1839_v63 = vmul.f32 %v6237_v10, %v1159_v60  ;;  %v6303_v26 = vpop.permute.xlu1 %2781  ;;  %v6305_v45 = vpop.permute.xlu0 %2776  ;;  %v2469_v33 = vld [vmem:[%s7585_s4 + $0x398] sm:$0xff]  ;;  %v2468_v60 = vld [vmem:[%s7585_s4 + $0x390] sm:$0xff] }
  0xed   : > { %7599 = vst [vmem:[#allocation11_spill] sm:$0xff] %v6303_v26  ;;  %7600 = vst [vmem:[#allocation12_spill] sm:$0xff] %v6305_v45  ;;  %v5082_v23 = vpop.f32.mrf.mxu0  ;;  %v5254_v36 = vpop.f32.mrf.mxu1  ;;  %3091 = vperm.xlu1 %5439, %v2467_v38   ;;  %3086 = vperm.xlu0 %5438, %v2466_v31   ;;  %v5498_v26 = vld [vmem:[%s5628_s16 + $0x228] sm:$0xff]  }
  0xee   : > { %4225 = vst.msk [vmem:[%s6285_s6] sm:$0xf] %vm4224_vm3, %v4806_v55  ;;  %v3375_v32 = vmul.f32 %v5940_v42, %v2185_v46  ;;  %v2016_v1 = vadd.f32 %v6242_v16, %v1839_v63 }
  0xef   : > { %v1162_v55 = vpop.f32.mrf.mxu0  ;;  %v6319_v23 = vpop.f32.mrf.mxu1 }
  0xf0   : > { %v4807_v36 = vpack.c.bf16 %v3375_v32, %v3375_v32  ;;  %v2186_v38 = vmax.f32 %v2016_v1, 0.0  ;;  %v1840_v31 = vmul.f32 %v6237_v10, %v1162_v55  ;;  %v6322_v42 = vpop.permute.xlu1 %2791  ;;  %v6324_v46 = vpop.permute.xlu0 %2786  ;;  %v2471_v1 = vld [vmem:[%s7585_s4 + $0x3a8] sm:$0xff]  ;;  %v2470_v32 = vld [vmem:[%s7585_s4 + $0x3a0] sm:$0xff] }
  0xf1   : > { %7601 = vst [vmem:[#allocation13_spill] sm:$0xff] %v6322_v42  ;;  %7602 = vst [vmem:[#allocation14_spill] sm:$0xff] %v6324_v46  ;;  %v5083_v63 = vpop.f32.mrf.mxu0  ;;  %v5255_v45 = vpop.f32.mrf.mxu1  ;;  %3101 = vperm.xlu1 %5439, %v2469_v33   ;;  %3096 = vperm.xlu0 %5438, %v2468_v60  }
  0xf2   : > { %4226 = vst.msk [vmem:[%s6285_s6 + $0x4] sm:$0xf] %vm4224_vm3, %v4807_v36  ;;  %v3376_v7 = vmul.f32 %v5922_v37, %v2186_v38  ;;  %v2017_v49 = vadd.f32 %v6242_v16, %v1840_v31  ;;  %5181 = vmatmul.mubr.msk.bf16.gmra.mxu0 %vm857_vm2, %v5497_v20  ;;  %5353 = vmatmul.mubr.msk.bf16.gmra.mxu1 %vm857_vm2, %v5498_v26  ;;  %v5499_v31 = vld [vmem:[%s5628_s16 + $0xd8] sm:$0xff]  }
  0xf3   : > { %v1167_v45 = vpop.f32.mrf.mxu0  ;;  %v6338_v33 = vpop.f32.mrf.mxu1  ;;  %5184 = vmatprep.mubr.msk.bf16.mxu0 %vm5546_vm1, %v7598_v13  ;;  %5356 = vmatprep.mubr.msk.bf16.mxu1 %vm5546_vm1, %v7598_v13 }
  0xf4   : > { %v4808_v37 = vpack.c.bf16 %v3376_v7, %v3376_v7  ;;  %v2187_v20 = vmax.f32 %v2017_v49, 0.0  ;;  %v1841_v26 = vmul.f32 %v6237_v10, %v1167_v45  ;;  %v6345_v60 = vpop.permute.xlu1 %2801  ;;  %v6347_v55 = vpop.permute.xlu0 %2796  ;;  %v2473_v49 = vld [vmem:[%s7585_s4 + $0x3b8] sm:$0xff]  ;;  %v2472_v7 = vld [vmem:[%s7585_s4 + $0x3b0] sm:$0xff] }
  0xf5   : > { %7603 = vst [vmem:[#allocation15_spill] sm:$0xff] %v6345_v60  ;;  %7604 = vst [vmem:[#allocation16_spill] sm:$0xff] %v6347_v55  ;;  %v5086_v36 = vpop.f32.mrf.mxu0  ;;  %v5258_v38 = vpop.f32.mrf.mxu1  ;;  %3111 = vperm.xlu1 %5439, %v2471_v1   ;;  %3106 = vperm.xlu0 %5438, %v2470_v32   ;;  %v5500_v45 = vld [vmem:[%s5628_s16 + $0x230] sm:$0xff]  }
  0xf6   : > { %4227 = vst.msk [vmem:[%s6285_s6 + $0x8] sm:$0xf] %vm4224_vm3, %v4808_v37  ;;  %v3377_v63 = vmul.f32 %v5938_v41, %v2187_v20  ;;  %v2018_v42 = vadd.f32 %v6242_v16, %v1841_v26 }
  0xf7   : > { %v1170_v36 = vpop.f32.mrf.mxu0  ;;  %v6361_v1 = vpop.f32.mrf.mxu1 }
  0xf8   : > { %v4809_v32 = vpack.c.bf16 %v3377_v63, %v3377_v63  ;;  %v2188_v38 = vmax.f32 %v2018_v42, 0.0  ;;  %v1842_v37 = vmul.f32 %v6237_v10, %v1170_v36  ;;  %v6364_v41 = vpop.permute.xlu1 %2811  ;;  %v6366_v20 = vpop.permute.xlu0 %2806  ;;  %v2475_v42 = vld [vmem:[%s7585_s4 + $0x3c8] sm:$0xff] }
  0xf9   : > { %7605 = vst [vmem:[#allocation17_spill] sm:$0xff] %v6364_v41  ;;  %7606 = vst [vmem:[#allocation18_spill] sm:$0xff] %v6366_v20  ;;  %v5087_v26 = vpop.f32.mrf.mxu0  ;;  %v5259_v60 = vpop.f32.mrf.mxu1  ;;  %3121 = vperm.xlu1 %5439, %v2473_v49   ;;  %3116 = vperm.xlu0 %5438, %v2472_v7  }
  0xfa   : > { %4228 = vst.msk [vmem:[%s6285_s6 + $0xc] sm:$0xf] %vm4224_vm3, %v4809_v32  ;;  %v3378_v55 = vmul.f32 %v5952_v48, %v2188_v38  ;;  %v2019_v46 = vadd.f32 %v6242_v16, %v1842_v37  ;;  %5185 = vmatmul.mubr.msk.bf16.gmra.mxu0 %vm857_vm2, %v5499_v31  ;;  %5357 = vmatmul.mubr.msk.bf16.gmra.mxu1 %vm857_vm2, %v5500_v45  ;;  %v2474_v60 = vld [vmem:[%s7585_s4 + $0x3c0] sm:$0xff] }
  0xfb   : > { %v1175_v63 = vpop.f32.mrf.mxu0  ;;  %v6380_v49 = vpop.f32.mrf.mxu1  ;;  %5188 = vmatprep.mubr.msk.bf16.mxu0 %vm5546_vm1, %v7598_v13  ;;  %5360 = vmatprep.mubr.msk.bf16.mxu1 %vm5546_vm1, %v7598_v13  ;;  %v5501_v37 = vld [vmem:[%s5628_s16 + $0xe0] sm:$0xff]  }
  0xfc   : > { %v4810_v48 = vpack.c.bf16 %v3378_v55, %v3378_v55  ;;  %v2189_v31 = vmax.f32 %v2019_v46, 0.0  ;;  %v1843_v7 = vmul.f32 %v6237_v10, %v1175_v63  ;;  %v6387_v45 = vpop.permute.xlu1 %2821  ;;  %v6389_v36 = vpop.permute.xlu0 %2816  ;;  %v2477_v46 = vld [vmem:[%s7585_s4 + $0x3d8] sm:$0xff]  ;;  %v2476_v55 = vld [vmem:[%s7585_s4 + $0x3d0] sm:$0xff] }
  0xfd   : > { %7607 = vst [vmem:[#allocation19_spill] sm:$0xff] %v6387_v45  ;;  %7608 = vst [vmem:[#allocation20_spill] sm:$0xff] %v6389_v36  ;;  %v5090_v32 = vpop.f32.mrf.mxu0  ;;  %v5262_v38 = vpop.f32.mrf.mxu1  ;;  %3131 = vperm.xlu1 %5439, %v2475_v42   ;;  %3126 = vperm.xlu0 %5438, %v2474_v60   ;;  %v5502_v63 = vld [vmem:[%s5628_s16 + $0x238] sm:$0xff]  }
  0xfe   : > { %4229 = vst.msk [vmem:[%s6285_s6 + $0x10] sm:$0xf] %vm4224_vm3, %v4810_v48  ;;  %v3379_v26 = vmul.f32 %v5950_v47, %v2189_v31  ;;  %v2020_v41 = vadd.f32 %v6242_v16, %v1843_v7 }
  0xff   : > { %v1178_v32 = vpop.f32.mrf.mxu0  ;;  %v6403_v42 = vpop.f32.mrf.mxu1 }
 0x100   : > { %v4811_v60 = vpack.c.bf16 %v3379_v26, %v3379_v26  ;;  %v2190_v38 = vmax.f32 %v2020_v41, 0.0  ;;  %v1844_v48 = vmul.f32 %v6237_v10, %v1178_v32  ;;  %v6406_v47 = vpop.permute.xlu1 %2831  ;;  %v6408_v31 = vpop.permute.xlu0 %2826  ;;  %v2479_v41 = vld [vmem:[%s7585_s4 + $0x3e8] sm:$0xff] }
 0x101   : > { %7609 = vst [vmem:[#allocation21_spill] sm:$0xff] %v6406_v47  ;;  %7610 = vst [vmem:[#allocation22_spill] sm:$0xff] %v6408_v31  ;;  %v5091_v7 = vpop.f32.mrf.mxu0  ;;  %v5263_v45 = vpop.f32.mrf.mxu1  ;;  %3141 = vperm.xlu1 %5439, %v2477_v46   ;;  %3136 = vperm.xlu0 %5438, %v2476_v55  }
 0x102   : > { %4230 = vst.msk [vmem:[%s6285_s6 + $0x14] sm:$0xf] %vm4224_vm3, %v4811_v60  ;;  %v3380_v36 = vmul.f32 %v5968_v52, %v2190_v38  ;;  %v2021_v20 = vadd.f32 %v6242_v16, %v1844_v48  ;;  %5189 = vmatmul.mubr.msk.bf16.gmra.mxu0 %vm857_vm2, %v5501_v37  ;;  %5361 = vmatmul.mubr.msk.bf16.gmra.mxu1 %vm857_vm2, %v5502_v63  ;;  %v2478_v45 = vld [vmem:[%s7585_s4 + $0x3e0] sm:$0xff]  ;;  %v5503_v48 = vld [vmem:[%s5628_s16 + $0xe8] sm:$0xff]  }
 0x103   : > { %v1183_v26 = vpop.f32.mrf.mxu0  ;;  %v6422_v46 = vpop.f32.mrf.mxu1  ;;  %5192 = vmatprep.mubr.msk.bf16.mxu0 %vm5546_vm1, %v7598_v13  ;;  %5364 = vmatprep.mubr.msk.bf16.mxu1 %vm5546_vm1, %v7598_v13 }
 0x104   : > { %v4812_v52 = vpack.c.bf16 %v3380_v36, %v3380_v36  ;;  %v2191_v37 = vmax.f32 %v2021_v20, 0.0  ;;  %v1845_v55 = vmul.f32 %v6237_v10, %v1183_v26  ;;  %v6429_v63 = vpop.permute.xlu1 %2841  ;;  %v6431_v32 = vpop.permute.xlu0 %2836  ;;  %v2481_v20 = vld [vmem:[%s7585_s4 + $0x3f8] sm:$0xff]  ;;  %v2480_v36 = vld [vmem:[%s7585_s4 + $0x3f0] sm:$0xff]  ;;  %v5504_v26 = vld [vmem:[%s5628_s16 + $0x240] sm:$0xff]  }
 0x105   : > { %7611 = vst [vmem:[#allocation23_spill] sm:$0xff] %v6429_v63  ;;  %7612 = vst [vmem:[#allocation24_spill] sm:$0xff] %v6431_v32  ;;  %v5094_v60 = vpop.f32.mrf.mxu0  ;;  %v5266_v38 = vpop.f32.mrf.mxu1  ;;  %3151 = vperm.xlu1 %5439, %v2479_v41   ;;  %3146 = vperm.xlu0 %5438, %v2478_v45  }
 0x106   : > { %4231 = vst.msk [vmem:[%s6285_s6 + $0x18] sm:$0xf] %vm4224_vm3, %v4812_v52  ;;  %v3381_v7 = vmul.f32 %v5966_v51, %v2191_v37  ;;  %v2022_v47 = vadd.f32 %v6242_v16, %v1845_v55 }
 0x107   : > { %v1186_v60 = vpop.f32.mrf.mxu0  ;;  %v6445_v41 = vpop.f32.mrf.mxu1 }
 0x108   : > { %v4813_v45 = vpack.c.bf16 %v3381_v7, %v3381_v7  ;;  %v2192_v38 = vmax.f32 %v2022_v47, 0.0  ;;  %v1846_v52 = vmul.f32 %v6237_v10, %v1186_v60  ;;  %v6448_v51 = vpop.permute.xlu1 %2851  ;;  %v6450_v37 = vpop.permute.xlu0 %2846  ;;  %v2483_v47 = vld [vmem:[%s7585_s4 + $0x408] sm:$0xff] }
 0x109   : > { %7613 = vst [vmem:[#allocation25_spill] sm:$0xff] %v6448_v51  ;;  %7614 = vst [vmem:[#allocation26_spill] sm:$0xff] %v6450_v37  ;;  %v5095_v55 = vpop.f32.mrf.mxu0  ;;  %v5267_v63 = vpop.f32.mrf.mxu1  ;;  %3161 = vperm.xlu1 %5439, %v2481_v20   ;;  %3156 = vperm.xlu0 %5438, %v2480_v36  }
 0x10a   : > { %4232 = vst.msk [vmem:[%s6285_s6 + $0x1c] sm:$0xf] %vm4224_vm3, %v4813_v45  ;;  %v3382_v32 = vmul.f32 %v5980_v58, %v2192_v38  ;;  %v2023_v31 = vadd.f32 %v6242_v16, %v1846_v52  ;;  %5193 = vmatmul.mubr.msk.bf16.gmra.mxu0 %vm857_vm2, %v5503_v48  ;;  %5365 = vmatmul.mubr.msk.bf16.gmra.mxu1 %vm857_vm2, %v5504_v26  ;;  %v2482_v63 = vld [vmem:[%s7585_s4 + $0x400] sm:$0xff]  ;;  %v5505_v52 = vld [vmem:[%s5628_s16 + $0xf0] sm:$0xff]  }
 0x10b   : > { %v1191_v7 = vpop.f32.mrf.mxu0  ;;  %v6464_v20 = vpop.f32.mrf.mxu1  ;;  %5196 = vmatprep.mubr.msk.bf16.mxu0 %vm5546_vm1, %v7598_v13  ;;  %5368 = vmatprep.mubr.msk.bf16.mxu1 %vm5546_vm1, %v7598_v13 }
 0x10c   : > { %v4814_v58 = vpack.c.bf16 %v3382_v32, %v3382_v32  ;;  %v2193_v48 = vmax.f32 %v2023_v31, 0.0  ;;  %v1847_v36 = vmul.f32 %v6237_v10, %v1191_v7  ;;  %v6471_v26 = vpop.permute.xlu1 %2861  ;;  %v6473_v60 = vpop.permute.xlu0 %2856  ;;  %v2485_v31 = vld [vmem:[%s7585_s4 + $0x418] sm:$0xff]  ;;  %v2484_v32 = vld [vmem:[%s7585_s4 + $0x410] sm:$0xff]  ;;  %v5506_v7 = vld [vmem:[%s5628_s16 + $0x248] sm:$0xff]  }
 0x10d   : > { %7615 = vst [vmem:[#allocation27_spill] sm:$0xff] %v6471_v26  ;;  %7616 = vst [vmem:[#allocation28_spill] sm:$0xff] %v6473_v60  ;;  %v5098_v45 = vpop.f32.mrf.mxu0  ;;  %v5270_v38 = vpop.f32.mrf.mxu1  ;;  %3171 = vperm.xlu1 %5439, %v2483_v47   ;;  %3166 = vperm.xlu0 %5438, %v2482_v63  }
 0x10e   : > { %4233 = vst.msk [vmem:[%s6285_s6 + $0x20] sm:$0xf] %vm4224_vm3, %v4814_v58  ;;  %v3383_v55 = vmul.f32 %v5978_v57, %v2193_v48  ;;  %v2024_v51 = vadd.f32 %v6242_v16, %v1847_v36 }
 0x10f   : > { %v1194_v45 = vpop.f32.mrf.mxu0  ;;  %v6487_v47 = vpop.f32.mrf.mxu1 }
 0x110   : > { %v4815_v63 = vpack.c.bf16 %v3383_v55, %v3383_v55  ;;  %v2194_v38 = vmax.f32 %v2024_v51, 0.0  ;;  %v1848_v58 = vmul.f32 %v6237_v10, %v1194_v45  ;;  %v6490_v57 = vpop.permute.xlu1 %2871  ;;  %v6492_v48 = vpop.permute.xlu0 %2866  ;;  %v2487_v51 = vld [vmem:[%s7585_s4 + $0x428] sm:$0xff] }
 0x111   : > { %7617 = vst [vmem:[#allocation29_spill] sm:$0xff] %v6490_v57  ;;  %7618 = vst [vmem:[#allocation30_spill] sm:$0xff] %v6492_v48  ;;  %v5099_v36 = vpop.f32.mrf.mxu0  ;;  %v5271_v26 = vpop.f32.mrf.mxu1  ;;  %3181 = vperm.xlu1 %5439, %v2485_v31   ;;  %3176 = vperm.xlu0 %5438, %v2484_v32  }
 0x112   : > { %4234 = vst.msk [vmem:[%s6285_s6 + $0x24] sm:$0xf] %vm4224_vm3, %v4815_v63  ;;  %v3384_v60 = vmul.f32 %v5996_v62, %v2194_v38  ;;  %v2025_v37 = vadd.f32 %v6242_v16, %v1848_v58  ;;  %5197 = vmatmul.mubr.msk.bf16.gmra.mxu0 %vm857_vm2, %v5505_v52  ;;  %5369 = vmatmul.mubr.msk.bf16.gmra.mxu1 %vm857_vm2, %v5506_v7  ;;  %v2486_v26 = vld [vmem:[%s7585_s4 + $0x420] sm:$0xff]  ;;  %v5507_v58 = vld [vmem:[%s5628_s16 + $0xf8] sm:$0xff]  }
 0x113   : > { %v1199_v55 = vpop.f32.mrf.mxu0  ;;  %v6506_v31 = vpop.f32.mrf.mxu1  ;;  %5200 = vmatprep.mubr.msk.bf16.mxu0 %vm5546_vm1, %v7598_v13  ;;  %5372 = vmatprep.mubr.msk.bf16.mxu1 %vm5546_vm1, %v7598_v13 }
 0x114   : > { %v4816_v62 = vpack.c.bf16 %v3384_v60, %v3384_v60  ;;  %v2195_v52 = vmax.f32 %v2025_v37, 0.0  ;;  %v1849_v32 = vmul.f32 %v6237_v10, %v1199_v55  ;;  %v6513_v7 = vpop.permute.xlu1 %2881  ;;  %v6515_v45 = vpop.permute.xlu0 %2876  ;;  %v2489_v37 = vld [vmem:[%s7585_s4 + $0x438] sm:$0xff]  ;;  %v2488_v60 = vld [vmem:[%s7585_s4 + $0x430] sm:$0xff] }
 0x115   : > { %7619 = vst [vmem:[#allocation31_spill] sm:$0xff] %v6513_v7  ;;  %7620 = vst [vmem:[#allocation32_spill] sm:$0xff] %v6515_v45  ;;  %v5102_v63 = vpop.f32.mrf.mxu0  ;;  %v5274_v38 = vpop.f32.mrf.mxu1  ;;  %3191 = vperm.xlu1 %5439, %v2487_v51   ;;  %3186 = vperm.xlu0 %5438, %v2486_v26   ;;  %v5508_v55 = vld [vmem:[%s5628_s16 + $0x250] sm:$0xff]  }
 0x116   : > { %4235 = vst.msk [vmem:[%s6285_s6 + $0x28] sm:$0xf] %vm4224_vm3, %v4816_v62  ;;  %v3385_v36 = vmul.f32 %v5994_v61, %v2195_v52  ;;  %v2026_v57 = vadd.f32 %v6242_v16, %v1849_v32 }
 0x117   : > { %v1202_v63 = vpop.f32.mrf.mxu0  ;;  %v6529_v51 = vpop.f32.mrf.mxu1 }
 0x118   : > { %v4817_v26 = vpack.c.bf16 %v3385_v36, %v3385_v36  ;;  %v2196_v38 = vmax.f32 %v2026_v57, 0.0  ;;  %v1850_v62 = vmul.f32 %v6237_v10, %v1202_v63  ;;  %v6532_v61 = vpop.permute.xlu1 %2891  ;;  %v6534_v52 = vpop.permute.xlu0 %2886  ;;  %v2491_v57 = vld [vmem:[%s7585_s4 + $0x448] sm:$0xff] }
 0x119   : > { %7621 = vst [vmem:[#allocation33_spill] sm:$0xff] %v6532_v61  ;;  %7622 = vst [vmem:[#allocation34_spill] sm:$0xff] %v6534_v52  ;;  %v5103_v32 = vpop.f32.mrf.mxu0  ;;  %v5275_v7 = vpop.f32.mrf.mxu1  ;;  %3201 = vperm.xlu1 %5439, %v2489_v37   ;;  %3196 = vperm.xlu0 %5438, %v2488_v60  }
 0x11a   : > { %4236 = vst.msk [vmem:[%s6285_s6 + $0x2c] sm:$0xf] %vm4224_vm3, %v4817_v26  ;;  %v3386_v45 = vmul.f32 %v6008_v5, %v2196_v38  ;;  %v2027_v48 = vadd.f32 %v6242_v16, %v1850_v62  ;;  %5201 = vmatmul.mubr.msk.bf16.gmra.mxu0 %vm857_vm2, %v5507_v58  ;;  %5373 = vmatmul.mubr.msk.bf16.gmra.mxu1 %vm857_vm2, %v5508_v55  ;;  %v2490_v7 = vld [vmem:[%s7585_s4 + $0x440] sm:$0xff] }
 0x11b   : > { %v1207_v36 = vpop.f32.mrf.mxu0  ;;  %v6548_v37 = vpop.f32.mrf.mxu1  ;;  %5204 = vmatprep.mubr.msk.bf16.mxu0 %vm5546_vm1, %v7598_v13  ;;  %5376 = vmatprep.mubr.msk.bf16.mxu1 %vm5546_vm1, %v7598_v13  ;;  %v5509_v62 = vld [vmem:[%s5628_s16 + $0x100] sm:$0xff]  }
 0x11c   : > { %v4818_v5 = vpack.c.bf16 %v3386_v45, %v3386_v45  ;;  %v2197_v58 = vmax.f32 %v2027_v48, 0.0  ;;  %v1851_v60 = vmul.f32 %v6237_v10, %v1207_v36  ;;  %v6555_v55 = vpop.permute.xlu1 %2901  ;;  %v6557_v63 = vpop.permute.xlu0 %2896  ;;  %v2493_v48 = vld [vmem:[%s7585_s4 + $0x458] sm:$0xff]  ;;  %v2492_v45 = vld [vmem:[%s7585_s4 + $0x450] sm:$0xff] }
 0x11d   : > { %7623 = vst [vmem:[#allocation35_spill] sm:$0xff] %v6555_v55  ;;  %7624 = vst [vmem:[#allocation36_spill] sm:$0xff] %v6557_v63  ;;  %v5106_v26 = vpop.f32.mrf.mxu0  ;;  %v5278_v38 = vpop.f32.mrf.mxu1  ;;  %3211 = vperm.xlu1 %5439, %v2491_v57   ;;  %3206 = vperm.xlu0 %5438, %v2490_v7   ;;  %v5510_v36 = vld [vmem:[%s5628_s16 + $0x258] sm:$0xff]  }
 0x11e   : > { %4237 = vst.msk [vmem:[%s6285_s6 + $0x30] sm:$0xf] %vm4224_vm3, %v4818_v5  ;;  %v3387_v32 = vmul.f32 %v6006_v3, %v2197_v58  ;;  %v2028_v61 = vadd.f32 %v6242_v16, %v1851_v60 }
 0x11f   : > { %v1210_v26 = vpop.f32.mrf.mxu0  ;;  %v6571_v57 = vpop.f32.mrf.mxu1 }
 0x120   : > { %v4819_v7 = vpack.c.bf16 %v3387_v32, %v3387_v32  ;;  %v2198_v38 = vmax.f32 %v2028_v61, 0.0  ;;  %v1852_v5 = vmul.f32 %v6237_v10, %v1210_v26  ;;  %v6574_v3 = vpop.permute.xlu1 %2911  ;;  %v6576_v58 = vpop.permute.xlu0 %2906  ;;  %v2495_v61 = vld [vmem:[%s7585_s4 + $0x468] sm:$0xff] }
 0x121   : > { %7625 = vst [vmem:[#allocation37_spill] sm:$0xff] %v6574_v3  ;;  %7626 = vst [vmem:[#allocation38_spill] sm:$0xff] %v6576_v58  ;;  %v5107_v60 = vpop.f32.mrf.mxu0  ;;  %v5279_v55 = vpop.f32.mrf.mxu1  ;;  %3221 = vperm.xlu1 %5439, %v2493_v48   ;;  %3216 = vperm.xlu0 %5438, %v2492_v45  }
 0x122   : > { %4238 = vst.msk [vmem:[%s6285_s6 + $0x34] sm:$0xf] %vm4224_vm3, %v4819_v7  ;;  %v3388_v63 = vmul.f32 %v6024_v9, %v2198_v38  ;;  %v2029_v52 = vadd.f32 %v6242_v16, %v1852_v5  ;;  %5205 = vmatmul.mubr.msk.bf16.gmra.mxu0 %vm857_vm2, %v5509_v62  ;;  %5377 = vmatmul.mubr.msk.bf16.gmra.mxu1 %vm857_vm2, %v5510_v36  ;;  %v2494_v55 = vld [vmem:[%s7585_s4 + $0x460] sm:$0xff]  ;;  %v5511_v5 = vld [vmem:[%s5628_s16 + $0x108] sm:$0xff]  }
 0x123   : > { %v1215_v32 = vpop.f32.mrf.mxu0  ;;  %v6590_v48 = vpop.f32.mrf.mxu1  ;;  %5208 = vmatprep.mubr.msk.bf16.mxu0 %vm5546_vm1, %v7598_v13  ;;  %5380 = vmatprep.mubr.msk.bf16.mxu1 %vm5546_vm1, %v7598_v13 }
 0x124   : > { %v4820_v9 = vpack.c.bf16 %v3388_v63, %v3388_v63  ;;  %v2199_v62 = vmax.f32 %v2029_v52, 0.0  ;;  %v1853_v45 = vmul.f32 %v6237_v10, %v1215_v32  ;;  %v6597_v36 = vpop.permute.xlu1 %2921  ;;  %v6599_v26 = vpop.permute.xlu0 %2916  ;;  %v2497_v52 = vld [vmem:[%s7585_s4 + $0x478] sm:$0xff]  ;;  %v2496_v63 = vld [vmem:[%s7585_s4 + $0x470] sm:$0xff]  ;;  %v5512_v32 = vld [vmem:[%s5628_s16 + $0x260] sm:$0xff]  }
 0x125   : > { %7627 = vst [vmem:[#allocation39_spill] sm:$0xff] %v6597_v36  ;;  %7628 = vst [vmem:[#allocation40_spill] sm:$0xff] %v6599_v26  ;;  %v5110_v7 = vpop.f32.mrf.mxu0  ;;  %v5282_v38 = vpop.f32.mrf.mxu1  ;;  %3231 = vperm.xlu1 %5439, %v2495_v61   ;;  %3226 = vperm.xlu0 %5438, %v2494_v55  }
 0x126   : > { %4239 = vst.msk [vmem:[%s6285_s6 + $0x38] sm:$0xf] %vm4224_vm3, %v4820_v9  ;;  %v3389_v60 = vmul.f32 %v6022_v8, %v2199_v62  ;;  %v2030_v3 = vadd.f32 %v6242_v16, %v1853_v45 }
 0x127   : > { %v1218_v7 = vpop.f32.mrf.mxu0  ;;  %v6613_v61 = vpop.f32.mrf.mxu1 }
 0x128   : > { %v4821_v55 = vpack.c.bf16 %v3389_v60, %v3389_v60  ;;  %v2200_v38 = vmax.f32 %v2030_v3, 0.0  ;;  %v1854_v9 = vmul.f32 %v6237_v10, %v1218_v7  ;;  %v6616_v8 = vpop.permute.xlu1 %2931  ;;  %v6618_v62 = vpop.permute.xlu0 %2926  ;;  %v2499_v3 = vld [vmem:[%s7585_s4 + $0x488] sm:$0xff]  ;;  %v1923_v60 = vmul.f32 %v6237_v10, %v6245_v17 }
 0x129   : > { %7629 = vst [vmem:[#allocation41_spill] sm:$0xff] %v6616_v8  ;;  %7630 = vst [vmem:[#allocation42_spill] sm:$0xff] %v6618_v62  ;;  %v5111_v45 = vpop.f32.mrf.mxu0  ;;  %v5283_v36 = vpop.f32.mrf.mxu1  ;;  %3241 = vperm.xlu1 %5439, %v2497_v52   ;;  %3236 = vperm.xlu0 %5438, %v2496_v63  }
 0x12a   : > { %4240 = vst.msk [vmem:[%s6285_s6 + $0x3c] sm:$0xf] %vm4224_vm3, %v4821_v55  ;;  %v3390_v26 = vmul.f32 %v6036_v15, %v2200_v38  ;;  %v2031_v58 = vadd.f32 %v6242_v16, %v1854_v9  ;;  %5209 = vmatmul.mubr.msk.bf16.gmra.mxu0 %vm857_vm2, %v5511_v5  ;;  %5381 = vmatmul.mubr.msk.bf16.gmra.mxu1 %vm857_vm2, %v5512_v32  ;;  %v2498_v36 = vld [vmem:[%s7585_s4 + $0x480] sm:$0xff]  ;;  %v5513_v45 = vld [vmem:[%s5628_s16 + $0x110] sm:$0xff]  }
 0x12b   : > { %v1924_v15 = vmul.f32 %v6237_v10, %v6272_v4  ;;  %v1223_v52 = vpop.f32.mrf.mxu0  ;;  %v6636_v5 = vpop.f32.mrf.mxu1  ;;  %5212 = vmatprep.mubr.msk.bf16.mxu0 %vm5546_vm1, %v7598_v13  ;;  %5384 = vmatprep.mubr.msk.bf16.mxu1 %vm5546_vm1, %v7598_v13  ;;  %v1925_v4 = vmul.f32 %v6237_v10, %v6296_v0  ;;  %v5514_v0 = vld [vmem:[%s5628_s16 + $0x268] sm:$0xff]  }
 0x12c   : > { %v4822_v63 = vpack.c.bf16 %v3390_v26, %v3390_v26  ;;  %v2201_v32 = vmax.f32 %v2031_v58, 0.0  ;;  %v1855_v7 = vmul.f32 %v6237_v10, %v1223_v52  ;;  %v6643_v17 = vpop.permute.xlu1 %2941  ;;  %v6645_v55 = vpop.permute.xlu0 %2936  ;;  %v2501_v52 = vld [vmem:[%s7585_s4 + $0x498] sm:$0xff] }
 0x12d   : > { %7631 = vst [vmem:[#allocation43_spill] sm:$0xff] %v6643_v17  ;;  %7632 = vst [vmem:[#allocation44_spill] sm:$0xff] %v6645_v55  ;;  %v5114_v38 = vpop.f32.mrf.mxu0  ;;  %v5286_v9 = vpop.f32.mrf.mxu1  ;;  %3251 = vperm.xlu1 %5439, %v2499_v3   ;;  %3246 = vperm.xlu0 %5438, %v2498_v36   ;;  %v2500_v17 = vld [vmem:[%s7585_s4 + $0x490] sm:$0xff]  ;;  %v2101_v3 = vadd.f32 %v6242_v16, %v1924_v15  ;;  %v1926_v36 = vmul.f32 %v6237_v10, %v6319_v23 }
 0x12e   : > { %4241 = vst.msk [vmem:[%s6285_s6 + $0x40] sm:$0xf] %vm4224_vm3, %v4822_v63  ;;  %v3391_v26 = vmul.f32 %v6034_v14, %v2201_v32  ;;  %v2032_v58 = vadd.f32 %v6242_v16, %v1855_v7  ;;  %v2100_v38 = vadd.f32 %v6242_v16, %v1923_v60  ;;  %v2102_v62 = vadd.f32 %v6242_v16, %v1925_v4  ;;  %v2503_v4 = vld [vmem:[%s7585_s4 + $0x4a8] sm:$0xff] }
 0x12f   : > { %v1226_v14 = vpop.f32.mrf.mxu0  ;;  %v6665_v63 = vpop.f32.mrf.mxu1  ;;  %v1927_v23 = vmul.f32 %v6237_v10, %v6338_v33  ;;  %v2103_v33 = vadd.f32 %v6242_v16, %v1926_v36 }
 0x130   : > { %v4823_v32 = vpack.c.bf16 %v3391_v26, %v3391_v26  ;;  %v2202_v7 = vmax.f32 %v2032_v58, 0.0  ;;  %v1856_v9 = vmul.f32 %v6237_v10, %v1226_v14  ;;  %v6668_v55 = vpop.permute.xlu1 %2951  ;;  %v6670_v8 = vpop.permute.xlu0 %2946 }
 0x131   : > { %7633 = vst [vmem:[#allocation45_spill] sm:$0xff] %v6668_v55  ;;  %7634 = vst [vmem:[#allocation46_spill] sm:$0xff] %v6670_v8  ;;  %v5115_v60 = vpop.f32.mrf.mxu0  ;;  %v5287_v54 = vpop.f32.mrf.mxu1  ;;  %3261 = vperm.xlu1 %5439, %v2501_v52   ;;  %3256 = vperm.xlu0 %5438, %v2500_v17   ;;  %v1928_v17 = vmul.f32 %v6237_v10, %v6361_v1  ;;  %v2271_v52 = vmax.f32 %v2101_v3, 0.0  ;;  %v5515_v8 = vld [vmem:[%s5628_s16 + $0x118] sm:$0xff]   ;;  %v2104_v39 = vadd.f32 %v6242_v16, %v1927_v23 }
 0x132   : > { %4242 = vst.msk [vmem:[%s6285_s6 + $0x44] sm:$0xf] %vm4224_vm3, %v4823_v32  ;;  %v3392_v15 = vmul.f32 %v6052_v19, %v2202_v7  ;;  %v2033_v26 = vadd.f32 %v6242_v16, %v1856_v9  ;;  %5213 = vmatmul.mubr.msk.bf16.gmra.mxu0 %vm857_vm2, %v5513_v45  ;;  %5385 = vmatmul.mubr.msk.bf16.gmra.mxu1 %vm857_vm2, %v5514_v0  ;;  %v2502_v54 = vld [vmem:[%s7585_s4 + $0x4a0] sm:$0xff]  ;;  %v2270_v45 = vmax.f32 %v2100_v38, 0.0 }
 0x133   : > { %v1231_v19 = vpop.f32.mrf.mxu0  ;;  %v6690_v58 = vpop.f32.mrf.mxu1  ;;  %5216 = vmatprep.mubr.msk.bf16.mxu0 %vm5546_vm1, %v7598_v13  ;;  %5388 = vmatprep.mubr.msk.bf16.mxu1 %vm5546_vm1, %v7598_v13  ;;  %v1929_v0 = vmul.f32 %v6237_v10, %v6380_v49  ;;  %v1930_v38 = vmul.f32 %v6237_v10, %v6403_v42  ;;  %v2505_v42 = vld [vmem:[%s7585_s4 + $0x4b8] sm:$0xff]  ;;  %v2105_v23 = vadd.f32 %v6242_v16, %v1928_v17 }
 0x134   : > { %v4824_v36 = vpack.c.bf16 %v3392_v15, %v3392_v15  ;;  %v2203_v14 = vmax.f32 %v2033_v26, 0.0  ;;  %v1857_v1 = vmul.f32 %v6237_v10, %v1231_v19  ;;  %v2962_v32 = vpop.permute.xlu1 %2961  ;;  %v2957_v7 = vpop.permute.xlu0 %2956  ;;  %v2272_v26 = vmax.f32 %v2102_v62, 0.0 }
 0x135   : > { %v3461_v3 = vmul.f32 %v2962_v32, %v2271_v52  ;;  %v3460_v9 = vmul.f32 %v2957_v7, %v2270_v45  ;;  %v5118_v60 = vpop.f32.mrf.mxu0  ;;  %v5290_v55 = vpop.f32.mrf.mxu1  ;;  %3271 = vperm.xlu1 %5439, %v2503_v4   ;;  %3266 = vperm.xlu0 %5438, %v2502_v54   ;;  %v5516_v4 = vld [vmem:[%s5628_s16 + $0x270] sm:$0xff]   ;;  %v2273_v45 = vmax.f32 %v2103_v33, 0.0  ;;  %v6718_v62 = vadd.f32 %v6242_v16, %v1929_v0 }
 0x136   : > { %4243 = vst.msk [vmem:[%s6285_s6 + $0x48] sm:$0xf] %vm4224_vm3, %v4824_v36  ;;  %v3393_v49 = vmul.f32 %v6050_v18, %v2203_v14  ;;  %v2034_v15 = vadd.f32 %v6242_v16, %v1857_v1  ;;  %v2504_v55 = vld [vmem:[%s7585_s4 + $0x4b0] sm:$0xff]  ;;  %v6722_v60 = vadd.f32 %v6242_v16, %v1930_v38  ;;  %v1931_v0 = vmul.f32 %v6237_v10, %v6422_v46 }
 0x137   : > { %v4893_v54 = vpack.c.bf16 %v3461_v3, %v3461_v3  ;;  %v4892_v19 = vpack.c.bf16 %v3460_v9, %v3460_v9  ;;  %v1234_v52 = vpop.f32.mrf.mxu0  ;;  %v6715_v18 = vpop.f32.mrf.mxu1  ;;  %v1932_v46 = vmul.f32 %v6237_v10, %v6445_v41 }
 0x138   : > { %v4825_v36 = vpack.c.bf16 %v3393_v49, %v3393_v49  ;;  %v2204_v14 = vmax.f32 %v2034_v15, 0.0  ;;  %v1858_v1 = vmul.f32 %v6237_v10, %v1234_v52  ;;  %v2972_v32 = vpop.permute.xlu1 %2971  ;;  %v2967_v7 = vpop.permute.xlu0 %2966  ;;  %v2274_v15 = vmax.f32 %v2104_v39, 0.0 }
 0x139   : > { %4312 = vst.msk [vmem:[%s6285_s6 + $0x15c] sm:$0xf] %vm4224_vm3, %v4893_v54  ;;  %4311 = vst.msk [vmem:[%s6285_s6 + $0x158] sm:$0xf] %vm4224_vm3, %v4892_v19  ;;  %v3463_v17 = vmul.f32 %v2972_v32, %v2273_v45  ;;  %v3462_v3 = vmul.f32 %v2967_v7, %v2272_v26  ;;  %v5119_v33 = vpop.f32.mrf.mxu0  ;;  %v5291_v9 = vpop.f32.mrf.mxu1  ;;  %3281 = vperm.xlu1 %5439, %v2505_v42   ;;  %3276 = vperm.xlu0 %5438, %v2504_v55   ;;  %v2507_v26 = vld [vmem:[%s7585_s4 + $0x4c8] sm:$0xff]  ;;  %v2506_v42 = vld [vmem:[%s7585_s4 + $0x4c0] sm:$0xff] }
 0x13a   : > { %4244 = vst.msk [vmem:[%s6285_s6 + $0x4c] sm:$0xf] %vm4224_vm3, %v4825_v36  ;;  %v3394_v49 = vmul.f32 %v6064_v25, %v2204_v14  ;;  %v2035_v38 = vadd.f32 %v6242_v16, %v1858_v1  ;;  %5217 = vmatmul.mubr.msk.bf16.gmra.mxu0 %vm857_vm2, %v5515_v8  ;;  %5389 = vmatmul.mubr.msk.bf16.gmra.mxu1 %vm857_vm2, %v5516_v4  ;;  %v2275_v4 = vmax.f32 %v2105_v23, 0.0  ;;  %v2276_v33 = vmax.f32 %v6718_v62, 0.0  ;;  %v2509_v9 = vld [vmem:[%s7585_s4 + $0x4d8] sm:$0xff] }
 0x13b   : > { %v4895_v25 = vpack.c.bf16 %v3463_v17, %v3463_v17  ;;  %v4894_v55 = vpack.c.bf16 %v3462_v3, %v3462_v3  ;;  %v1239_v54 = vpop.f32.mrf.mxu0  ;;  %v6744_v8 = vpop.f32.mrf.mxu1  ;;  %5220 = vmatprep.mubr.msk.bf16.mxu0 %vm5546_vm1, %v7598_v13  ;;  %5392 = vmatprep.mubr.msk.bf16.mxu1 %vm5546_vm1, %v7598_v13  ;;  %v1933_v39 = vmul.f32 %v6237_v10, %v6464_v20  ;;  %v5517_v20 = vld [vmem:[%s5628_s16 + $0x120] sm:$0xff]   ;;  %v2277_v62 = vmax.f32 %v6722_v60, 0.0 }
 0x13c   : > { %v4826_v19 = vpack.c.bf16 %v3394_v49, %v3394_v49  ;;  %v2205_v41 = vmax.f32 %v2035_v38, 0.0  ;;  %v1859_v52 = vmul.f32 %v6237_v10, %v1239_v54  ;;  %v2982_v45 = vpop.permute.xlu1 %2981  ;;  %v2977_v36 = vpop.permute.xlu0 %2976  ;;  %v1934_v23 = vmul.f32 %v6237_v10, %v6487_v47  ;;  %v2508_v49 = vld [vmem:[%s7585_s4 + $0x4d0] sm:$0xff]  ;;  %v5518_v38 = vld [vmem:[%s5628_s16 + $0x278] sm:$0xff]  }
 0x13d   : > { %4314 = vst.msk [vmem:[%s6285_s6 + $0x164] sm:$0xf] %vm4224_vm3, %v4895_v25  ;;  %4313 = vst.msk [vmem:[%s6285_s6 + $0x160] sm:$0xf] %vm4224_vm3, %v4894_v55  ;;  %v3465_v14 = vmul.f32 %v2982_v45, %v2275_v4  ;;  %v3464_v1 = vmul.f32 %v2977_v36, %v2274_v15  ;;  %v5122_v32 = vpop.f32.mrf.mxu0  ;;  %v5294_v7 = vpop.f32.mrf.mxu1  ;;  %3291 = vperm.xlu1 %5439, %v2507_v26   ;;  %3286 = vperm.xlu0 %5438, %v2506_v42  }
 0x13e   : > { %v2108_v17 = vadd.f32 %v6242_v16, %v1931_v0  ;;  %4245 = vst.msk [vmem:[%s6285_s6 + $0x50] sm:$0xf] %vm4224_vm3, %v4826_v19  ;;  %v3395_v3 = vmul.f32 %v6062_v24, %v2205_v41  ;;  %v2036_v47 = vadd.f32 %v6242_v16, %v1859_v52  ;;  %v2109_v0 = vadd.f32 %v6242_v16, %v1932_v46  ;;  %v2511_v32 = vld [vmem:[%s7585_s4 + $0x4e8] sm:$0xff]  ;;  %v2510_v7 = vld [vmem:[%s7585_s4 + $0x4e0] sm:$0xff] }
 0x13f   : > { %v4897_v15 = vpack.c.bf16 %v3465_v14, %v3465_v14  ;;  %v4896_v26 = vpack.c.bf16 %v3464_v1, %v3464_v1  ;;  %v1242_v24 = vpop.f32.mrf.mxu0  ;;  %v6774_v42 = vpop.f32.mrf.mxu1  ;;  %v6778_v25 = vadd.f32 %v6242_v16, %v1933_v39  ;;  %v6782_v52 = vadd.f32 %v6242_v16, %v1934_v23 }
 0x140   : > { %v4827_v55 = vpack.c.bf16 %v3395_v3, %v3395_v3  ;;  %v2206_v54 = vmax.f32 %v2036_v47, 0.0  ;;  %v1860_v4 = vmul.f32 %v6237_v10, %v1242_v24  ;;  %v2992_v19 = vpop.permute.xlu1 %2991  ;;  %v2987_v41 = vpop.permute.xlu0 %2986  ;;  %v1935_v39 = vmul.f32 %v6237_v10, %v6506_v31  ;;  %v6805_v10 = vld [vmem:[%s7583_s2] ss:$0 sm:$0xff] }
 0x141   : > { %4316 = vst.msk [vmem:[%s6285_s6 + $0x16c] sm:$0xf] %vm4224_vm3, %v4897_v15  ;;  %4315 = vst.msk [vmem:[%s6285_s6 + $0x168] sm:$0xf] %vm4224_vm3, %v4896_v26  ;;  %v3467_v46 = vmul.f32 %v2992_v19, %v2277_v62  ;;  %v3466_v45 = vmul.f32 %v2987_v41, %v2276_v33  ;;  %v5123_v60 = vpop.f32.mrf.mxu0  ;;  %v5295_v36 = vpop.f32.mrf.mxu1  ;;  %3301 = vperm.xlu1 %5439, %v2509_v9   ;;  %3296 = vperm.xlu0 %5438, %v2508_v49   ;;  %v2278_v1 = vmax.f32 %v2108_v17, 0.0  ;;  %v2513_v41 = vld [vmem:[%s7585_s4 + $0x4f8] sm:$0xff] }
 0x142   : > { %4246 = vst.msk [vmem:[%s6285_s6 + $0x54] sm:$0xf] %vm4224_vm3, %v4827_v55  ;;  %v3396_v14 = vmul.f32 %v6080_v29, %v2206_v54  ;;  %v2037_v23 = vadd.f32 %v6242_v16, %v1860_v4  ;;  %5221 = vmatmul.mubr.msk.bf16.gmra.mxu0 %vm857_vm2, %v5517_v20  ;;  %5393 = vmatmul.mubr.msk.bf16.gmra.mxu1 %vm857_vm2, %v5518_v38  ;;  %v2279_v3 = vmax.f32 %v2109_v0, 0.0  ;;  %v6828_v55 = vld [vmem:[%s7584_s3] ss:$0 sm:$0xff]  ;;  %v2280_v19 = vmax.f32 %v6778_v25, 0.0 }
 0x143   : > { %v1936_v29 = vmul.f32 %v6805_v10, %v6529_v51  ;;  %v4899_v16 = vpack.c.bf16 %v3467_v46, %v3467_v46  ;;  %v4898_v31 = vpack.c.bf16 %v3466_v45, %v3466_v45  ;;  %v1247_v20 = vpop.f32.mrf.mxu0  ;;  %v6809_v17 = vpop.f32.mrf.mxu1  ;;  %5224 = vmatprep.mubr.msk.bf16.mxu0 %vm5546_vm1, %v7598_v13  ;;  %5396 = vmatprep.mubr.msk.bf16.mxu1 %vm5546_vm1, %v7598_v13  ;;  %v2512_v46 = vld [vmem:[%s7585_s4 + $0x4f0] sm:$0xff]  ;;  %v5520_v45 = vld [vmem:[%s5628_s16 + $0x280] sm:$0xff]   ;;  %v2281_v25 = vmax.f32 %v6782_v52, 0.0 }
 0x144   : > { %v1937_v47 = vmul.f32 %v6805_v10, %v6548_v37  ;;  %v4828_v33 = vpack.c.bf16 %v3396_v14, %v3396_v14  ;;  %v2207_v9 = vmax.f32 %v2037_v23, 0.0  ;;  %v1861_v51 = vmul.f32 %v6805_v10, %v1247_v20  ;;  %v3002_v49 = vpop.permute.xlu1 %3001  ;;  %v2997_v38 = vpop.permute.xlu0 %2996  ;;  %v5519_v37 = vld [vmem:[%s5628_s16 + $0x128] sm:$0xff]  }
 0x145   : > { %v1938_v0 = vmul.f32 %v6805_v10, %v6571_v57  ;;  %4318 = vst.msk [vmem:[%s6285_s6 + $0x174] sm:$0xf] %vm4224_vm3, %v4899_v16  ;;  %4317 = vst.msk [vmem:[%s6285_s6 + $0x170] sm:$0xf] %vm4224_vm3, %v4898_v31  ;;  %v3469_v15 = vmul.f32 %v3002_v49, %v2279_v3  ;;  %v3468_v26 = vmul.f32 %v2997_v38, %v2278_v1  ;;  %v5126_v24 = vpop.f32.mrf.mxu0  ;;  %v5298_v62 = vpop.f32.mrf.mxu1  ;;  %3311 = vperm.xlu1 %5439, %v2511_v32   ;;  %v2515_v38 = vld [vmem:[%s7585_s4 + $0x508] sm:$0xff] }
 0x146   : > { %3306 = vperm.xlu0 %5438, %v2510_v7   ;;  %v2112_v54 = vadd.f32 %v6828_v55, %v1935_v39  ;;  %4247 = vst.msk [vmem:[%s6285_s6 + $0x58] sm:$0xf] %vm4224_vm3, %v4828_v33  ;;  %v3397_v57 = vmul.f32 %v6078_v28, %v2207_v9  ;;  %v2038_v4 = vadd.f32 %v6828_v55, %v1861_v51 }
 0x147   : > { %v2113_v60 = vadd.f32 %v6828_v55, %v1936_v29  ;;  %v4901_v36 = vpack.c.bf16 %v3469_v15, %v3469_v15  ;;  %v4900_v39 = vpack.c.bf16 %v3468_v26, %v3468_v26  ;;  %v1250_v28 = vpop.f32.mrf.mxu0  ;;  %v6844_v14 = vpop.f32.mrf.mxu1  ;;  %v6848_v23 = vadd.f32 %v6828_v55, %v1937_v47 }
 0x148   : > { %v4829_v1 = vpack.c.bf16 %v3397_v57, %v3397_v57  ;;  %v2208_v32 = vmax.f32 %v2038_v4, 0.0  ;;  %v1862_v7 = vmul.f32 %v6805_v10, %v1250_v28  ;;  %v3012_v16 = vpop.permute.xlu1 %3011  ;;  %v3007_v31 = vpop.permute.xlu0 %3006  ;;  %v6852_v20 = vadd.f32 %v6828_v55, %v1938_v0  ;;  %v2514_v0 = vld [vmem:[%s7585_s4 + $0x500] sm:$0xff] }
 0x149   : > { %4320 = vst.msk [vmem:[%s6285_s6 + $0x17c] sm:$0xf] %vm4224_vm3, %v4901_v36  ;;  %4319 = vst.msk [vmem:[%s6285_s6 + $0x178] sm:$0xf] %vm4224_vm3, %v4900_v39  ;;  %v3471_v29 = vmul.f32 %v3012_v16, %v2281_v25  ;;  %v3470_v3 = vmul.f32 %v3007_v31, %v2280_v19  ;;  %v5127_v52 = vpop.f32.mrf.mxu0  ;;  %v5299_v33 = vpop.f32.mrf.mxu1  ;;  %3321 = vperm.xlu1 %5439, %v2513_v41   ;;  %v1939_v47 = vmul.f32 %v6805_v10, %v6590_v48 }
 0x14a   : > { %3316 = vperm.xlu0 %5438, %v2512_v46   ;;  %4248 = vst.msk [vmem:[%s6285_s6 + $0x5c] sm:$0xf] %vm4224_vm3, %v4829_v1  ;;  %v3398_v9 = vmul.f32 %v6092_v35, %v2208_v32  ;;  %v2039_v51 = vadd.f32 %v6828_v55, %v1862_v7  ;;  %5225 = vmatmul.mubr.msk.bf16.gmra.mxu0 %vm857_vm2, %v5519_v37  ;;  %v2282_v49 = vmax.f32 %v2112_v54, 0.0  ;;  %v2283_v62 = vmax.f32 %v2113_v60, 0.0  ;;  %v2517_v1 = vld [vmem:[%s7585_s4 + $0x518] sm:$0xff]  ;;  %v2516_v32 = vld [vmem:[%s7585_s4 + $0x510] sm:$0xff] }
 0x14b   : > { %5397 = vmatmul.mubr.msk.bf16.gmra.mxu1 %vm857_vm2, %v5520_v45  ;;  %v1940_v48 = vmul.f32 %v6805_v10, %v6613_v61  ;;  %v4903_v35 = vpack.c.bf16 %v3471_v29, %v3471_v29  ;;  %v4902_v15 = vpack.c.bf16 %v3470_v3, %v3470_v3  ;;  %v1255_v26 = vpop.f32.mrf.mxu0  ;;  %v6874_v24 = vpop.f32.mrf.mxu1  ;;  %5228 = vmatprep.mubr.msk.bf16.mxu0 %vm5546_vm1, %v7598_v13  ;;  %v2284_v25 = vmax.f32 %v6848_v23, 0.0  ;;  %v5522_v7 = vld [vmem:[%s5628_s16 + $0x288] sm:$0xff]  }
 0x14c   : > { %5400 = vmatprep.mubr.msk.bf16.mxu1 %vm5546_vm1, %v7598_v13  ;;  %v1941_v37 = vmul.f32 %v6805_v10, %v6636_v5  ;;  %v4830_v54 = vpack.c.bf16 %v3398_v9, %v3398_v9  ;;  %v2209_v61 = vmax.f32 %v2039_v51, 0.0  ;;  %v1863_v57 = vmul.f32 %v6805_v10, %v1255_v26  ;;  %v3022_v4 = vpop.permute.xlu1 %3021  ;;  %v3017_v19 = vpop.permute.xlu0 %3016  ;;  %v5521_v5 = vld [vmem:[%s5628_s16 + $0x130] sm:$0xff]  }
 0x14d   : > { %v1942_v41 = vmul.f32 %v6805_v10, %v6665_v63  ;;  %4322 = vst.msk [vmem:[%s6285_s6 + $0x184] sm:$0xf] %vm4224_vm3, %v4903_v35  ;;  %4321 = vst.msk [vmem:[%s6285_s6 + $0x180] sm:$0xf] %vm4224_vm3, %v4902_v15  ;;  %v3473_v46 = vmul.f32 %v3022_v4, %v2283_v62  ;;  %v3472_v45 = vmul.f32 %v3017_v19, %v2282_v49  ;;  %v5130_v60 = vpop.f32.mrf.mxu0  ;;  %v5302_v36 = vpop.f32.mrf.mxu1  ;;  %3331 = vperm.xlu1 %5439, %v2515_v38  }
 0x14e   : > { %3326 = vperm.xlu0 %5438, %v2514_v0   ;;  %v2116_v39 = vadd.f32 %v6828_v55, %v1939_v47  ;;  %4249 = vst.msk [vmem:[%s6285_s6 + $0x60] sm:$0xf] %vm4224_vm3, %v4830_v54  ;;  %v3399_v28 = vmul.f32 %v6090_v34, %v2209_v61  ;;  %v2040_v63 = vadd.f32 %v6828_v55, %v1863_v57  ;;  %v2285_v23 = vmax.f32 %v6852_v20, 0.0  ;;  %v2519_v54 = vld [vmem:[%s7585_s4 + $0x528] sm:$0xff]  ;;  %v2518_v61 = vld [vmem:[%s7585_s4 + $0x520] sm:$0xff] }
 0x14f   : > { %v2117_v16 = vadd.f32 %v6828_v55, %v1940_v48  ;;  %v4905_v31 = vpack.c.bf16 %v3473_v46, %v3473_v46  ;;  %v4904_v29 = vpack.c.bf16 %v3472_v45, %v3472_v45  ;;  %v1258_v34 = vpop.f32.mrf.mxu0  ;;  %v6904_v3 = vpop.f32.mrf.mxu1  ;;  %v6908_v52 = vadd.f32 %v6828_v55, %v1941_v37 }
 0x150   : > { %v4831_v33 = vpack.c.bf16 %v3399_v28, %v3399_v28  ;;  %v2210_v47 = vmax.f32 %v2040_v63, 0.0  ;;  %v1864_v9 = vmul.f32 %v6805_v10, %v1258_v34  ;;  %v3032_v51 = vpop.permute.xlu1 %3031  ;;  %v3027_v49 = vpop.permute.xlu0 %3026  ;;  %v6912_v38 = vadd.f32 %v6828_v55, %v1942_v41  ;;  %v5524_v34 = vld [vmem:[%s5628_s16 + $0x290] sm:$0xff]  }
 0x151   : > { %4324 = vst.msk [vmem:[%s6285_s6 + $0x18c] sm:$0xf] %vm4224_vm3, %v4905_v31  ;;  %4323 = vst.msk [vmem:[%s6285_s6 + $0x188] sm:$0xf] %vm4224_vm3, %v4904_v29  ;;  %v3475_v0 = vmul.f32 %v3032_v51, %v2285_v23  ;;  %v3474_v48 = vmul.f32 %v3027_v49, %v2284_v25  ;;  %v5131_v20 = vpop.f32.mrf.mxu0  ;;  %v5303_v35 = vpop.f32.mrf.mxu1  ;;  %3341 = vperm.xlu1 %5439, %v2517_v1   ;;  %v1943_v15 = vmul.f32 %v6805_v10, %v6690_v58  ;;  %v2521_v31 = vld [vmem:[%s7585_s4 + $0x538] sm:$0xff]  ;;  %v2520_v29 = vld [vmem:[%s7585_s4 + $0x530] sm:$0xff] }
 0x152   : > { %3336 = vperm.xlu0 %5438, %v2516_v32   ;;  %4250 = vst.msk [vmem:[%s6285_s6 + $0x64] sm:$0xf] %vm4224_vm3, %v4831_v33  ;;  %v3400_v26 = vmul.f32 %v6108_v43, %v2210_v47  ;;  %v2041_v62 = vadd.f32 %v6828_v55, %v1864_v9  ;;  %5229 = vmatmul.mubr.msk.bf16.gmra.mxu0 %vm857_vm2, %v5521_v5  ;;  %v2286_v37 = vmax.f32 %v2116_v39, 0.0  ;;  %v2287_v41 = vmax.f32 %v2117_v16, 0.0 }
 0x153   : > { %5401 = vmatmul.mubr.msk.bf16.gmra.mxu1 %vm857_vm2, %v5522_v7  ;;  %v1944_v58 = vmul.f32 %v6805_v10, %v6715_v18  ;;  %v4907_v43 = vpack.c.bf16 %v3475_v0, %v3475_v0  ;;  %v4906_v57 = vpack.c.bf16 %v3474_v48, %v3474_v48  ;;  %v1263_v4 = vpop.f32.mrf.mxu0  ;;  %v6934_v19 = vpop.f32.mrf.mxu1  ;;  %5232 = vmatprep.mubr.msk.bf16.mxu0 %vm5546_vm1, %v7598_v13  ;;  %v2288_v16 = vmax.f32 %v6908_v52, 0.0 }
 0x154   : > { %5404 = vmatprep.mubr.msk.bf16.mxu1 %vm5546_vm1, %v7598_v13  ;;  %v1945_v46 = vmul.f32 %v6805_v10, %v6744_v8  ;;  %v4832_v45 = vpack.c.bf16 %v3400_v26, %v3400_v26  ;;  %v2211_v18 = vmax.f32 %v2041_v62, 0.0  ;;  %v1865_v60 = vmul.f32 %v6805_v10, %v1263_v4  ;;  %v3042_v36 = vpop.permute.xlu1 %3041  ;;  %v3037_v5 = vpop.permute.xlu0 %3036  ;;  %v5523_v8 = vld [vmem:[%s5628_s16 + $0x138] sm:$0xff]  }
 0x155   : > { %v1946_v39 = vmul.f32 %v6805_v10, %v6774_v42  ;;  %4326 = vst.msk [vmem:[%s6285_s6 + $0x194] sm:$0xf] %vm4224_vm3, %v4907_v43  ;;  %4325 = vst.msk [vmem:[%s6285_s6 + $0x190] sm:$0xf] %vm4224_vm3, %v4906_v57  ;;  %v3477_v28 = vmul.f32 %v3042_v36, %v2287_v41  ;;  %v3476_v63 = vmul.f32 %v3037_v5, %v2286_v37  ;;  %v5134_v25 = vpop.f32.mrf.mxu0  ;;  %v5306_v1 = vpop.f32.mrf.mxu1  ;;  %3351 = vperm.xlu1 %5439, %v2519_v54   ;;  %v2523_v57 = vld [vmem:[%s7585_s4 + $0x548] sm:$0xff] }
 0x156   : > { %3346 = vperm.xlu0 %5438, %v2518_v61   ;;  %v2120_v32 = vadd.f32 %v6828_v55, %v1943_v15  ;;  %4251 = vst.msk [vmem:[%s6285_s6 + $0x68] sm:$0xf] %vm4224_vm3, %v4832_v45  ;;  %v3401_v7 = vmul.f32 %v6106_v40, %v2211_v18  ;;  %v2042_v42 = vadd.f32 %v6828_v55, %v1865_v60  ;;  %v2289_v52 = vmax.f32 %v6912_v38, 0.0 }
 0x157   : > { %v2121_v23 = vadd.f32 %v6828_v55, %v1944_v58  ;;  %v4909_v33 = vpack.c.bf16 %v3477_v28, %v3477_v28  ;;  %v4908_v47 = vpack.c.bf16 %v3476_v63, %v3476_v63  ;;  %v1266_v40 = vpop.f32.mrf.mxu0  ;;  %v6964_v9 = vpop.f32.mrf.mxu1  ;;  %v6968_v51 = vadd.f32 %v6828_v55, %v1945_v46 }
 0x158   : > { %v4833_v49 = vpack.c.bf16 %v3401_v7, %v3401_v7  ;;  %v2212_v0 = vmax.f32 %v2042_v42, 0.0  ;;  %v1866_v48 = vmul.f32 %v6805_v10, %v1266_v40  ;;  %v3052_v20 = vpop.permute.xlu1 %3051  ;;  %v3047_v35 = vpop.permute.xlu0 %3046  ;;  %v6972_v15 = vadd.f32 %v6828_v55, %v1946_v39 }
 0x159   : > { %4328 = vst.msk [vmem:[%s6285_s6 + $0x19c] sm:$0xf] %vm4224_vm3, %v4909_v33  ;;  %4327 = vst.msk [vmem:[%s6285_s6 + $0x198] sm:$0xf] %vm4224_vm3, %v4908_v47  ;;  %v3479_v26 = vmul.f32 %v3052_v20, %v2289_v52  ;;  %v3478_v62 = vmul.f32 %v3047_v35, %v2288_v16  ;;  %v5135_v38 = vpop.f32.mrf.mxu0  ;;  %v5307_v37 = vpop.f32.mrf.mxu1  ;;  %3361 = vperm.xlu1 %5439, %v2521_v31   ;;  %v1947_v54 = vmul.f32 %v6805_v10, %v6809_v17  ;;  %v2522_v17 = vld [vmem:[%s7585_s4 + $0x540] sm:$0xff] }
 0x15a   : > { %3356 = vperm.xlu0 %5438, %v2520_v29   ;;  %4252 = vst.msk [vmem:[%s6285_s6 + $0x6c] sm:$0xf] %vm4224_vm3, %v4833_v49  ;;  %v3402_v61 = vmul.f32 %v6120_v53, %v2212_v0  ;;  %v2043_v58 = vadd.f32 %v6828_v55, %v1866_v48  ;;  %5233 = vmatmul.mubr.msk.bf16.gmra.mxu0 %vm857_vm2, %v5523_v8  ;;  %v2290_v43 = vmax.f32 %v2120_v32, 0.0  ;;  %v2291_v18 = vmax.f32 %v2121_v23, 0.0  ;;  %v5525_v31 = vld [vmem:[%s5628_s16 + $0x140] sm:$0xff]   ;;  %v5526_v29 = vld [vmem:[%s5628_s16 + $0x298] sm:$0xff]  }
 0x15b   : > { %5405 = vmatmul.mubr.msk.bf16.gmra.mxu1 %vm857_vm2, %v5524_v34  ;;  %v1948_v53 = vmul.f32 %v6805_v10, %v6844_v14  ;;  %v4911_v4 = vpack.c.bf16 %v3479_v26, %v3479_v26  ;;  %v4910_v41 = vpack.c.bf16 %v3478_v62, %v3478_v62  ;;  %v1271_v46 = vpop.f32.mrf.mxu0  ;;  %v6994_v45 = vpop.f32.mrf.mxu1  ;;  %5236 = vmatprep.mubr.msk.bf16.mxu0 %vm5546_vm1, %v7598_v13  ;;  %v2292_v32 = vmax.f32 %v6968_v51, 0.0 }
 0x15c   : > { %5408 = vmatprep.mubr.msk.bf16.mxu1 %vm5546_vm1, %v7598_v13  ;;  %v4834_v60 = vpack.c.bf16 %v3402_v61, %v3402_v61  ;;  %v2213_v36 = vmax.f32 %v2043_v58, 0.0  ;;  %v1867_v5 = vmul.f32 %v6805_v10, %v1271_v46  ;;  %v3062_v39 = vpop.permute.xlu1 %3061  ;;  %v3057_v28 = vpop.permute.xlu0 %3056  ;;  %v1949_v14 = vmul.f32 %v6805_v10, %v6874_v24 }
 0x15d   : > { %4330 = vst.msk [vmem:[%s6285_s6 + $0x1a4] sm:$0xf] %vm4224_vm3, %v4911_v4  ;;  %4329 = vst.msk [vmem:[%s6285_s6 + $0x1a0] sm:$0xf] %vm4224_vm3, %v4910_v41  ;;  %v3481_v63 = vmul.f32 %v3062_v39, %v2291_v18  ;;  %v3480_v25 = vmul.f32 %v3057_v28, %v2290_v43  ;;  %v5138_v1 = vpop.f32.mrf.mxu0  ;;  %v5310_v8 = vpop.f32.mrf.mxu1  ;;  %3371 = vperm.xlu1 %5439, %v2523_v57   ;;  %v2124_v7 = vadd.f32 %v6828_v55, %v1947_v54 }
 0x15e   : > { %3366 = vperm.xlu0 %5438, %v2522_v17   ;;  %4253 = vst.msk [vmem:[%s6285_s6 + $0x70] sm:$0xf] %vm4224_vm3, %v4834_v60  ;;  %v3403_v42 = vmul.f32 %v6118_v50, %v2213_v36  ;;  %v2044_v24 = vadd.f32 %v6828_v55, %v1867_v5  ;;  %v2293_v16 = vmax.f32 %v6972_v15, 0.0  ;;  %v2125_v34 = vadd.f32 %v6828_v55, %v1948_v53  ;;  %v5528_v8 = vld [vmem:[%s5628_s16 + $0x2a0] sm:$0xff]  }
 0x15f   : > { %v1950_v23 = vmul.f32 %v6805_v10, %v6904_v3  ;;  %v4913_v33 = vpack.c.bf16 %v3481_v63, %v3481_v63  ;;  %v4912_v47 = vpack.c.bf16 %v3480_v25, %v3480_v25  ;;  %v1274_v40 = vpop.f32.mrf.mxu0  ;;  %v1618_v52 = vpop.f32.mrf.mxu1  ;;  %v2126_v20 = vadd.f32 %v6828_v55, %v1949_v14 }
 0x160   : > { %v4835_v51 = vpack.c.bf16 %v3403_v42, %v3403_v42  ;;  %v2214_v50 = vmax.f32 %v2044_v24, 0.0  ;;  %v1868_v49 = vmul.f32 %v6805_v10, %v1274_v40  ;;  %v3072_v0 = vpop.permute.xlu1 %3071  ;;  %v3067_v48 = vpop.permute.xlu0 %3066  ;;  %v1951_v35 = vmul.f32 %v6805_v10, %v6934_v19 }
 0x161   : > { %4332 = vst.msk [vmem:[%s6285_s6 + $0x1ac] sm:$0xf] %vm4224_vm3, %v4913_v33  ;;  %4331 = vst.msk [vmem:[%s6285_s6 + $0x1a8] sm:$0xf] %vm4224_vm3, %v4912_v47  ;;  %v3483_v3 = vmul.f32 %v3072_v0, %v2293_v16  ;;  %v3482_v15 = vmul.f32 %v3067_v48, %v2292_v32  ;;  %v5139_v26 = vpop.f32.mrf.mxu0  ;;  %v5311_v62 = vpop.f32.mrf.mxu1  ;;  %v1952_v38 = vmul.f32 %v6805_v10, %v6964_v9  ;;  %v2294_v19 = vmax.f32 %v2124_v7, 0.0 }
 0x162   : > { %4254 = vst.msk [vmem:[%s6285_s6 + $0x74] sm:$0xf] %vm4224_vm3, %v4835_v51  ;;  %v3404_v37 = vmul.f32 %v6136_v59, %v2214_v50  ;;  %v2045_v54 = vadd.f32 %v6828_v55, %v1868_v49  ;;  %5237 = vmatmul.mubr.msk.bf16.gmra.mxu0 %vm857_vm2, %v5525_v31  ;;  %v2127_v61 = vadd.f32 %v6828_v55, %v1950_v23  ;;  %v2295_v53 = vmax.f32 %v2125_v34, 0.0 }
 0x163   : > { %5409 = vmatmul.mubr.msk.bf16.gmra.mxu1 %vm857_vm2, %v5526_v29  ;;  %v4915_v58 = vpack.c.bf16 %v3483_v3, %v3483_v3  ;;  %v4914_v43 = vpack.c.bf16 %v3482_v15, %v3482_v15  ;;  %v1279_v57 = vpop.f32.mrf.mxu0  ;;  %v1623_v17 = vpop.f32.mrf.mxu1  ;;  %5240 = vmatprep.mubr.msk.bf16.mxu0 %vm5546_vm1, %v7598_v13  ;;  %v2128_v18 = vadd.f32 %v6828_v55, %v1951_v35  ;;  %v2296_v31 = vmax.f32 %v2126_v20, 0.0 }
 0x164   : > { %5412 = vmatprep.mubr.msk.bf16.mxu1 %vm5546_vm1, %v7598_v13  ;;  %v4836_v59 = vpack.c.bf16 %v3404_v37, %v3404_v37  ;;  %v2215_v9 = vmax.f32 %v2045_v54, 0.0  ;;  %v1869_v4 = vmul.f32 %v6805_v10, %v1279_v57  ;;  %v3082_v41 = vpop.permute.xlu1 %3081  ;;  %v3077_v46 = vpop.permute.xlu0 %3076  ;;  %v1953_v60 = vmul.f32 %v6805_v10, %v6994_v45  ;;  %v5527_v45 = vld [vmem:[%s5628_s16 + $0x148] sm:$0xff]  }
 0x165   : > { %4334 = vst.msk [vmem:[%s6285_s6 + $0x1b4] sm:$0xf] %vm4224_vm3, %v4915_v58  ;;  %4333 = vst.msk [vmem:[%s6285_s6 + $0x1b0] sm:$0xf] %vm4224_vm3, %v4914_v43  ;;  %v3485_v36 = vmul.f32 %v3082_v41, %v2295_v53  ;;  %v3484_v5 = vmul.f32 %v3077_v46, %v2294_v19  ;;  %v5142_v39 = vpop.f32.mrf.mxu0  ;;  %v5314_v28 = vpop.f32.mrf.mxu1  ;;  %v2129_v14 = vadd.f32 %v6828_v55, %v1952_v38  ;;  %v2297_v16 = vmax.f32 %v2127_v61, 0.0  ;;  %v5529_v46 = vld [vmem:[%s5628_s16 + $0x150] sm:$0xff]  }
 0x166   : > { %4255 = vst.msk [vmem:[%s6285_s6 + $0x78] sm:$0xf] %vm4224_vm3, %v4836_v59  ;;  %v3405_v63 = vmul.f32 %v6134_v56, %v2215_v9  ;;  %v1954_v25 = vmul.f32 %v6805_v10, %v1618_v52  ;;  %v2046_v1 = vadd.f32 %v6828_v55, %v1869_v4  ;;  %v2130_v47 = vadd.f32 %v6828_v55, %v1953_v60 }
 0x167   : > { %v4917_v32 = vpack.c.bf16 %v3485_v36, %v3485_v36  ;;  %v4916_v7 = vpack.c.bf16 %v3484_v5, %v3484_v5  ;;  %v1282_v42 = vpop.f32.mrf.mxu0  ;;  %v1626_v24 = vpop.f32.mrf.mxu1  ;;  %v2298_v49 = vmax.f32 %v2128_v18, 0.0  ;;  %v2299_v35 = vmax.f32 %v2129_v14, 0.0 }
 0x168   : > { %v4837_v29 = vpack.c.bf16 %v3405_v63, %v3405_v63  ;;  %v2216_v34 = vmax.f32 %v2046_v1, 0.0  ;;  %v1870_v23 = vmul.f32 %v6805_v10, %v1282_v42  ;;  %v3092_v56 = vpop.permute.xlu1 %3091  ;;  %v3087_v33 = vpop.permute.xlu0 %3086  ;;  %v2131_v0 = vadd.f32 %v6828_v55, %v1954_v25 }
 0x169   : > { %4336 = vst.msk [vmem:[%s6285_s6 + $0x1bc] sm:$0xf] %vm4224_vm3, %v4917_v32  ;;  %4335 = vst.msk [vmem:[%s6285_s6 + $0x1b8] sm:$0xf] %vm4224_vm3, %v4916_v7  ;;  %v3487_v40 = vmul.f32 %v3092_v56, %v2297_v16  ;;  %v3486_v52 = vmul.f32 %v3087_v33, %v2296_v31  ;;  %v5143_v51 = vpop.f32.mrf.mxu0  ;;  %v5315_v50 = vpop.f32.mrf.mxu1  ;;  %v1955_v3 = vmul.f32 %v6805_v10, %v1623_v17  ;;  %v2300_v41 = vmax.f32 %v2130_v47, 0.0 }
 0x16a   : > { %4256 = vst.msk [vmem:[%s6285_s6 + $0x7c] sm:$0xf] %vm4224_vm3, %v4837_v29  ;;  %v3406_v48 = vmul.f32 %v6148_v6, %v2216_v34  ;;  %v2047_v20 = vadd.f32 %v6828_v55, %v1870_v23  ;;  %5241 = vmatmul.mubr.msk.bf16.gmra.mxu0 %vm857_vm2, %v5527_v45  ;;  %v1956_v15 = vmul.f32 %v6805_v10, %v1626_v24  ;;  %v2301_v4 = vmax.f32 %v2131_v0, 0.0 }
 0x16b   : > { %5413 = vmatmul.mubr.msk.bf16.gmra.mxu1 %vm857_vm2, %v5528_v8  ;;  %v4919_v26 = vpack.c.bf16 %v3487_v40, %v3487_v40  ;;  %v4918_v62 = vpack.c.bf16 %v3486_v52, %v3486_v52  ;;  %v1287_v38 = vpop.f32.mrf.mxu0  ;;  %v1631_v37 = vpop.f32.mrf.mxu1  ;;  %5244 = vmatprep.mubr.msk.bf16.mxu0 %vm5546_vm1, %v7598_v13  ;;  %v2132_v18 = vadd.f32 %v6828_v55, %v1955_v3 }
 0x16c   : > { %v4838_v6 = vpack.c.bf16 %v3406_v48, %v3406_v48  ;;  %v2217_v54 = vmax.f32 %v2047_v20, 0.0  ;;  %v1871_v19 = vmul.f32 %v6805_v10, %v1287_v38  ;;  %v3102_v61 = vpop.permute.xlu1 %3101  ;;  %v3097_v58 = vpop.permute.xlu0 %3096  ;;  %v1957_v43 = vmul.f32 %v6805_v10, %v1631_v37 }
 0x16d   : > { %4338 = vst.msk [vmem:[%s6285_s6 + $0x1c4] sm:$0xf] %vm4224_vm3, %v4919_v26  ;;  %4337 = vst.msk [vmem:[%s6285_s6 + $0x1c0] sm:$0xf] %vm4224_vm3, %v4918_v62  ;;  %v3489_v57 = vmul.f32 %v3102_v61, %v2299_v35  ;;  %v3488_v17 = vmul.f32 %v3097_v58, %v2298_v49  ;;  %v5146_v53 = vpop.f32.mrf.mxu0  ;;  %v5318_v59 = vpop.f32.mrf.mxu1  ;;  %v2133_v60 = vadd.f32 %v6828_v55, %v1956_v15  ;;  %v2302_v40 = vmax.f32 %v2132_v18, 0.0 }
 0x16e   : > { %4257 = vst.msk [vmem:[%s6285_s6 + $0x80] sm:$0xf] %vm4224_vm3, %v4838_v6  ;;  %v3407_v13 = vmul.f32 %v6146_v2, %v2217_v54  ;;  %v2048_v9 = vadd.f32 %v6828_v55, %v1871_v19  ;;  %v2134_v8 = vadd.f32 %v6828_v55, %v1957_v43 }
 0x16f   : > { %v4921_v36 = vpack.c.bf16 %v3489_v57, %v3489_v57  ;;  %v4920_v5 = vpack.c.bf16 %v3488_v17, %v3488_v17  ;;  %v1290_v39 = vpop.f32.mrf.mxu0  ;;  %v1634_v28 = vpop.f32.mrf.mxu1  ;;  %v2303_v47 = vmax.f32 %v2133_v60, 0.0 }
 0x170   : > { %v4839_v14 = vpack.c.bf16 %v3407_v13, %v3407_v13  ;;  %v2218_v63 = vmax.f32 %v2048_v9, 0.0  ;;  %v1872_v2 = vmul.f32 %v6805_v10, %v1290_v39  ;;  %v1958_v25 = vmul.f32 %v6805_v10, %v1634_v28  ;;  %v3112_v1 = vpop.permute.xlu1 %3111  ;;  %v3107_v45 = vpop.permute.xlu0 %3106 }
 0x171   : > { %4340 = vst.msk [vmem:[%s6285_s6 + $0x1cc] sm:$0xf] %vm4224_vm3, %v4921_v36  ;;  %4339 = vst.msk [vmem:[%s6285_s6 + $0x1c8] sm:$0xf] %vm4224_vm3, %v4920_v5  ;;  %v3491_v32 = vmul.f32 %v3112_v1, %v2301_v4  ;;  %v3490_v7 = vmul.f32 %v3107_v45, %v2300_v41  ;;  %v5147_v42 = vpop.f32.mrf.mxu0  ;;  %v5319_v24 = vpop.f32.mrf.mxu1  ;;  %v2304_v26 = vmax.f32 %v2134_v8, 0.0 }
 0x172   : > { %4258 = vst.msk [vmem:[%s6285_s6 + $0x84] sm:$0xf] %vm4224_vm3, %v4839_v14  ;;  %v3408_v16 = vmul.f32 %v6164_v12, %v2218_v63  ;;  %v2049_v31 = vadd.f32 %v6828_v55, %v1872_v2  ;;  %v2135_v29 = vadd.f32 %v6828_v55, %v1958_v25  ;;  %5245 = vmatmul.mubr.msk.bf16.gmra.mxu0 %vm857_vm2, %v5529_v46 }
 0x173   : > { %v4923_v34 = vpack.c.bf16 %v3491_v32, %v3491_v32  ;;  %v4922_v23 = vpack.c.bf16 %v3490_v7, %v3490_v7  ;;  %v1295_v56 = vpop.f32.mrf.mxu0  ;;  %v1639_v33 = vpop.f32.mrf.mxu1 }
 0x174   : > { %v4840_v52 = vpack.c.bf16 %v3408_v16, %v3408_v16  ;;  %v2219_v51 = vmax.f32 %v2049_v31, 0.0  ;;  %v1873_v50 = vmul.f32 %v6805_v10, %v1295_v56  ;;  %v1959_v12 = vmul.f32 %v6805_v10, %v1639_v33  ;;  %v3122_v49 = vpop.permute.xlu1 %3121  ;;  %v3117_v0 = vpop.permute.xlu0 %3116 }
 0x175   : > { %4342 = vst.msk [vmem:[%s6285_s6 + $0x1d4] sm:$0xf] %vm4224_vm3, %v4923_v34  ;;  %4341 = vst.msk [vmem:[%s6285_s6 + $0x1d0] sm:$0xf] %vm4224_vm3, %v4922_v23  ;;  %v3493_v48 = vmul.f32 %v3122_v49, %v2303_v47  ;;  %v3492_v20 = vmul.f32 %v3117_v0, %v2302_v40  ;;  %v5150_v35 = vpop.f32.mrf.mxu0  ;;  %v5322_v3 = vpop.f32.mrf.mxu1  ;;  %v2305_v15 = vmax.f32 %v2135_v29, 0.0 }
 0x176   : > { %4259 = vst.msk [vmem:[%s6285_s6 + $0x88] sm:$0xf] %vm4224_vm3, %v4840_v52  ;;  %v3409_v62 = vmul.f32 %v6162_v11, %v2219_v51  ;;  %v2050_v38 = vadd.f32 %v6828_v55, %v1873_v50  ;;  %v2136_v37 = vadd.f32 %v6828_v55, %v1959_v12 }
 0x177   : > { %v4925_v6 = vpack.c.bf16 %v3493_v48, %v3493_v48  ;;  %v4924_v54 = vpack.c.bf16 %v3492_v20, %v3492_v20  ;;  %v1298_v19 = vpop.f32.mrf.mxu0  ;;  %v1642_v61 = vpop.f32.mrf.mxu1 }
 0x178   : > { %v4841_v58 = vpack.c.bf16 %v3409_v62, %v3409_v62  ;;  %v2220_v43 = vmax.f32 %v2050_v38, 0.0  ;;  %v1874_v57 = vmul.f32 %v6805_v10, %v1298_v19  ;;  %v1960_v17 = vmul.f32 %v6805_v10, %v1642_v61  ;;  %v3132_v53 = vpop.permute.xlu1 %3131  ;;  %v3127_v59 = vpop.permute.xlu0 %3126 }
 0x179   : > { %4344 = vst.msk [vmem:[%s6285_s6 + $0x1dc] sm:$0xf] %vm4224_vm3, %v4925_v6  ;;  %4343 = vst.msk [vmem:[%s6285_s6 + $0x1d8] sm:$0xf] %vm4224_vm3, %v4924_v54  ;;  %v3495_v11 = vmul.f32 %v3132_v53, %v2305_v15  ;;  %v3494_v13 = vmul.f32 %v3127_v59, %v2304_v26  ;;  %v5151_v9 = vpop.f32.mrf.mxu0  ;;  %v5323_v4 = vpop.f32.mrf.mxu1  ;;  %v2306_v41 = vmax.f32 %v2136_v37, 0.0 }
 0x17a   : > { %4260 = vst.msk [vmem:[%s6285_s6 + $0x8c] sm:$0xf] %vm4224_vm3, %v4841_v58  ;;  %v3410_v46 = vmul.f32 %v6176_v22, %v2220_v43  ;;  %v2051_v18 = vadd.f32 %v6828_v55, %v1874_v57  ;;  %v2137_v60 = vadd.f32 %v6828_v55, %v1960_v17 }
 0x17b   : > { %v4927_v36 = vpack.c.bf16 %v3495_v11, %v3495_v11  ;;  %v4926_v5 = vpack.c.bf16 %v3494_v13, %v3494_v13  ;;  %v1303_v39 = vpop.f32.mrf.mxu0  ;;  %v1647_v28 = vpop.f32.mrf.mxu1 }
 0x17c   : > { %v4842_v14 = vpack.c.bf16 %v3410_v46, %v3410_v46  ;;  %v2221_v63 = vmax.f32 %v2051_v18, 0.0  ;;  %v1875_v2 = vmul.f32 %v6805_v10, %v1303_v39  ;;  %v1961_v25 = vmul.f32 %v6805_v10, %v1647_v28  ;;  %v3142_v1 = vpop.permute.xlu1 %3141  ;;  %v3137_v45 = vpop.permute.xlu0 %3136 }
 0x17d   : > { %4346 = vst.msk [vmem:[%s6285_s6 + $0x1e4] sm:$0xf] %vm4224_vm3, %v4927_v36  ;;  %4345 = vst.msk [vmem:[%s6285_s6 + $0x1e0] sm:$0xf] %vm4224_vm3, %v4926_v5  ;;  %v2307_v22 = vmax.f32 %v2137_v60, 0.0  ;;  %v3496_v8 = vmul.f32 %v3137_v45, %v2306_v41  ;;  %v5154_v32 = vpop.f32.mrf.mxu0  ;;  %v5326_v7 = vpop.f32.mrf.mxu1 }
 0x17e   : > { %4261 = vst.msk [vmem:[%s6285_s6 + $0x90] sm:$0xf] %vm4224_vm3, %v4842_v14  ;;  %v3411_v42 = vmul.f32 %v6174_v21, %v2221_v63  ;;  %v2052_v24 = vadd.f32 %v6828_v55, %v1875_v2  ;;  %v2138_v16 = vadd.f32 %v6828_v55, %v1961_v25  ;;  %v7635_v7 = vld [vmem:[#allocation2_spill] sm:$0xff] }
 0x17f   : > { %v3497_v31 = vmul.f32 %v3142_v1, %v2307_v22  ;;  %v4928_v29 = vpack.c.bf16 %v3496_v8, %v3496_v8  ;;  %v1306_v34 = vpop.f32.mrf.mxu0  ;;  %v1650_v23 = vpop.f32.mrf.mxu1 }
 0x180   : > { %v4843_v56 = vpack.c.bf16 %v3411_v42, %v3411_v42  ;;  %v2222_v33 = vmax.f32 %v2052_v24, 0.0  ;;  %v1876_v47 = vmul.f32 %v6805_v10, %v1306_v34  ;;  %v1962_v40 = vmul.f32 %v6805_v10, %v1650_v23  ;;  %v3147_v52 = vpop.permute.xlu0 %3146  ;;  %v3152_v62 = vpop.permute.xlu1 %3151 }
 0x181   : > { %v4929_v51 = vpack.c.bf16 %v3497_v31, %v3497_v31  ;;  %4347 = vst.msk [vmem:[%s6285_s6 + $0x1e8] sm:$0xf] %vm4224_vm3, %v4928_v29  ;;  %v2308_v21 = vmax.f32 %v2138_v16, 0.0  ;;  %v5155_v50 = vpop.f32.mrf.mxu0  ;;  %v5327_v12 = vpop.f32.mrf.mxu1 }
 0x182   : > { %4262 = vst.msk [vmem:[%s6285_s6 + $0x94] sm:$0xf] %vm4224_vm3, %v4843_v56  ;;  %v3412_v49 = vmul.f32 %v6192_v30, %v2222_v33  ;;  %v2053_v0 = vadd.f32 %v6828_v55, %v1876_v47  ;;  %v2139_v48 = vadd.f32 %v6828_v55, %v1962_v40  ;;  %v7636_v12 = vld [vmem:[#allocation4_spill] sm:$0xff] }
 0x183   : > { %4348 = vst.msk [vmem:[%s6285_s6 + $0x1ec] sm:$0xf] %vm4224_vm3, %v4929_v51  ;;  %v3498_v20 = vmul.f32 %v3147_v52, %v2308_v21  ;;  %v1311_v35 = vpop.f32.mrf.mxu0  ;;  %v1655_v3 = vpop.f32.mrf.mxu1 }
 0x184   : > { %v4844_v15 = vpack.c.bf16 %v3412_v49, %v3412_v49  ;;  %v2223_v26 = vmax.f32 %v2053_v0, 0.0  ;;  %v2309_v38 = vmax.f32 %v2139_v48, 0.0  ;;  %v1877_v37 = vmul.f32 %v6805_v10, %v1311_v35  ;;  %v3157_v60 = vpop.permute.xlu0 %3156 }
 0x185   : > { %v4930_v6 = vpack.c.bf16 %v3498_v20, %v3498_v20  ;;  %v1963_v30 = vmul.f32 %v6805_v10, %v1655_v3  ;;  %v5158_v54 = vpop.f32.mrf.mxu0  ;;  %v5330_v19 = vpop.f32.mrf.mxu1 }
 0x186   : > { %4263 = vst.msk [vmem:[%s6285_s6 + $0x98] sm:$0xf] %vm4224_vm3, %v4844_v15  ;;  %v3413_v61 = vmul.f32 %v6190_v27, %v2223_v26  ;;  %v3499_v58 = vmul.f32 %v3152_v62, %v2309_v38  ;;  %v2054_v43 = vadd.f32 %v6828_v55, %v1877_v37 }
 0x187   : > { %4349 = vst.msk [vmem:[%s6285_s6 + $0x1f0] sm:$0xf] %vm4224_vm3, %v4930_v6  ;;  %v2140_v57 = vadd.f32 %v6828_v55, %v1963_v30  ;;  %v1314_v17 = vpop.f32.mrf.mxu0  ;;  %v1658_v53 = vpop.f32.mrf.mxu1 }
 0x188   : > { %v4845_v59 = vpack.c.bf16 %v3413_v61, %v3413_v61  ;;  %v4931_v11 = vpack.c.bf16 %v3499_v58, %v3499_v58  ;;  %v2224_v13 = vmax.f32 %v2054_v43, 0.0  ;;  %v1878_v9 = vmul.f32 %v6805_v10, %v1314_v17  ;;  %v3167_v56 = vpop.permute.xlu0 %3166  ;;  %v7637_v61 = vld [vmem:[#allocation3_spill] sm:$0xff] }
 0x189   : > { %v2310_v4 = vmax.f32 %v2140_v57, 0.0  ;;  %v1964_v41 = vmul.f32 %v6805_v10, %v1658_v53  ;;  %v5159_v46 = vpop.f32.mrf.mxu0  ;;  %v5331_v27 = vpop.f32.mrf.mxu1 }
 0x18a   : > { %4264 = vst.msk [vmem:[%s6285_s6 + $0x9c] sm:$0xf] %vm4224_vm3, %v4845_v59  ;;  %4350 = vst.msk [vmem:[%s6285_s6 + $0x1f4] sm:$0xf] %vm4224_vm3, %v4931_v11  ;;  %v3414_v18 = vmul.f32 %v6204_v44, %v2224_v13  ;;  %v2055_v36 = vadd.f32 %v6828_v55, %v1878_v9  ;;  %v3162_v44 = vpop.permute.xlu1 %3161  ;;  %v7191_v13 = vld [vmem:[%s7583_s2] ss:$0 sm:$0xff] }
 0x18b   : > { %v3500_v5 = vmul.f32 %v3157_v60, %v2310_v4  ;;  %v2141_v39 = vadd.f32 %v6828_v55, %v1964_v41  ;;  %v1319_v28 = vpop.f32.mrf.mxu0  ;;  %v1663_v14 = vpop.f32.mrf.mxu1 }
 0x18c   : > { %v4846_v63 = vpack.c.bf16 %v3414_v18, %v3414_v18  ;;  %v2225_v2 = vmax.f32 %v2055_v36, 0.0  ;;  %v1879_v25 = vmul.f32 %v6805_v10, %v1319_v28  ;;  %v1965_v1 = vmul.f32 %v6805_v10, %v1663_v14  ;;  %v3177_v60 = vpop.permute.xlu0 %3176  ;;  %v7638_v36 = vld [vmem:[#allocation6_spill] sm:$0xff] }
 0x18d   : > { %v4932_v45 = vpack.c.bf16 %v3500_v5, %v3500_v5  ;;  %v2311_v22 = vmax.f32 %v2141_v39, 0.0  ;;  %v5162_v8 = vpop.f32.mrf.mxu0  ;;  %v5334_v32 = vpop.f32.mrf.mxu1 }
 0x18e   : > { %4265 = vst.msk [vmem:[%s6285_s6 + $0xa0] sm:$0xf] %vm4224_vm3, %v4846_v63  ;;  %v3415_v42 = vmul.f32 %v7635_v7, %v2225_v2  ;;  %v2056_v24 = vadd.f32 %v6828_v55, %v1879_v25  ;;  %v2142_v16 = vadd.f32 %v6828_v55, %v1965_v1  ;;  %v3172_v19 = vpop.permute.xlu1 %3171 }
 0x18f   : > { %4351 = vst.msk [vmem:[%s6285_s6 + $0x1f8] sm:$0xf] %vm4224_vm3, %v4932_v45  ;;  %v3501_v31 = vmul.f32 %v3162_v44, %v2311_v22  ;;  %v1322_v29 = vpop.f32.mrf.mxu0  ;;  %v1666_v34 = vpop.f32.mrf.mxu1 }
 0x190   : > { %v4847_v23 = vpack.c.bf16 %v3415_v42, %v3415_v42  ;;  %v2226_v33 = vmax.f32 %v2056_v24, 0.0  ;;  %v2312_v47 = vmax.f32 %v2142_v16, 0.0  ;;  %v1880_v40 = vmul.f32 %v6805_v10, %v1322_v29 }
 0x191   : > { %v4933_v52 = vpack.c.bf16 %v3501_v31, %v3501_v31  ;;  %v1966_v51 = vmul.f32 %v6805_v10, %v1666_v34  ;;  %v5163_v21 = vpop.f32.mrf.mxu0  ;;  %v5335_v50 = vpop.f32.mrf.mxu1  ;;  %v7210_v31 = vld [vmem:[%s7584_s3] ss:$0 sm:$0xff] }
 0x192   : > { %4266 = vst.msk [vmem:[%s6285_s6 + $0xa4] sm:$0xf] %vm4224_vm3, %v4847_v23  ;;  %v3416_v49 = vmul.f32 %v7636_v12, %v2226_v33  ;;  %v3502_v0 = vmul.f32 %v3167_v56, %v2312_v47  ;;  %v2057_v48 = vadd.f32 %v6828_v55, %v1880_v40  ;;  %v3182_v25 = vpop.permute.xlu1 %3181 }
 0x193   : > { %4352 = vst.msk [vmem:[%s6285_s6 + $0x1fc] sm:$0xf] %vm4224_vm3, %v4933_v52  ;;  %v2143_v20 = vadd.f32 %v6828_v55, %v1966_v51  ;;  %v1327_v35 = vpop.f32.mrf.mxu0  ;;  %v1671_v3 = vpop.f32.mrf.mxu1 }
 0x194   : > { %v4848_v15 = vpack.c.bf16 %v3416_v49, %v3416_v49  ;;  %v4934_v26 = vpack.c.bf16 %v3502_v0, %v3502_v0  ;;  %v2227_v62 = vmax.f32 %v2057_v48, 0.0  ;;  %v1881_v38 = vmul.f32 %v6805_v10, %v1327_v35  ;;  %v3187_v49 = vpop.permute.xlu0 %3186  ;;  %v7640_v0 = vld [vmem:[#allocation8_spill] sm:$0xff] }
 0x195   : > { %v2313_v37 = vmax.f32 %v2143_v20, 0.0  ;;  %v1967_v6 = vmul.f32 %v6805_v10, %v1671_v3  ;;  %v5166_v30 = vpop.f32.mrf.mxu0  ;;  %v5338_v54 = vpop.f32.mrf.mxu1 }
 0x196   : > { %4267 = vst.msk [vmem:[%s6285_s6 + $0xa8] sm:$0xf] %vm4224_vm3, %v4848_v15  ;;  %4353 = vst.msk [vmem:[%s6285_s6 + $0x200] sm:$0xf] %vm4224_vm3, %v4934_v26  ;;  %v3417_v58 = vmul.f32 %v7637_v61, %v2227_v62  ;;  %v2058_v43 = vadd.f32 %v6828_v55, %v1881_v38 }
 0x197   : > { %v3503_v57 = vmul.f32 %v3172_v19, %v2313_v37  ;;  %v2144_v17 = vadd.f32 %v6828_v55, %v1967_v6  ;;  %v1330_v53 = vpop.f32.mrf.mxu0  ;;  %v1674_v59 = vpop.f32.mrf.mxu1 }
 0x198   : > { %v4849_v11 = vpack.c.bf16 %v3417_v58, %v3417_v58  ;;  %v2228_v10 = vmax.f32 %v2058_v43, 0.0  ;;  %v1882_v9 = vmul.f32 %v7191_v13, %v1330_v53  ;;  %v1968_v4 = vmul.f32 %v7191_v13, %v1674_v59  ;;  %v3192_v58 = vpop.permute.xlu1 %3191  ;;  %v7641_v43 = vld [vmem:[#allocation7_spill] sm:$0xff] }
 0x199   : > { %v4935_v41 = vpack.c.bf16 %v3503_v57, %v3503_v57  ;;  %v2314_v46 = vmax.f32 %v2144_v17, 0.0  ;;  %v5167_v27 = vpop.f32.mrf.mxu0  ;;  %v5339_v18 = vpop.f32.mrf.mxu1 }
 0x19a   : > { %4268 = vst.msk [vmem:[%s6285_s6 + $0xac] sm:$0xf] %vm4224_vm3, %v4849_v11  ;;  %v3418_v5 = vmul.f32 %v7638_v36, %v2228_v10  ;;  %v2059_v39 = vadd.f32 %v6828_v55, %v1882_v9  ;;  %v2145_v28 = vadd.f32 %v6828_v55, %v1968_v4  ;;  %v7639_v55 = vld [vmem:[#allocation5_spill] sm:$0xff]  ;;  %v3197_v9 = vpop.permute.xlu0 %3196 }
 0x19b   : > { %4354 = vst.msk [vmem:[%s6285_s6 + $0x204] sm:$0xf] %vm4224_vm3, %v4935_v41  ;;  %v3504_v14 = vmul.f32 %v3177_v60, %v2314_v46  ;;  %v1335_v63 = vpop.f32.mrf.mxu0  ;;  %v1679_v2 = vpop.f32.mrf.mxu1 }
 0x19c   : > { %v4850_v1 = vpack.c.bf16 %v3418_v5, %v3418_v5  ;;  %v2229_v45 = vmax.f32 %v2059_v39, 0.0  ;;  %v2315_v22 = vmax.f32 %v2145_v28, 0.0  ;;  %v1883_v8 = vmul.f32 %v7191_v13, %v1335_v63  ;;  %v7642_v39 = vld [vmem:[#allocation10_spill] sm:$0xff] }
 0x19d   : > { %v4936_v32 = vpack.c.bf16 %v3504_v14, %v3504_v14  ;;  %v1969_v44 = vmul.f32 %v7191_v13, %v1679_v2  ;;  %v5170_v7 = vpop.f32.mrf.mxu0  ;;  %v5342_v42 = vpop.f32.mrf.mxu1 }
 0x19e   : > { %4269 = vst.msk [vmem:[%s6285_s6 + $0xb0] sm:$0xf] %vm4224_vm3, %v4850_v1  ;;  %v3419_v24 = vmul.f32 %v7639_v55, %v2229_v45  ;;  %v3505_v16 = vmul.f32 %v3182_v25, %v2315_v22  ;;  %v2060_v29 = vadd.f32 %v7210_v31, %v1883_v8 }
 0x19f   : > { %4355 = vst.msk [vmem:[%s6285_s6 + $0x208] sm:$0xf] %vm4224_vm3, %v4936_v32  ;;  %v2146_v34 = vadd.f32 %v7210_v31, %v1969_v44  ;;  %v1338_v23 = vpop.f32.mrf.mxu0  ;;  %v1682_v56 = vpop.f32.mrf.mxu1 }
 0x1a0   : > { %v4851_v33 = vpack.c.bf16 %v3419_v24, %v3419_v24  ;;  %v4937_v47 = vpack.c.bf16 %v3505_v16, %v3505_v16  ;;  %v2230_v40 = vmax.f32 %v2060_v29, 0.0  ;;  %v1884_v52 = vmul.f32 %v7191_v13, %v1338_v23  ;;  %v3202_v24 = vpop.permute.xlu1 %3201  ;;  %v7643_v16 = vld [vmem:[#allocation9_spill] sm:$0xff] }
 0x1a1   : > { %v2316_v51 = vmax.f32 %v2146_v34, 0.0  ;;  %v1970_v21 = vmul.f32 %v7191_v13, %v1682_v56  ;;  %v5171_v50 = vpop.f32.mrf.mxu0  ;;  %v5343_v12 = vpop.f32.mrf.mxu1 }
 0x1a2   : > { %4270 = vst.msk [vmem:[%s6285_s6 + $0xb4] sm:$0xf] %vm4224_vm3, %v4851_v33  ;;  %4356 = vst.msk [vmem:[%s6285_s6 + $0x20c] sm:$0xf] %vm4224_vm3, %v4937_v47  ;;  %v3420_v48 = vmul.f32 %v7640_v0, %v2230_v40  ;;  %v2061_v20 = vadd.f32 %v7210_v31, %v1884_v52 }
 0x1a3   : > { %v3506_v35 = vmul.f32 %v3187_v49, %v2316_v51  ;;  %v2147_v3 = vadd.f32 %v7210_v31, %v1970_v21  ;;  %v1343_v15 = vpop.f32.mrf.mxu0  ;;  %v1687_v26 = vpop.f32.mrf.mxu1 }
 0x1a4   : > { %v4852_v62 = vpack.c.bf16 %v3420_v48, %v3420_v48  ;;  %v2231_v38 = vmax.f32 %v2061_v20, 0.0  ;;  %v1885_v37 = vmul.f32 %v7191_v13, %v1343_v15  ;;  %v1971_v6 = vmul.f32 %v7191_v13, %v1687_v26  ;;  %v3207_v48 = vpop.permute.xlu0 %3206  ;;  %v7644_v20 = vld [vmem:[#allocation12_spill] sm:$0xff] }
 0x1a5   : > { %v4938_v30 = vpack.c.bf16 %v3506_v35, %v3506_v35  ;;  %v2317_v54 = vmax.f32 %v2147_v3, 0.0  ;;  %v5174_v19 = vpop.f32.mrf.mxu0  ;;  %v5346_v61 = vpop.f32.mrf.mxu1 }
 0x1a6   : > { %4271 = vst.msk [vmem:[%s6285_s6 + $0xb8] sm:$0xf] %vm4224_vm3, %v4852_v62  ;;  %v3421_v57 = vmul.f32 %v7641_v43, %v2231_v38  ;;  %v2062_v17 = vadd.f32 %v7210_v31, %v1885_v37  ;;  %v2148_v53 = vadd.f32 %v7210_v31, %v1971_v6  ;;  %v3212_v37 = vpop.permute.xlu1 %3211 }
 0x1a7   : > { %4357 = vst.msk [vmem:[%s6285_s6 + $0x210] sm:$0xf] %vm4224_vm3, %v4938_v30  ;;  %v3507_v59 = vmul.f32 %v3192_v58, %v2317_v54  ;;  %v1346_v11 = vpop.f32.mrf.mxu0  ;;  %v1690_v10 = vpop.f32.mrf.mxu1 }
 0x1a8   : > { %v4853_v4 = vpack.c.bf16 %v3421_v57, %v3421_v57  ;;  %v2232_v41 = vmax.f32 %v2062_v17, 0.0  ;;  %v2318_v46 = vmax.f32 %v2148_v53, 0.0  ;;  %v1886_v27 = vmul.f32 %v7191_v13, %v1346_v11  ;;  %v7645_v17 = vld [vmem:[#allocation11_spill] sm:$0xff] }
 0x1a9   : > { %v4939_v18 = vpack.c.bf16 %v3507_v59, %v3507_v59  ;;  %v1972_v60 = vmul.f32 %v7191_v13, %v1690_v10  ;;  %v5175_v36 = vpop.f32.mrf.mxu0  ;;  %v5347_v5 = vpop.f32.mrf.mxu1 }
 0x1aa   : > { %4272 = vst.msk [vmem:[%s6285_s6 + $0xbc] sm:$0xf] %vm4224_vm3, %v4853_v4  ;;  %v3422_v28 = vmul.f32 %v7642_v39, %v2232_v41  ;;  %v3508_v14 = vmul.f32 %v3197_v9, %v2318_v46  ;;  %v2063_v63 = vadd.f32 %v7210_v31, %v1886_v27 }
 0x1ab   : > { %4358 = vst.msk [vmem:[%s6285_s6 + $0x214] sm:$0xf] %vm4224_vm3, %v4939_v18  ;;  %v2149_v2 = vadd.f32 %v7210_v31, %v1972_v60  ;;  %v1351_v25 = vpop.f32.mrf.mxu0  ;;  %v1695_v1 = vpop.f32.mrf.mxu1 }
 0x1ac   : > { %v4854_v45 = vpack.c.bf16 %v3422_v28, %v3422_v28  ;;  %v4940_v22 = vpack.c.bf16 %v3508_v14, %v3508_v14  ;;  %v2233_v8 = vmax.f32 %v2063_v63, 0.0  ;;  %v1887_v32 = vmul.f32 %v7191_v13, %v1351_v25  ;;  %v3217_v28 = vpop.permute.xlu0 %3216  ;;  %v7646_v14 = vld [vmem:[#allocation14_spill] sm:$0xff] }
 0x1ad   : > { %v2319_v44 = vmax.f32 %v2149_v2, 0.0  ;;  %v1973_v7 = vmul.f32 %v7191_v13, %v1695_v1  ;;  %v5178_v42 = vpop.f32.mrf.mxu0  ;;  %v5350_v55 = vpop.f32.mrf.mxu1 }
 0x1ae   : > { %4273 = vst.msk [vmem:[%s6285_s6 + $0xc0] sm:$0xf] %vm4224_vm3, %v4854_v45  ;;  %4359 = vst.msk [vmem:[%s6285_s6 + $0x218] sm:$0xf] %vm4224_vm3, %v4940_v22  ;;  %v3423_v29 = vmul.f32 %v7643_v16, %v2233_v8  ;;  %v2064_v34 = vadd.f32 %v7210_v31, %v1887_v32 }
 0x1af   : > { %v3509_v23 = vmul.f32 %v3202_v24, %v2319_v44  ;;  %v2150_v56 = vadd.f32 %v7210_v31, %v1973_v7  ;;  %v1354_v33 = vpop.f32.mrf.mxu0  ;;  %v1698_v47 = vpop.f32.mrf.mxu1 }
 0x1b0   : > { %v4855_v40 = vpack.c.bf16 %v3423_v29, %v3423_v29  ;;  %v2234_v52 = vmax.f32 %v2064_v34, 0.0  ;;  %v1888_v51 = vmul.f32 %v7191_v13, %v1354_v33  ;;  %v1974_v21 = vmul.f32 %v7191_v13, %v1698_v47  ;;  %v3222_v29 = vpop.permute.xlu1 %3221  ;;  %v7647_v34 = vld [vmem:[#allocation13_spill] sm:$0xff] }
 0x1b1   : > { %v4941_v50 = vpack.c.bf16 %v3509_v23, %v3509_v23  ;;  %v2320_v12 = vmax.f32 %v2150_v56, 0.0  ;;  %v5179_v49 = vpop.f32.mrf.mxu0  ;;  %v5351_v0 = vpop.f32.mrf.mxu1 }
 0x1b2   : > { %4274 = vst.msk [vmem:[%s6285_s6 + $0xc4] sm:$0xf] %vm4224_vm3, %v4855_v40  ;;  %v3424_v35 = vmul.f32 %v7644_v20, %v2234_v52  ;;  %v2065_v3 = vadd.f32 %v7210_v31, %v1888_v51  ;;  %v2151_v15 = vadd.f32 %v7210_v31, %v1974_v21  ;;  %v3227_v51 = vpop.permute.xlu0 %3226 }
 0x1b3   : > { %4360 = vst.msk [vmem:[%s6285_s6 + $0x21c] sm:$0xf] %vm4224_vm3, %v4941_v50  ;;  %v3510_v26 = vmul.f32 %v3207_v48, %v2320_v12  ;;  %v1359_v62 = vpop.f32.mrf.mxu0  ;;  %v1703_v38 = vpop.f32.mrf.mxu1 }
 0x1b4   : > { %v4856_v6 = vpack.c.bf16 %v3424_v35, %v3424_v35  ;;  %v2235_v30 = vmax.f32 %v2065_v3, 0.0  ;;  %v2321_v54 = vmax.f32 %v2151_v15, 0.0  ;;  %v1889_v19 = vmul.f32 %v7191_v13, %v1359_v62  ;;  %v7648_v3 = vld [vmem:[#allocation16_spill] sm:$0xff] }
 0x1b5   : > { %v4942_v61 = vpack.c.bf16 %v3510_v26, %v3510_v26  ;;  %v1975_v58 = vmul.f32 %v7191_v13, %v1703_v38  ;;  %v5182_v43 = vpop.f32.mrf.mxu0  ;;  %v5354_v57 = vpop.f32.mrf.mxu1 }
 0x1b6   : > { %4275 = vst.msk [vmem:[%s6285_s6 + $0xc8] sm:$0xf] %vm4224_vm3, %v4856_v6  ;;  %v3425_v53 = vmul.f32 %v7645_v17, %v2235_v30  ;;  %v3511_v59 = vmul.f32 %v3212_v37, %v2321_v54  ;;  %v2066_v11 = vadd.f32 %v7210_v31, %v1889_v19 }
 0x1b7   : > { %4361 = vst.msk [vmem:[%s6285_s6 + $0x220] sm:$0xf] %vm4224_vm3, %v4942_v61  ;;  %v2152_v10 = vadd.f32 %v7210_v31, %v1975_v58  ;;  %v1362_v9 = vpop.f32.mrf.mxu0  ;;  %v1706_v4 = vpop.f32.mrf.mxu1 }
 0x1b8   : > { %v4857_v41 = vpack.c.bf16 %v3425_v53, %v3425_v53  ;;  %v4943_v46 = vpack.c.bf16 %v3511_v59, %v3511_v59  ;;  %v2236_v27 = vmax.f32 %v2066_v11, 0.0  ;;  %v1890_v18 = vmul.f32 %v7191_v13, %v1362_v9  ;;  %v3232_v53 = vpop.permute.xlu1 %3231  ;;  %v7649_v59 = vld [vmem:[#allocation15_spill] sm:$0xff] }
 0x1b9   : > { %v2322_v60 = vmax.f32 %v2152_v10, 0.0  ;;  %v1976_v36 = vmul.f32 %v7191_v13, %v1706_v4  ;;  %v5183_v5 = vpop.f32.mrf.mxu0  ;;  %v5355_v39 = vpop.f32.mrf.mxu1 }
 0x1ba   : > { %4276 = vst.msk [vmem:[%s6285_s6 + $0xcc] sm:$0xf] %vm4224_vm3, %v4857_v41  ;;  %4362 = vst.msk [vmem:[%s6285_s6 + $0x224] sm:$0xf] %vm4224_vm3, %v4943_v46  ;;  %v3426_v63 = vmul.f32 %v7646_v14, %v2236_v27  ;;  %v2067_v2 = vadd.f32 %v7210_v31, %v1890_v18 }
 0x1bb   : > { %v3512_v25 = vmul.f32 %v3217_v28, %v2322_v60  ;;  %v2153_v1 = vadd.f32 %v7210_v31, %v1976_v36  ;;  %v1367_v45 = vpop.f32.mrf.mxu0  ;;  %v1711_v22 = vpop.f32.mrf.mxu1 }
 0x1bc   : > { %v4858_v8 = vpack.c.bf16 %v3426_v63, %v3426_v63  ;;  %v2237_v32 = vmax.f32 %v2067_v2, 0.0  ;;  %v1891_v44 = vmul.f32 %v7191_v13, %v1367_v45  ;;  %v1977_v7 = vmul.f32 %v7191_v13, %v1711_v22  ;;  %v3237_v63 = vpop.permute.xlu0 %3236  ;;  %v7650_v2 = vld [vmem:[#allocation18_spill] sm:$0xff] }
 0x1bd   : > { %v4944_v42 = vpack.c.bf16 %v3512_v25, %v3512_v25  ;;  %v2323_v55 = vmax.f32 %v2153_v1, 0.0  ;;  %v5186_v24 = vpop.f32.mrf.mxu0  ;;  %v5358_v16 = vpop.f32.mrf.mxu1 }
 0x1be   : > { %4277 = vst.msk [vmem:[%s6285_s6 + $0xd0] sm:$0xf] %vm4224_vm3, %v4858_v8  ;;  %v3427_v23 = vmul.f32 %v7647_v34, %v2237_v32  ;;  %v2068_v56 = vadd.f32 %v7210_v31, %v1891_v44  ;;  %v2154_v33 = vadd.f32 %v7210_v31, %v1977_v7  ;;  %v3242_v44 = vpop.permute.xlu1 %3241 }
 0x1bf   : > { %4363 = vst.msk [vmem:[%s6285_s6 + $0x228] sm:$0xf] %vm4224_vm3, %v4944_v42  ;;  %v3513_v47 = vmul.f32 %v3222_v29, %v2323_v55  ;;  %v1370_v40 = vpop.f32.mrf.mxu0  ;;  %v1714_v52 = vpop.f32.mrf.mxu1 }
 0x1c0   : > { %v4859_v21 = vpack.c.bf16 %v3427_v23, %v3427_v23  ;;  %v2238_v50 = vmax.f32 %v2068_v56, 0.0  ;;  %v2324_v12 = vmax.f32 %v2154_v33, 0.0  ;;  %v1892_v49 = vmul.f32 %v7191_v13, %v1370_v40  ;;  %v7651_v56 = vld [vmem:[#allocation17_spill] sm:$0xff] }
 0x1c1   : > { %v4945_v0 = vpack.c.bf16 %v3513_v47, %v3513_v47  ;;  %v1978_v48 = vmul.f32 %v7191_v13, %v1714_v52  ;;  %v5187_v20 = vpop.f32.mrf.mxu0  ;;  %v5359_v35 = vpop.f32.mrf.mxu1 }
 0x1c2   : > { %4278 = vst.msk [vmem:[%s6285_s6 + $0xd4] sm:$0xf] %vm4224_vm3, %v4859_v21  ;;  %v3428_v15 = vmul.f32 %v7648_v3, %v2238_v50  ;;  %v3514_v26 = vmul.f32 %v3227_v51, %v2324_v12  ;;  %v2069_v62 = vadd.f32 %v7210_v31, %v1892_v49 }
 0x1c3   : > { %4364 = vst.msk [vmem:[%s6285_s6 + $0x22c] sm:$0xf] %vm4224_vm3, %v4945_v0  ;;  %v2155_v38 = vadd.f32 %v7210_v31, %v1978_v48  ;;  %v1375_v37 = vpop.f32.mrf.mxu0  ;;  %v1719_v6 = vpop.f32.mrf.mxu1 }
 0x1c4   : > { %v4860_v30 = vpack.c.bf16 %v3428_v15, %v3428_v15  ;;  %v4946_v54 = vpack.c.bf16 %v3514_v26, %v3514_v26  ;;  %v2239_v19 = vmax.f32 %v2069_v62, 0.0  ;;  %v1893_v61 = vmul.f32 %v7191_v13, %v1375_v37  ;;  %v3247_v15 = vpop.permute.xlu0 %3246  ;;  %v7652_v26 = vld [vmem:[#allocation20_spill] sm:$0xff] }
 0x1c5   : > { %v2325_v58 = vmax.f32 %v2155_v38, 0.0  ;;  %v1979_v43 = vmul.f32 %v7191_v13, %v1719_v6  ;;  %v5190_v57 = vpop.f32.mrf.mxu0  ;;  %v5362_v17 = vpop.f32.mrf.mxu1 }
 0x1c6   : > { %4279 = vst.msk [vmem:[%s6285_s6 + $0xd8] sm:$0xf] %vm4224_vm3, %v4860_v30  ;;  %4365 = vst.msk [vmem:[%s6285_s6 + $0x230] sm:$0xf] %vm4224_vm3, %v4946_v54  ;;  %v3429_v11 = vmul.f32 %v7649_v59, %v2239_v19  ;;  %v2070_v10 = vadd.f32 %v7210_v31, %v1893_v61 }
 0x1c7   : > { %v3515_v9 = vmul.f32 %v3232_v53, %v2325_v58  ;;  %v2156_v4 = vadd.f32 %v7210_v31, %v1979_v43  ;;  %v1378_v41 = vpop.f32.mrf.mxu0  ;;  %v1722_v46 = vpop.f32.mrf.mxu1 }
 0x1c8   : > { %v4861_v27 = vpack.c.bf16 %v3429_v11, %v3429_v11  ;;  %v2240_v18 = vmax.f32 %v2070_v10, 0.0  ;;  %v1894_v60 = vmul.f32 %v7191_v13, %v1378_v41  ;;  %v1980_v36 = vmul.f32 %v7191_v13, %v1722_v46  ;;  %v3252_v11 = vpop.permute.xlu1 %3251  ;;  %v7653_v10 = vld [vmem:[#allocation19_spill] sm:$0xff] }
 0x1c9   : > { %v4947_v5 = vpack.c.bf16 %v3515_v9, %v3515_v9  ;;  %v2326_v39 = vmax.f32 %v2156_v4, 0.0  ;;  %v5191_v28 = vpop.f32.mrf.mxu0  ;;  %v5363_v14 = vpop.f32.mrf.mxu1 }
 0x1ca   : > { %4280 = vst.msk [vmem:[%s6285_s6 + $0xdc] sm:$0xf] %vm4224_vm3, %v4861_v27  ;;  %v3430_v25 = vmul.f32 %v7650_v2, %v2240_v18  ;;  %v2071_v1 = vadd.f32 %v7210_v31, %v1894_v60  ;;  %v2157_v45 = vadd.f32 %v7210_v31, %v1980_v36  ;;  %v3257_v60 = vpop.permute.xlu0 %3256 }
 0x1cb   : > { %4366 = vst.msk [vmem:[%s6285_s6 + $0x234] sm:$0xf] %vm4224_vm3, %v4947_v5  ;;  %v3516_v22 = vmul.f32 %v3237_v63, %v2326_v39  ;;  %v1383_v8 = vpop.f32.mrf.mxu0  ;;  %v1727_v32 = vpop.f32.mrf.mxu1 }
 0x1cc   : > { %v4862_v7 = vpack.c.bf16 %v3430_v25, %v3430_v25  ;;  %v2241_v42 = vmax.f32 %v2071_v1, 0.0  ;;  %v2327_v55 = vmax.f32 %v2157_v45, 0.0  ;;  %v1895_v24 = vmul.f32 %v7191_v13, %v1383_v8  ;;  %v7654_v1 = vld [vmem:[#allocation22_spill] sm:$0xff] }
 0x1cd   : > { %v4948_v16 = vpack.c.bf16 %v3516_v22, %v3516_v22  ;;  %v1981_v29 = vmul.f32 %v7191_v13, %v1727_v32  ;;  %v5194_v34 = vpop.f32.mrf.mxu0  ;;  %v5366_v23 = vpop.f32.mrf.mxu1 }
 0x1ce   : > { %4281 = vst.msk [vmem:[%s6285_s6 + $0xe0] sm:$0xf] %vm4224_vm3, %v4862_v7  ;;  %v3431_v33 = vmul.f32 %v7651_v56, %v2241_v42  ;;  %v3517_v47 = vmul.f32 %v3242_v44, %v2327_v55  ;;  %v2072_v40 = vadd.f32 %v7210_v31, %v1895_v24 }
 0x1cf   : > { %4367 = vst.msk [vmem:[%s6285_s6 + $0x238] sm:$0xf] %vm4224_vm3, %v4948_v16  ;;  %v2158_v52 = vadd.f32 %v7210_v31, %v1981_v29  ;;  %v1386_v51 = vpop.f32.mrf.mxu0  ;;  %v1730_v21 = vpop.f32.mrf.mxu1 }
 0x1d0   : > { %v4863_v50 = vpack.c.bf16 %v3431_v33, %v3431_v33  ;;  %v4949_v12 = vpack.c.bf16 %v3517_v47, %v3517_v47  ;;  %v2242_v49 = vmax.f32 %v2072_v40, 0.0  ;;  %v1896_v0 = vmul.f32 %v7191_v13, %v1386_v51  ;;  %v3262_v33 = vpop.permute.xlu1 %3261  ;;  %v7655_v47 = vld [vmem:[#allocation21_spill] sm:$0xff] }
 0x1d1   : > { %v2328_v48 = vmax.f32 %v2158_v52, 0.0  ;;  %v1982_v20 = vmul.f32 %v7191_v13, %v1730_v21  ;;  %v5195_v35 = vpop.f32.mrf.mxu0  ;;  %v5367_v3 = vpop.f32.mrf.mxu1 }
 0x1d2   : > { %4282 = vst.msk [vmem:[%s6285_s6 + $0xe4] sm:$0xf] %vm4224_vm3, %v4863_v50  ;;  %4368 = vst.msk [vmem:[%s6285_s6 + $0x23c] sm:$0xf] %vm4224_vm3, %v4949_v12  ;;  %v3432_v62 = vmul.f32 %v7652_v26, %v2242_v49  ;;  %v2073_v38 = vadd.f32 %v7210_v31, %v1896_v0 }
 0x1d3   : > { %v3518_v37 = vmul.f32 %v3247_v15, %v2328_v48  ;;  %v2159_v6 = vadd.f32 %v7210_v31, %v1982_v20  ;;  %v1391_v30 = vpop.f32.mrf.mxu0  ;;  %v1735_v54 = vpop.f32.mrf.mxu1 }
 0x1d4   : > { %v4864_v19 = vpack.c.bf16 %v3432_v62, %v3432_v62  ;;  %v2243_v61 = vmax.f32 %v2073_v38, 0.0  ;;  %v1897_v58 = vmul.f32 %v7191_v13, %v1391_v30  ;;  %v1983_v43 = vmul.f32 %v7191_v13, %v1735_v54  ;;  %v3267_v62 = vpop.permute.xlu0 %3266  ;;  %v7656_v38 = vld [vmem:[#allocation24_spill] sm:$0xff] }
 0x1d5   : > { %v4950_v57 = vpack.c.bf16 %v3518_v37, %v3518_v37  ;;  %v2329_v17 = vmax.f32 %v2159_v6, 0.0  ;;  %v5198_v53 = vpop.f32.mrf.mxu0  ;;  %v5370_v59 = vpop.f32.mrf.mxu1 }
 0x1d6   : > { %4283 = vst.msk [vmem:[%s6285_s6 + $0xe8] sm:$0xf] %vm4224_vm3, %v4864_v19  ;;  %v3433_v9 = vmul.f32 %v7653_v10, %v2243_v61  ;;  %v2074_v4 = vadd.f32 %v7210_v31, %v1897_v58  ;;  %v2160_v41 = vadd.f32 %v7210_v31, %v1983_v43  ;;  %v3272_v58 = vpop.permute.xlu1 %3271 }
 0x1d7   : > { %4369 = vst.msk [vmem:[%s6285_s6 + $0x240] sm:$0xf] %vm4224_vm3, %v4950_v57  ;;  %v3519_v46 = vmul.f32 %v3252_v11, %v2329_v17  ;;  %v1394_v27 = vpop.f32.mrf.mxu0  ;;  %v1738_v18 = vpop.f32.mrf.mxu1 }
 0x1d8   : > { %v4865_v36 = vpack.c.bf16 %v3433_v9, %v3433_v9  ;;  %v2244_v5 = vmax.f32 %v2074_v4, 0.0  ;;  %v2330_v39 = vmax.f32 %v2160_v41, 0.0  ;;  %v1898_v28 = vmul.f32 %v7191_v13, %v1394_v27  ;;  %v7657_v4 = vld [vmem:[#allocation23_spill] sm:$0xff] }
 0x1d9   : > { %v4951_v14 = vpack.c.bf16 %v3519_v46, %v3519_v46  ;;  %v1984_v63 = vmul.f32 %v7191_v13, %v1738_v18  ;;  %v5199_v2 = vpop.f32.mrf.mxu0  ;;  %v5371_v25 = vpop.f32.mrf.mxu1 }
 0x1da   : > { %4284 = vst.msk [vmem:[%s6285_s6 + $0xec] sm:$0xf] %vm4224_vm3, %v4865_v36  ;;  %v3434_v45 = vmul.f32 %v7654_v1, %v2244_v5  ;;  %v3520_v22 = vmul.f32 %v3257_v60, %v2330_v39  ;;  %v2075_v8 = vadd.f32 %v7210_v31, %v1898_v28 }
 0x1db   : > { %4370 = vst.msk [vmem:[%s6285_s6 + $0x244] sm:$0xf] %vm4224_vm3, %v4951_v14  ;;  %v2161_v32 = vadd.f32 %v7210_v31, %v1984_v63  ;;  %v1399_v44 = vpop.f32.mrf.mxu0  ;;  %v1743_v7 = vpop.f32.mrf.mxu1 }
 0x1dc   : > { %v4866_v42 = vpack.c.bf16 %v3434_v45, %v3434_v45  ;;  %v4952_v55 = vpack.c.bf16 %v3520_v22, %v3520_v22  ;;  %v2245_v24 = vmax.f32 %v2075_v8, 0.0  ;;  %v1899_v16 = vmul.f32 %v7191_v13, %v1399_v44  ;;  %v3277_v45 = vpop.permute.xlu0 %3276  ;;  %v7658_v22 = vld [vmem:[#allocation26_spill] sm:$0xff] }
 0x1dd   : > { %v2331_v29 = vmax.f32 %v2161_v32, 0.0  ;;  %v1985_v34 = vmul.f32 %v7191_v13, %v1743_v7  ;;  %v5202_v23 = vpop.f32.mrf.mxu0  ;;  %v5374_v56 = vpop.f32.mrf.mxu1 }
 0x1de   : > { %4285 = vst.msk [vmem:[%s6285_s6 + $0xf0] sm:$0xf] %vm4224_vm3, %v4866_v42  ;;  %4371 = vst.msk [vmem:[%s6285_s6 + $0x248] sm:$0xf] %vm4224_vm3, %v4952_v55  ;;  %v3435_v40 = vmul.f32 %v7655_v47, %v2245_v24  ;;  %v2076_v52 = vadd.f32 %v7210_v31, %v1899_v16 }
 0x1df   : > { %v3521_v51 = vmul.f32 %v3262_v33, %v2331_v29  ;;  %v2162_v21 = vadd.f32 %v7210_v31, %v1985_v34  ;;  %v1402_v50 = vpop.f32.mrf.mxu0  ;;  %v1746_v12 = vpop.f32.mrf.mxu1 }
 0x1e0   : > { %v4867_v49 = vpack.c.bf16 %v3435_v40, %v3435_v40  ;;  %v2246_v0 = vmax.f32 %v2076_v52, 0.0  ;;  %v1900_v48 = vmul.f32 %v7191_v13, %v1402_v50  ;;  %v1986_v20 = vmul.f32 %v7191_v13, %v1746_v12  ;;  %v3282_v40 = vpop.permute.xlu1 %3281  ;;  %v7659_v52 = vld [vmem:[#allocation25_spill] sm:$0xff] }
 0x1e1   : > { %v4953_v35 = vpack.c.bf16 %v3521_v51, %v3521_v51  ;;  %v2332_v3 = vmax.f32 %v2162_v21, 0.0  ;;  %v5203_v15 = vpop.f32.mrf.mxu0  ;;  %v5375_v26 = vpop.f32.mrf.mxu1 }
 0x1e2   : > { %4286 = vst.msk [vmem:[%s6285_s6 + $0xf4] sm:$0xf] %vm4224_vm3, %v4867_v49  ;;  %v3436_v37 = vmul.f32 %v7656_v38, %v2246_v0  ;;  %v2077_v6 = vadd.f32 %v7210_v31, %v1900_v48  ;;  %v2163_v30 = vadd.f32 %v7210_v31, %v1986_v20  ;;  %v3287_v48 = vpop.permute.xlu0 %3286 }
 0x1e3   : > { %4372 = vst.msk [vmem:[%s6285_s6 + $0x24c] sm:$0xf] %vm4224_vm3, %v4953_v35  ;;  %v3522_v54 = vmul.f32 %v3267_v62, %v2332_v3  ;;  %v1407_v19 = vpop.f32.mrf.mxu0  ;;  %v1751_v61 = vpop.f32.mrf.mxu1 }
 0x1e4   : > { %v4868_v43 = vpack.c.bf16 %v3436_v37, %v3436_v37  ;;  %v2247_v57 = vmax.f32 %v2077_v6, 0.0  ;;  %v2333_v17 = vmax.f32 %v2163_v30, 0.0  ;;  %v1901_v53 = vmul.f32 %v7191_v13, %v1407_v19  ;;  %v7660_v6 = vld [vmem:[#allocation28_spill] sm:$0xff] }
 0x1e5   : > { %v4954_v59 = vpack.c.bf16 %v3522_v54, %v3522_v54  ;;  %v1987_v11 = vmul.f32 %v7191_v13, %v1751_v61  ;;  %v5206_v10 = vpop.f32.mrf.mxu0  ;;  %v5378_v9 = vpop.f32.mrf.mxu1 }
 0x1e6   : > { %4287 = vst.msk [vmem:[%s6285_s6 + $0xf8] sm:$0xf] %vm4224_vm3, %v4868_v43  ;;  %v3437_v41 = vmul.f32 %v7657_v4, %v2247_v57  ;;  %v3523_v46 = vmul.f32 %v3272_v58, %v2333_v17  ;;  %v2078_v27 = vadd.f32 %v7210_v31, %v1901_v53 }
 0x1e7   : > { %4373 = vst.msk [vmem:[%s6285_s6 + $0x250] sm:$0xf] %vm4224_vm3, %v4954_v59  ;;  %v2164_v18 = vadd.f32 %v7210_v31, %v1987_v11  ;;  %v1410_v60 = vpop.f32.mrf.mxu0  ;;  %v1754_v36 = vpop.f32.mrf.mxu1 }
 0x1e8   : > { %v4869_v5 = vpack.c.bf16 %v3437_v41, %v3437_v41  ;;  %v4955_v39 = vpack.c.bf16 %v3523_v46, %v3523_v46  ;;  %v2248_v28 = vmax.f32 %v2078_v27, 0.0  ;;  %v1902_v14 = vmul.f32 %v7191_v13, %v1410_v60  ;;  %v3292_v41 = vpop.permute.xlu1 %3291  ;;  %v7661_v46 = vld [vmem:[#allocation27_spill] sm:$0xff] }
 0x1e9   : > { %v2334_v63 = vmax.f32 %v2164_v18, 0.0  ;;  %v1988_v2 = vmul.f32 %v7191_v13, %v1754_v36  ;;  %v5207_v25 = vpop.f32.mrf.mxu0  ;;  %v5379_v1 = vpop.f32.mrf.mxu1 }
 0x1ea   : > { %4288 = vst.msk [vmem:[%s6285_s6 + $0xfc] sm:$0xf] %vm4224_vm3, %v4869_v5  ;;  %4374 = vst.msk [vmem:[%s6285_s6 + $0x254] sm:$0xf] %vm4224_vm3, %v4955_v39  ;;  %v3438_v8 = vmul.f32 %v7658_v22, %v2248_v28  ;;  %v2079_v32 = vadd.f32 %v7210_v31, %v1902_v14 }
 0x1eb   : > { %v3524_v44 = vmul.f32 %v3277_v45, %v2334_v63  ;;  %v2165_v7 = vadd.f32 %v7210_v31, %v1988_v2  ;;  %v1415_v42 = vpop.f32.mrf.mxu0  ;;  %v1759_v55 = vpop.f32.mrf.mxu1 }
 0x1ec   : > { %v4870_v24 = vpack.c.bf16 %v3438_v8, %v3438_v8  ;;  %v2249_v16 = vmax.f32 %v2079_v32, 0.0  ;;  %v1903_v29 = vmul.f32 %v7191_v13, %v1415_v42  ;;  %v1989_v34 = vmul.f32 %v7191_v13, %v1759_v55  ;;  %v3297_v8 = vpop.permute.xlu0 %3296  ;;  %v7662_v32 = vld [vmem:[#allocation30_spill] sm:$0xff] }
 0x1ed   : > { %v4956_v23 = vpack.c.bf16 %v3524_v44, %v3524_v44  ;;  %v2335_v56 = vmax.f32 %v2165_v7, 0.0  ;;  %v5210_v33 = vpop.f32.mrf.mxu0  ;;  %v5382_v47 = vpop.f32.mrf.mxu1 }
 0x1ee   : > { %4289 = vst.msk [vmem:[%s6285_s6 + $0x100] sm:$0xf] %vm4224_vm3, %v4870_v24  ;;  %v3439_v51 = vmul.f32 %v7659_v52, %v2249_v16  ;;  %v2080_v21 = vadd.f32 %v7210_v31, %v1903_v29  ;;  %v2166_v50 = vadd.f32 %v7210_v31, %v1989_v34  ;;  %v3302_v29 = vpop.permute.xlu1 %3301 }
 0x1ef   : > { %4375 = vst.msk [vmem:[%s6285_s6 + $0x258] sm:$0xf] %vm4224_vm3, %v4956_v23  ;;  %v3525_v12 = vmul.f32 %v3282_v40, %v2335_v56  ;;  %v1418_v49 = vpop.f32.mrf.mxu0  ;;  %v1762_v0 = vpop.f32.mrf.mxu1 }
 0x1f0   : > { %v4871_v20 = vpack.c.bf16 %v3439_v51, %v3439_v51  ;;  %v2250_v35 = vmax.f32 %v2080_v21, 0.0  ;;  %v2336_v3 = vmax.f32 %v2166_v50, 0.0  ;;  %v1904_v15 = vmul.f32 %v7191_v13, %v1418_v49  ;;  %v7663_v21 = vld [vmem:[#allocation29_spill] sm:$0xff] }
 0x1f1   : > { %v4957_v26 = vpack.c.bf16 %v3525_v12, %v3525_v12  ;;  %v1990_v62 = vmul.f32 %v7191_v13, %v1762_v0  ;;  %v5211_v38 = vpop.f32.mrf.mxu0  ;;  %v5383_v37 = vpop.f32.mrf.mxu1 }
 0x1f2   : > { %4290 = vst.msk [vmem:[%s6285_s6 + $0x104] sm:$0xf] %vm4224_vm3, %v4871_v20  ;;  %v3440_v30 = vmul.f32 %v7660_v6, %v2250_v35  ;;  %v3526_v54 = vmul.f32 %v3287_v48, %v2336_v3  ;;  %v2081_v19 = vadd.f32 %v7210_v31, %v1904_v15 }
 0x1f3   : > { %4376 = vst.msk [vmem:[%s6285_s6 + $0x25c] sm:$0xf] %vm4224_vm3, %v4957_v26  ;;  %v2167_v61 = vadd.f32 %v7210_v31, %v1990_v62  ;;  %v1423_v58 = vpop.f32.mrf.mxu0  ;;  %v1767_v43 = vpop.f32.mrf.mxu1 }
 0x1f4   : > { %v4872_v57 = vpack.c.bf16 %v3440_v30, %v3440_v30  ;;  %v4958_v17 = vpack.c.bf16 %v3526_v54, %v3526_v54  ;;  %v2251_v53 = vmax.f32 %v2081_v19, 0.0  ;;  %v1905_v59 = vmul.f32 %v7191_v13, %v1423_v58  ;;  %v3307_v30 = vpop.permute.xlu0 %3306  ;;  %v7664_v54 = vld [vmem:[#allocation32_spill] sm:$0xff] }
 0x1f5   : > { %v2337_v11 = vmax.f32 %v2167_v61, 0.0  ;;  %v1991_v10 = vmul.f32 %v7191_v13, %v1767_v43  ;;  %v5214_v9 = vpop.f32.mrf.mxu0  ;;  %v5386_v4 = vpop.f32.mrf.mxu1 }
 0x1f6   : > { %4291 = vst.msk [vmem:[%s6285_s6 + $0x108] sm:$0xf] %vm4224_vm3, %v4872_v57  ;;  %4377 = vst.msk [vmem:[%s6285_s6 + $0x260] sm:$0xf] %vm4224_vm3, %v4958_v17  ;;  %v3441_v27 = vmul.f32 %v7661_v46, %v2251_v53  ;;  %v2082_v18 = vadd.f32 %v7210_v31, %v1905_v59 }
 0x1f7   : > { %v3527_v60 = vmul.f32 %v3292_v41, %v2337_v11  ;;  %v2168_v36 = vadd.f32 %v7210_v31, %v1991_v10  ;;  %v1426_v5 = vpop.f32.mrf.mxu0  ;;  %v1770_v39 = vpop.f32.mrf.mxu1 }
 0x1f8   : > { %v4873_v28 = vpack.c.bf16 %v3441_v27, %v3441_v27  ;;  %v2252_v14 = vmax.f32 %v2082_v18, 0.0  ;;  %v1906_v63 = vmul.f32 %v7191_v13, %v1426_v5  ;;  %v1992_v2 = vmul.f32 %v7191_v13, %v1770_v39  ;;  %v3312_v27 = vpop.permute.xlu1 %3311  ;;  %v7665_v18 = vld [vmem:[#allocation31_spill] sm:$0xff] }
 0x1f9   : > { %v4959_v25 = vpack.c.bf16 %v3527_v60, %v3527_v60  ;;  %v2338_v1 = vmax.f32 %v2168_v36, 0.0  ;;  %v5215_v45 = vpop.f32.mrf.mxu0  ;;  %v5387_v22 = vpop.f32.mrf.mxu1 }
 0x1fa   : > { %4292 = vst.msk [vmem:[%s6285_s6 + $0x10c] sm:$0xf] %vm4224_vm3, %v4873_v28  ;;  %v3442_v44 = vmul.f32 %v7662_v32, %v2252_v14  ;;  %v2083_v7 = vadd.f32 %v7210_v31, %v1906_v63  ;;  %v2169_v42 = vadd.f32 %v7210_v31, %v1992_v2  ;;  %v3317_v63 = vpop.permute.xlu0 %3316 }
 0x1fb   : > { %4378 = vst.msk [vmem:[%s6285_s6 + $0x264] sm:$0xf] %vm4224_vm3, %v4959_v25  ;;  %v3528_v55 = vmul.f32 %v3297_v8, %v2338_v1  ;;  %v1431_v24 = vpop.f32.mrf.mxu0  ;;  %v1775_v16 = vpop.f32.mrf.mxu1 }
 0x1fc   : > { %v4874_v34 = vpack.c.bf16 %v3442_v44, %v3442_v44  ;;  %v2253_v23 = vmax.f32 %v2083_v7, 0.0  ;;  %v2339_v56 = vmax.f32 %v2169_v42, 0.0  ;;  %v1907_v33 = vmul.f32 %v7191_v13, %v1431_v24  ;;  %v7666_v7 = vld [vmem:[#allocation34_spill] sm:$0xff] }
 0x1fd   : > { %v4960_v47 = vpack.c.bf16 %v3528_v55, %v3528_v55  ;;  %v1993_v40 = vmul.f32 %v7191_v13, %v1775_v16  ;;  %v5218_v52 = vpop.f32.mrf.mxu0  ;;  %v5390_v51 = vpop.f32.mrf.mxu1 }
 0x1fe   : > { %4293 = vst.msk [vmem:[%s6285_s6 + $0x110] sm:$0xf] %vm4224_vm3, %v4874_v34  ;;  %v3443_v50 = vmul.f32 %v7663_v21, %v2253_v23  ;;  %v3529_v12 = vmul.f32 %v3302_v29, %v2339_v56  ;;  %v2084_v49 = vadd.f32 %v7210_v31, %v1907_v33 }
 0x1ff   : > { %4379 = vst.msk [vmem:[%s6285_s6 + $0x268] sm:$0xf] %vm4224_vm3, %v4960_v47  ;;  %v2170_v0 = vadd.f32 %v7210_v31, %v1993_v40  ;;  %v1434_v48 = vpop.f32.mrf.mxu0  ;;  %v1778_v20 = vpop.f32.mrf.mxu1 }
 0x200   : > { %v4875_v35 = vpack.c.bf16 %v3443_v50, %v3443_v50  ;;  %v4961_v3 = vpack.c.bf16 %v3529_v12, %v3529_v12  ;;  %v2254_v15 = vmax.f32 %v2084_v49, 0.0  ;;  %v1908_v26 = vmul.f32 %v7191_v13, %v1434_v48  ;;  %v3322_v50 = vpop.permute.xlu1 %3321  ;;  %v7667_v12 = vld [vmem:[#allocation33_spill] sm:$0xff] }
 0x201   : > { %v2340_v62 = vmax.f32 %v2170_v0, 0.0  ;;  %v1994_v38 = vmul.f32 %v7191_v13, %v1778_v20  ;;  %v5219_v37 = vpop.f32.mrf.mxu0  ;;  %v5391_v6 = vpop.f32.mrf.mxu1 }
 0x202   : > { %4294 = vst.msk [vmem:[%s6285_s6 + $0x114] sm:$0xf] %vm4224_vm3, %v4875_v35  ;;  %4380 = vst.msk [vmem:[%s6285_s6 + $0x26c] sm:$0xf] %vm4224_vm3, %v4961_v3  ;;  %v3444_v19 = vmul.f32 %v7664_v54, %v2254_v15  ;;  %v2085_v61 = vadd.f32 %v7210_v31, %v1908_v26 }
 0x203   : > { %v3530_v58 = vmul.f32 %v3307_v30, %v2340_v62  ;;  %v2171_v43 = vadd.f32 %v7210_v31, %v1994_v38  ;;  %v1439_v57 = vpop.f32.mrf.mxu0  ;;  %v1783_v17 = vpop.f32.mrf.mxu1 }
 0x204   : > { %v4876_v53 = vpack.c.bf16 %v3444_v19, %v3444_v19  ;;  %v2255_v59 = vmax.f32 %v2085_v61, 0.0  ;;  %v1909_v11 = vmul.f32 %v7191_v13, %v1439_v57  ;;  %v1995_v10 = vmul.f32 %v7191_v13, %v1783_v17  ;;  %v3327_v19 = vpop.permute.xlu0 %3326  ;;  %v7668_v61 = vld [vmem:[#allocation36_spill] sm:$0xff] }
 0x205   : > { %v4962_v9 = vpack.c.bf16 %v3530_v58, %v3530_v58  ;;  %v2341_v4 = vmax.f32 %v2171_v43, 0.0  ;;  %v5222_v41 = vpop.f32.mrf.mxu0  ;;  %v5394_v46 = vpop.f32.mrf.mxu1 }
 0x206   : > { %4295 = vst.msk [vmem:[%s6285_s6 + $0x118] sm:$0xf] %vm4224_vm3, %v4876_v53  ;;  %v3445_v60 = vmul.f32 %v7665_v18, %v2255_v59  ;;  %v2086_v36 = vadd.f32 %v7210_v31, %v1909_v11  ;;  %v2172_v5 = vadd.f32 %v7210_v31, %v1995_v10  ;;  %v3332_v59 = vpop.permute.xlu1 %3331 }
 0x207   : > { %4381 = vst.msk [vmem:[%s6285_s6 + $0x270] sm:$0xf] %vm4224_vm3, %v4962_v9  ;;  %v3531_v39 = vmul.f32 %v3312_v27, %v2341_v4  ;;  %v1442_v28 = vpop.f32.mrf.mxu0  ;;  %v1786_v14 = vpop.f32.mrf.mxu1  ;;  %v7480_v4 = vld [vmem:[%s7583_s2] ss:$0 sm:$0xff] }
 0x208   : > { %v4877_v2 = vpack.c.bf16 %v3445_v60, %v3445_v60  ;;  %v2256_v25 = vmax.f32 %v2086_v36, 0.0  ;;  %v2342_v1 = vmax.f32 %v2172_v5, 0.0  ;;  %v1910_v45 = vmul.f32 %v7191_v13, %v1442_v28  ;;  %v7669_v36 = vld [vmem:[#allocation35_spill] sm:$0xff] }
 0x209   : > { %v4963_v22 = vpack.c.bf16 %v3531_v39, %v3531_v39  ;;  %v1996_v8 = vmul.f32 %v7191_v13, %v1786_v14  ;;  %v5223_v32 = vpop.f32.mrf.mxu0  ;;  %v5395_v44 = vpop.f32.mrf.mxu1  ;;  %v7493_v14 = vld [vmem:[%s7584_s3] ss:$0 sm:$0xff] }
 0x20a   : > { %4296 = vst.msk [vmem:[%s6285_s6 + $0x11c] sm:$0xf] %vm4224_vm3, %v4877_v2  ;;  %v3446_v42 = vmul.f32 %v7666_v7, %v2256_v25  ;;  %v3532_v55 = vmul.f32 %v3317_v63, %v2342_v1  ;;  %v2087_v24 = vadd.f32 %v7210_v31, %v1910_v45 }
 0x20b   : > { %4382 = vst.msk [vmem:[%s6285_s6 + $0x274] sm:$0xf] %vm4224_vm3, %v4963_v22  ;;  %v2173_v16 = vadd.f32 %v7210_v31, %v1996_v8  ;;  %v1447_v29 = vpop.f32.mrf.mxu0  ;;  %v1791_v34 = vpop.f32.mrf.mxu1 }
 0x20c   : > { %v4878_v23 = vpack.c.bf16 %v3446_v42, %v3446_v42  ;;  %v4964_v56 = vpack.c.bf16 %v3532_v55, %v3532_v55  ;;  %v2257_v33 = vmax.f32 %v2087_v24, 0.0  ;;  %v1911_v47 = vmul.f32 %v7191_v13, %v1447_v29  ;;  %v3337_v42 = vpop.permute.xlu0 %3336  ;;  %v7670_v55 = vld [vmem:[#allocation38_spill] sm:$0xff] }
 0x20d   : > { %v2343_v40 = vmax.f32 %v2173_v16, 0.0  ;;  %v1997_v52 = vmul.f32 %v7191_v13, %v1791_v34  ;;  %v5226_v51 = vpop.f32.mrf.mxu0  ;;  %v5398_v21 = vpop.f32.mrf.mxu1 }
 0x20e   : > { %4297 = vst.msk [vmem:[%s6285_s6 + $0x120] sm:$0xf] %vm4224_vm3, %v4878_v23  ;;  %4383 = vst.msk [vmem:[%s6285_s6 + $0x278] sm:$0xf] %vm4224_vm3, %v4964_v56  ;;  %v3447_v49 = vmul.f32 %v7667_v12, %v2257_v33  ;;  %v2088_v0 = vadd.f32 %v7210_v31, %v1911_v47 }
 0x20f   : > { %v3533_v48 = vmul.f32 %v3322_v50, %v2343_v40  ;;  %v2174_v20 = vadd.f32 %v7210_v31, %v1997_v52  ;;  %v1450_v35 = vpop.f32.mrf.mxu0  ;;  %v1794_v3 = vpop.f32.mrf.mxu1 }
 0x210   : > { %v4879_v15 = vpack.c.bf16 %v3447_v49, %v3447_v49  ;;  %v2258_v26 = vmax.f32 %v2088_v0, 0.0  ;;  %v1912_v62 = vmul.f32 %v7191_v13, %v1450_v35  ;;  %v1998_v38 = vmul.f32 %v7191_v13, %v1794_v3  ;;  %v3342_v49 = vpop.permute.xlu1 %3341  ;;  %v7671_v0 = vld [vmem:[#allocation37_spill] sm:$0xff] }
 0x211   : > { %v4965_v37 = vpack.c.bf16 %v3533_v48, %v3533_v48  ;;  %v2344_v6 = vmax.f32 %v2174_v20, 0.0  ;;  %v5227_v30 = vpop.f32.mrf.mxu0  ;;  %v5399_v54 = vpop.f32.mrf.mxu1 }
 0x212   : > { %4298 = vst.msk [vmem:[%s6285_s6 + $0x124] sm:$0xf] %vm4224_vm3, %v4879_v15  ;;  %v3448_v58 = vmul.f32 %v7668_v61, %v2258_v26  ;;  %v2089_v43 = vadd.f32 %v7210_v31, %v1912_v62  ;;  %v2175_v57 = vadd.f32 %v7210_v31, %v1998_v38  ;;  %v3347_v62 = vpop.permute.xlu0 %3346 }
 0x213   : > { %4384 = vst.msk [vmem:[%s6285_s6 + $0x27c] sm:$0xf] %vm4224_vm3, %v4965_v37  ;;  %v3534_v17 = vmul.f32 %v3327_v19, %v2344_v6  ;;  %v1455_v53 = vpop.f32.mrf.mxu0  ;;  %v1799_v13 = vpop.f32.mrf.mxu1 }
 0x214   : > { %v4880_v11 = vpack.c.bf16 %v3448_v58, %v3448_v58  ;;  %v2259_v10 = vmax.f32 %v2089_v43, 0.0  ;;  %v2345_v9 = vmax.f32 %v2175_v57, 0.0  ;;  %v1913_v41 = vmul.f32 %v7480_v4, %v1455_v53  ;;  %v7672_v43 = vld [vmem:[#allocation40_spill] sm:$0xff] }
 0x215   : > { %v4966_v46 = vpack.c.bf16 %v3534_v17, %v3534_v17  ;;  %v1999_v27 = vmul.f32 %v7480_v4, %v1799_v13  ;;  %v5230_v18 = vpop.f32.mrf.mxu0  ;;  %v5402_v60 = vpop.f32.mrf.mxu1 }
 0x216   : > { %4299 = vst.msk [vmem:[%s6285_s6 + $0x128] sm:$0xf] %vm4224_vm3, %v4880_v11  ;;  %v3449_v5 = vmul.f32 %v7669_v36, %v2259_v10  ;;  %v3535_v39 = vmul.f32 %v3332_v59, %v2345_v9  ;;  %v2090_v28 = vadd.f32 %v7210_v31, %v1913_v41 }
 0x217   : > { %4385 = vst.msk [vmem:[%s6285_s6 + $0x280] sm:$0xf] %vm4224_vm3, %v4966_v46  ;;  %v2176_v63 = vadd.f32 %v7493_v14, %v1999_v27  ;;  %v1458_v2 = vpop.f32.mrf.mxu0  ;;  %v1802_v25 = vpop.f32.mrf.mxu1 }
 0x218   : > { %v4881_v1 = vpack.c.bf16 %v3449_v5, %v3449_v5  ;;  %v4967_v45 = vpack.c.bf16 %v3535_v39, %v3535_v39  ;;  %v2260_v22 = vmax.f32 %v2090_v28, 0.0  ;;  %v1914_v8 = vmul.f32 %v7480_v4, %v1458_v2  ;;  %v3352_v5 = vpop.permute.xlu1 %3351  ;;  %v7673_v39 = vld [vmem:[#allocation39_spill] sm:$0xff] }
 0x219   : > { %v2346_v32 = vmax.f32 %v2176_v63, 0.0  ;;  %v2000_v31 = vmul.f32 %v7480_v4, %v1802_v25  ;;  %v5231_v44 = vpop.f32.mrf.mxu0  ;;  %v5403_v7 = vpop.f32.mrf.mxu1 }
 0x21a   : > { %4300 = vst.msk [vmem:[%s6285_s6 + $0x12c] sm:$0xf] %vm4224_vm3, %v4881_v1  ;;  %4386 = vst.msk [vmem:[%s6285_s6 + $0x284] sm:$0xf] %vm4224_vm3, %v4967_v45  ;;  %v3450_v24 = vmul.f32 %v7670_v55, %v2260_v22  ;;  %v2091_v16 = vadd.f32 %v7493_v14, %v1914_v8 }
 0x21b   : > { %v3536_v29 = vmul.f32 %v3337_v42, %v2346_v32  ;;  %v2177_v34 = vadd.f32 %v7493_v14, %v2000_v31  ;;  %v1463_v23 = vpop.f32.mrf.mxu0  ;;  %v1807_v56 = vpop.f32.mrf.mxu1 }
 0x21c   : > { %v4882_v33 = vpack.c.bf16 %v3450_v24, %v3450_v24  ;;  %v2261_v47 = vmax.f32 %v2091_v16, 0.0  ;;  %v1915_v40 = vmul.f32 %v7480_v4, %v1463_v23  ;;  %v2001_v52 = vmul.f32 %v7480_v4, %v1807_v56  ;;  %v3357_v24 = vpop.permute.xlu0 %3356  ;;  %v7674_v16 = vld [vmem:[#allocation42_spill] sm:$0xff] }
 0x21d   : > { %v4968_v51 = vpack.c.bf16 %v3536_v29, %v3536_v29  ;;  %v2347_v21 = vmax.f32 %v2177_v34, 0.0  ;;  %v5234_v50 = vpop.f32.mrf.mxu0  ;;  %v5406_v12 = vpop.f32.mrf.mxu1 }
 0x21e   : > { %4301 = vst.msk [vmem:[%s6285_s6 + $0x130] sm:$0xf] %vm4224_vm3, %v4882_v33  ;;  %v3451_v48 = vmul.f32 %v7671_v0, %v2261_v47  ;;  %v2092_v20 = vadd.f32 %v7493_v14, %v1915_v40  ;;  %v2178_v35 = vadd.f32 %v7493_v14, %v2001_v52  ;;  %v3362_v40 = vpop.permute.xlu1 %3361 }
 0x21f   : > { %4387 = vst.msk [vmem:[%s6285_s6 + $0x288] sm:$0xf] %vm4224_vm3, %v4968_v51  ;;  %v3537_v3 = vmul.f32 %v3342_v49, %v2347_v21  ;;  %v1466_v15 = vpop.f32.mrf.mxu0  ;;  %v1810_v26 = vpop.f32.mrf.mxu1 }
 0x220   : > { %v4883_v38 = vpack.c.bf16 %v3451_v48, %v3451_v48  ;;  %v2262_v37 = vmax.f32 %v2092_v20, 0.0  ;;  %v2348_v6 = vmax.f32 %v2178_v35, 0.0  ;;  %v1916_v30 = vmul.f32 %v7480_v4, %v1466_v15  ;;  %v7675_v20 = vld [vmem:[#allocation41_spill] sm:$0xff] }
 0x221   : > { %v4969_v54 = vpack.c.bf16 %v3537_v3, %v3537_v3  ;;  %v2002_v19 = vmul.f32 %v7480_v4, %v1810_v26  ;;  %v5235_v61 = vpop.f32.mrf.mxu0  ;;  %v5407_v58 = vpop.f32.mrf.mxu1 }
 0x222   : > { %4302 = vst.msk [vmem:[%s6285_s6 + $0x134] sm:$0xf] %vm4224_vm3, %v4883_v38  ;;  %v3452_v57 = vmul.f32 %v7672_v43, %v2262_v37  ;;  %v3538_v17 = vmul.f32 %v3347_v62, %v2348_v6  ;;  %v2093_v53 = vadd.f32 %v7493_v14, %v1916_v30 }
 0x223   : > { %4388 = vst.msk [vmem:[%s6285_s6 + $0x28c] sm:$0xf] %vm4224_vm3, %v4969_v54  ;;  %v2179_v13 = vadd.f32 %v7493_v14, %v2002_v19  ;;  %v1471_v59 = vpop.f32.mrf.mxu0  ;;  %v1815_v11 = vpop.f32.mrf.mxu1 }
 0x224   : > { %v4884_v10 = vpack.c.bf16 %v3452_v57, %v3452_v57  ;;  %v4970_v9 = vpack.c.bf16 %v3538_v17, %v3538_v17  ;;  %v2263_v41 = vmax.f32 %v2093_v53, 0.0  ;;  %v1917_v46 = vmul.f32 %v7480_v4, %v1471_v59  ;;  %v3367_v57 = vpop.permute.xlu0 %3366  ;;  %v7676_v17 = vld [vmem:[#allocation44_spill] sm:$0xff] }
 0x225   : > { %v2349_v27 = vmax.f32 %v2179_v13, 0.0  ;;  %v2003_v18 = vmul.f32 %v7480_v4, %v1815_v11  ;;  %v5238_v60 = vpop.f32.mrf.mxu0  ;;  %v5410_v36 = vpop.f32.mrf.mxu1 }
 0x226   : > { %4303 = vst.msk [vmem:[%s6285_s6 + $0x138] sm:$0xf] %vm4224_vm3, %v4884_v10  ;;  %4389 = vst.msk [vmem:[%s6285_s6 + $0x290] sm:$0xf] %vm4224_vm3, %v4970_v9  ;;  %v3453_v28 = vmul.f32 %v7673_v39, %v2263_v41  ;;  %v2094_v63 = vadd.f32 %v7493_v14, %v1917_v46  ;;  %v3372_v36 = vpop.permute.xlu1 %3371 }
 0x227   : > { %v3539_v2 = vmul.f32 %v3352_v5, %v2349_v27  ;;  %v2180_v25 = vadd.f32 %v7493_v14, %v2003_v18  ;;  %v1474_v1 = vpop.f32.mrf.mxu0  ;;  %v1818_v45 = vpop.f32.mrf.mxu1  ;;  %v7677_v5 = vld [vmem:[#allocation43_spill] sm:$0xff] }
 0x228   : > { %v4885_v22 = vpack.c.bf16 %v3453_v28, %v3453_v28  ;;  %v2264_v8 = vmax.f32 %v2094_v63, 0.0  ;;  %v1918_v32 = vmul.f32 %v7480_v4, %v1474_v1  ;;  %v2004_v31 = vmul.f32 %v7480_v4, %v1818_v45 }
 0x229   : > { %v4971_v44 = vpack.c.bf16 %v3539_v2, %v3539_v2  ;;  %v2350_v7 = vmax.f32 %v2180_v25, 0.0  ;;  %v5239_v42 = vpop.f32.mrf.mxu0  ;;  %v5411_v55 = vpop.f32.mrf.mxu1 }
 0x22a   : > { %4304 = vst.msk [vmem:[%s6285_s6 + $0x13c] sm:$0xf] %vm4224_vm3, %v4885_v22  ;;  %v3454_v29 = vmul.f32 %v7674_v16, %v2264_v8  ;;  %v2095_v34 = vadd.f32 %v7493_v14, %v1918_v32  ;;  %v2181_v23 = vadd.f32 %v7493_v14, %v2004_v31  ;;  %v7678_v32 = vld [vmem:[#allocation46_spill] sm:$0xff]  ;;  %v7679_v55 = vld [vmem:[#allocation45_spill] sm:$0xff] }
 0x22b   : > { %4390 = vst.msk [vmem:[%s6285_s6 + $0x294] sm:$0xf] %vm4224_vm3, %v4971_v44  ;;  %v3540_v56 = vmul.f32 %v3357_v24, %v2350_v7  ;;  %v1479_v33 = vpop.f32.mrf.mxu0  ;;  %v1823_v47 = vpop.f32.mrf.mxu1 }
 0x22c   : > { %v4886_v52 = vpack.c.bf16 %v3454_v29, %v3454_v29  ;;  %v2265_v51 = vmax.f32 %v2095_v34, 0.0  ;;  %v2351_v21 = vmax.f32 %v2181_v23, 0.0  ;;  %v1919_v50 = vmul.f32 %v7480_v4, %v1479_v33 }
 0x22d   : > { %v4972_v12 = vpack.c.bf16 %v3540_v56, %v3540_v56  ;;  %v2005_v49 = vmul.f32 %v7480_v4, %v1823_v47  ;;  %v5242_v0 = vpop.f32.mrf.mxu0  ;;  %v5414_v48 = vpop.f32.mrf.mxu1 }
 0x22e   : > { %4305 = vst.msk [vmem:[%s6285_s6 + $0x140] sm:$0xf] %vm4224_vm3, %v4886_v52  ;;  %v3455_v35 = vmul.f32 %v7675_v20, %v2265_v51  ;;  %v3541_v3 = vmul.f32 %v3362_v40, %v2351_v21  ;;  %v2096_v15 = vadd.f32 %v7493_v14, %v1919_v50 }
 0x22f   : > { %4391 = vst.msk [vmem:[%s6285_s6 + $0x298] sm:$0xf] %vm4224_vm3, %v4972_v12  ;;  %v2182_v26 = vadd.f32 %v7493_v14, %v2005_v49  ;;  %v1482_v62 = vpop.f32.mrf.mxu0  ;;  %v1826_v38 = vpop.f32.mrf.mxu1 }
 0x230   : > { %v4887_v37 = vpack.c.bf16 %v3455_v35, %v3455_v35  ;;  %v4973_v6 = vpack.c.bf16 %v3541_v3, %v3541_v3  ;;  %v2266_v30 = vmax.f32 %v2096_v15, 0.0  ;;  %v1920_v54 = vmul.f32 %v7480_v4, %v1482_v62 }
 0x231   : > { %v2352_v19 = vmax.f32 %v2182_v26, 0.0  ;;  %v2006_v61 = vmul.f32 %v7480_v4, %v1826_v38  ;;  %v5243_v58 = vpop.f32.mrf.mxu0  ;;  %v5415_v43 = vpop.f32.mrf.mxu1 }
 0x232   : > { %4306 = vst.msk [vmem:[%s6285_s6 + $0x144] sm:$0xf] %vm4224_vm3, %v4887_v37  ;;  %4392 = vst.msk [vmem:[%s6285_s6 + $0x29c] sm:$0xf] %vm4224_vm3, %v4973_v6  ;;  %v3456_v53 = vmul.f32 %v7676_v17, %v2266_v30  ;;  %v2097_v13 = vadd.f32 %v7493_v14, %v1920_v54 }
 0x233   : > { %v3542_v59 = vmul.f32 %v3367_v57, %v2352_v19  ;;  %v2183_v11 = vadd.f32 %v7493_v14, %v2006_v61  ;;  %v1487_v10 = vpop.f32.mrf.mxu0 }
 0x234   : > { %v4888_v9 = vpack.c.bf16 %v3456_v53, %v3456_v53  ;;  %v2267_v41 = vmax.f32 %v2097_v13, 0.0  ;;  %v1921_v46 = vmul.f32 %v7480_v4, %v1487_v10 }
 0x235   : > { %v4974_v27 = vpack.c.bf16 %v3542_v59, %v3542_v59  ;;  %v2353_v18 = vmax.f32 %v2183_v11, 0.0  ;;  %v5246_v60 = vpop.f32.mrf.mxu0 }
 0x236   : > { %4307 = vst.msk [vmem:[%s6285_s6 + $0x148] sm:$0xf] %vm4224_vm3, %v4888_v9  ;;  %v3457_v39 = vmul.f32 %v7677_v5, %v2267_v41  ;;  %v2098_v28 = vadd.f32 %v7493_v14, %v1921_v46 }
 0x237   : > { %4393 = vst.msk [vmem:[%s6285_s6 + $0x2a0] sm:$0xf] %vm4224_vm3, %v4974_v27  ;;  %v3543_v63 = vmul.f32 %v3372_v36, %v2353_v18  ;;  %v1490_v2 = vpop.f32.mrf.mxu0 }
 0x238   : > { %v4889_v25 = vpack.c.bf16 %v3457_v39, %v3457_v39  ;;  %v2268_v1 = vmax.f32 %v2098_v28, 0.0  ;;  %v1922_v45 = vmul.f32 %v7480_v4, %v1490_v2 }
 0x239   : > { %v4975_v22 = vpack.c.bf16 %v3543_v63, %v3543_v63  ;;  %v5247_v8 = vpop.f32.mrf.mxu0 }
 0x23a   : > { %4308 = vst.msk [vmem:[%s6285_s6 + $0x14c] sm:$0xf] %vm4224_vm3, %v4889_v25  ;;  %v3458_v31 = vmul.f32 %v7678_v32, %v2268_v1  ;;  %v2099_v44 = vadd.f32 %v7493_v14, %v1922_v45 }
 0x23b   : > { %4394 = vst.msk [vmem:[%s6285_s6 + $0x2a4] sm:$0xf] %vm4224_vm3, %v4975_v22 }
 0x23c   : > { %v4890_v7 = vpack.c.bf16 %v3458_v31, %v3458_v31  ;;  %v2269_v42 = vmax.f32 %v2099_v44, 0.0 }
 0x23e   : > { %4309 = vst.msk [vmem:[%s6285_s6 + $0x150] sm:$0xf] %vm4224_vm3, %v4890_v7  ;;  %v3459_v24 = vmul.f32 %v7679_v55, %v2269_v42 }
 0x240   : > { %v4891_v16 = vpack.c.bf16 %v3459_v24, %v3459_v24 }
 0x242   : > { %4310 = vst.msk [vmem:[%s6285_s6 + $0x154] sm:$0xf] %vm4224_vm3, %v4891_v16 }
 0x243 PF: > { %s15_s18 = sadd.s32 1, %s5542_s18  }
 0x244   : > { %p12_p4 = scmp.ge.s32.totalorder %s15_s18, 4  }
 0x246   :  { %14 = sbr.rel (!%p12_p4) target bundleno = 1 (0x1), region = 70 }

</bundles_post_ra>
